<compile_context>
chip_gen: v5e
topology: v5e:2x2
jax: 0.10.0
libtpu: 0.0.40
codegen_flags: <defaults>
</compile_context>

<pallas_src>
import functools

import jax
import jax.numpy as jnp
from jax.experimental import pallas as pl
from jax.experimental.pallas import tpu as pltpu


def _make_divisible(v, divisor, min_value=None):
    if min_value is None:
        min_value = divisor
    new_v = max(min_value, int(v + divisor / 2) // divisor * divisor)
    if new_v < 0.9 * v:
        new_v += divisor
    return new_v


IN_FEATURES = _make_divisible(1280 * 1.0, 8)   # == 1280
OUT_FEATURES = 200                             # TinyImageNet classes


def _round_up(v, m):
    return (v + m - 1) // m * m


def net_kernel(x_ref, wf_ref, wl_ref, b_ref, o_ref, acc_ref, *, inv_s):
    """Fused frozen-feature-head + trainable Linear, streamed over spatial tiles.

    x_ref : (tn, ts, Cpad)       NHWC input tile (compute dtype, e.g. bf16)
    wf_ref: (Cpad, 1280)         frozen 1x1 pointwise-conv weights
    wl_ref: (1280, Opad)         Linear weight, pre-transposed + lane-padded
    b_ref : (1, Opad)            Linear bias (f32)
    o_ref : (tn, Opad)           logits tile (f32), resident across spatial axis
    acc_ref: (tn, 1280) f32      running per-image spatial sum (VMEM scratch)
    """
    s = pl.program_id(1)

    @pl.when(s == 0)
    def _init():
        acc_ref[...] = jnp.zeros_like(acc_ref)

    tn, ts, c = x_ref.shape
    # Frozen head: 1x1 conv in NHWC == one large (tn*ts, C) @ (C, 1280) MXU matmul.
    x2d = x_ref[...].reshape(tn * ts, c)
    feat = jnp.dot(x2d, wf_ref[...], preferred_element_type=jnp.float32)
    feat = jnp.clip(feat, 0.0, 6.0)                     # ReLU6 in f32 (VPU)

    # Streamed global average pool: per-tile partial sums into the accumulator.
    acc_ref[...] += feat.reshape(tn, ts, feat.shape[-1]).sum(axis=1)

    @pl.when(s == pl.num_programs(1) - 1)
    def _finalize():
        pooled = acc_ref[...] * inv_s                   # mean over true spatial size
        out = jnp.dot(pooled.astype(wl_ref.dtype), wl_ref[...],
                      preferred_element_type=jnp.float32)
        out = out + b_ref[...].astype(jnp.float32)
        o_ref[...] = out.astype(o_ref.dtype)


@functools.partial(jax.jit, static_argnames=("out_features", "compute_dtype"))
def net_forward(x_nchw, w_feat, w_lin, b_lin, *, out_features=OUT_FEATURES,
                compute_dtype=jnp.bfloat16):
    """x_nchw: (N, C, H, W) -> logits (N, out_features) in f32.

    MXU operands are cast (once, outside the kernel) to `compute_dtype`
    (bf16 by default, native MXU path); pass jnp.float32 for exact-f32 math.
    """
    n, c, h, w = x_nchw.shape
    s = h * w
    c_in, f = w_feat.shape
    assert c_in == c and w_lin.shape == (f, out_features)

    # ---- padded / lane-dense shapes and tile sizes ----
    c_pad = _round_up(c, 128)                 # lane-dense K for the first matmul
    o_pad = _round_up(out_features, 128)      # 200 -> 256: unmasked stores, MXU-friendly N
    ts = 128                                  # spatial tile (sublane axis), 128-granular
    s_pad = _round_up(s, ts)
    if n % 8 == 0:
        n_pad, tn = n, min(n, 8)
    elif n <= 8:
        n_pad, tn = n, n                      # block == full batch dim (allowed)
    else:
        n_pad, tn = _round_up(n, 8), 8

    # ---- layout glue (outside the kernel): NCHW -> (N, S, C), zero padding ----
    x = jnp.transpose(x_nchw, (0, 2, 3, 1)).reshape(n, s, c)
    x = jnp.pad(x, ((0, n_pad - n), (0, s_pad - s), (0, c_pad - c))).astype(compute_dtype)
    wf = jnp.pad(w_feat, ((0, c_pad - c), (0, 0))).astype(compute_dtype)
    wl = jnp.pad(w_lin, ((0, 0), (0, o_pad - out_features))).astype(compute_dtype)
    b = jnp.pad(b_lin, (0, o_pad - out_features)).reshape(1, o_pad).astype(jnp.float32)

    grid = (n_pad // tn, s_pad // ts)

    # ---- VMEM budget (derived for the 64 MiB v7x case, with headroom) ----
    cbytes = jnp.dtype(compute_dtype).itemsize
    vmem_need = (
        2 * tn * ts * c_pad * cbytes          # double-buffered x tiles
        + 2 * c_pad * f * cbytes              # wf
        + 2 * f * o_pad * cbytes              # wl
        + 2 * o_pad * 4                       # bias
        + 2 * tn * o_pad * 4                  # output tile
        + tn * f * 4                          # f32 accumulator scratch
        + tn * ts * f * 4                     # in-kernel feat intermediate
    )
    vmem_limit = int(min(max(2 * vmem_need, 8 * 1024 * 1024), 48 * 1024 * 1024))

    flops = 2 * n_pad * s_pad * c_pad * f + 2 * n_pad * f * o_pad
    bytes_accessed = (n_pad * s_pad * c_pad * cbytes + c_pad * f * cbytes
                      + f * o_pad * cbytes + o_pad * 4 + n_pad * o_pad * 4)

    out_padded = pl.pallas_call(
        functools.partial(net_kernel, inv_s=1.0 / s),
        out_shape=jax.ShapeDtypeStruct((n_pad, o_pad), jnp.float32),
        grid_spec=pltpu.PrefetchScalarGridSpec(
            num_scalar_prefetch=0,
            grid=grid,
            in_specs=[
                pl.BlockSpec((tn, ts, c_pad), lambda i, si: (i, si, 0)),  # x tile
                pl.BlockSpec((c_pad, f), lambda i, si: (0, 0)),           # wf (resident)
                pl.BlockSpec((f, o_pad), lambda i, si: (0, 0)),           # wl (resident)
                pl.BlockSpec((1, o_pad), lambda i, si: (0, 0)),           # bias
            ],
            out_specs=pl.BlockSpec((tn, o_pad), lambda i, si: (i, 0)),    # accumulator-style
            scratch_shapes=[pltpu.VMEM((tn, f), jnp.float32)],
        ),
        compiler_params=pltpu.CompilerParams(
            dimension_semantics=("parallel", "arbitrary"),
            vmem_limit_bytes=vmem_limit,
        ),
        cost_estimate=pl.CostEstimate(
            flops=flops, transcendentals=0, bytes_accessed=bytes_accessed),
    )(x, wf, wl, b)

    return out_padded[:n, :out_features]


def net_reference(x_nchw, w_feat, w_lin, b_lin, compute_dtype=jnp.bfloat16):
    """Pure-JAX reference (same operand precision as the kernel)."""
    n, c, h, w = x_nchw.shape
    x = jnp.transpose(x_nchw, (0, 2, 3, 1)).reshape(n, h * w, c).astype(compute_dtype)
    feat = jnp.einsum("nsc,cf->nsf", x, w_feat.astype(compute_dtype),
                      preferred_element_type=jnp.float32)
    feat = jnp.clip(feat, 0.0, 6.0)
    pooled = jnp.mean(feat, axis=1)
    out = jnp.dot(pooled.astype(compute_dtype), w_lin.astype(compute_dtype),
                  preferred_element_type=jnp.float32)
    return out + b_lin.astype(jnp.float32)


def init_params(key, c_in, in_features=IN_FEATURES, out_features=OUT_FEATURES):
    k0, k1, k2 = jax.random.split(key, 3)
    # frozen feature-head 1x1 conv weights, stored (C_in, 1280) (PyTorch: (1280, C_in, 1, 1))
    w_feat = jax.random.normal(k0, (c_in, in_features), jnp.float32) * 0.05
    # trainable Linear: PyTorch default U(-1/sqrt(in), 1/sqrt(in)); stored transposed (in, out)
    bound = 1.0 / (in_features ** 0.5)
    w_lin = jax.random.uniform(k1, (in_features, out_features), jnp.float32, -bound, bound)
    b_lin = jax.random.uniform(k2, (out_features,), jnp.float32, -bound, bound)
    return w_feat, w_lin, b_lin


if __name__ == "__main__":
    key = jax.random.PRNGKey(0)
    kx, kp = jax.random.split(key)

    # small shapes consistent with the module: batch=2, 8 input channels, 16x16 spatial
    N, C_IN, H, W = 2, 8, 16, 16
    x = jax.random.normal(kx, (N, C_IN, H, W), jnp.float32)   # PyTorch-style NCHW input
    w_feat, w_lin, b_lin = init_params(kp, C_IN)

    out = net_forward(x, w_feat, w_lin, b_lin)
    out = jax.block_until_ready(out)
    assert out.shape == (N, OUT_FEATURES) and out.dtype == jnp.float32
    assert bool(jnp.all(jnp.isfinite(out)))

    ref = net_reference(x, w_feat, w_lin, b_lin)
    assert bool(jnp.allclose(out, ref, atol=2e-2, rtol=1e-2)), \
        float(jnp.max(jnp.abs(out - ref)))

    print("KERNEL_OK")
</pallas_src>

<mosaic_0001>
module attributes {stable_mosaic.version = 11 : i64} {
  func.func @net_kernel(%arg0: i32, %arg1: i32, %arg2: memref<2x128x128xbf16, #tpu.memory_space<vmem>>, %arg3: memref<128x1280xbf16, #tpu.memory_space<vmem>>, %arg4: memref<1280x256xbf16, #tpu.memory_space<vmem>>, %arg5: memref<1x256xf32, #tpu.memory_space<vmem>>, %arg6: memref<2x256xf32, #tpu.memory_space<vmem>>, %arg7: memref<2x1280xf32, #tpu.memory_space<vmem>>) attributes {dimension_semantics = [#tpu.dimension_semantics<parallel>, #tpu.dimension_semantics<arbitrary>], iteration_bounds = array<i64: 1, 2>, scalar_prefetch = 0 : i64, scratch_operands = 1 : i64, tpu.core_type = #tpu.core_type<tc>, window_params = [{transform_indices = @transform_0, window_bounds = array<i64: 2, 128, 128>}, {pipeline_mode = #tpu.pipeline_mode<synchronous>, transform_indices = @transform_1, window_bounds = array<i64: 128, 1280>}, {pipeline_mode = #tpu.pipeline_mode<synchronous>, transform_indices = @transform_2, window_bounds = array<i64: 1280, 256>}, {pipeline_mode = #tpu.pipeline_mode<synchronous>, transform_indices = @transform_3, window_bounds = array<i64: 1, 256>}, {transform_indices = @transform_4, window_bounds = array<i64: 2, 256>}]} {
    %c0_i32 = arith.constant 0 : i32
    %0 = arith.cmpi eq, %arg1, %c0_i32 : i32
    %1 = arith.extui %0 : i1 to i32
    %c0_i32_0 = arith.constant 0 : i32
    %2 = arith.cmpi ne, %1, %c0_i32_0 : i32
    scf.if %2 {
      %cst_13 = arith.constant 0.000000e+00 : f32
      %19 = vector.broadcast %cst_13 : f32 to vector<2x1280xf32>
      %c0_14 = arith.constant 0 : index
      %c0_15 = arith.constant 0 : index
      %20 = vector.load %arg7[%c0_14, %c0_15] : memref<2x1280xf32, #tpu.memory_space<vmem>>, vector<2x1280xf32>
      tpu.vector_store %arg7[%c0_14, %c0_15], %19 {strides = array<i32>} : memref<2x1280xf32, #tpu.memory_space<vmem>>, vector<2x1280xf32>,
    } else {
    }
    %c0 = arith.constant 0 : index
    %c0_1 = arith.constant 0 : index
    %c0_2 = arith.constant 0 : index
    %3 = vector.load %arg2[%c0, %c0_1, %c0_2] : memref<2x128x128xbf16, #tpu.memory_space<vmem>>, vector<2x128x128xbf16>
    %4 = vector.shape_cast %3 : vector<2x128x128xbf16> to vector<256x128xbf16>
    %c0_3 = arith.constant 0 : index
    %c0_4 = arith.constant 0 : index
    %5 = vector.load %arg3[%c0_3, %c0_4] : memref<128x1280xbf16, #tpu.memory_space<vmem>>, vector<128x1280xbf16>
    %cst = arith.constant dense<0.000000e+00> : vector<256x1280xf32>
    %6 = tpu.matmul %4, %5, %cst {dimension_numbers = #tpu.dot_dimension_numbers<[1], [0], [0], [1], [0, 0, 1, 1], [], []>} : vector<256x128xbf16>, vector<128x1280xbf16>, vector<256x1280xf32> -> vector<256x1280xf32>
    %cst_5 = arith.constant 0.000000e+00 : f32
    %cst_6 = arith.constant 6.000000e+00 : f32
    %7 = vector.broadcast %cst_5 : f32 to vector<256x1280xf32>
    %8 = arith.maximumf %7, %6 : vector<256x1280xf32>
    %9 = vector.broadcast %cst_6 : f32 to vector<256x1280xf32>
    %10 = arith.minimumf %9, %8 : vector<256x1280xf32>
    %c0_7 = arith.constant 0 : index
    %c0_8 = arith.constant 0 : index
    %11 = vector.load %arg7[%c0_7, %c0_8] : memref<2x1280xf32, #tpu.memory_space<vmem>>, vector<2x1280xf32>
    %12 = vector.shape_cast %10 : vector<256x1280xf32> to vector<2x128x1280xf32>
    %cst_9 = arith.constant dense<0.000000e+00> : vector<2x1280xf32>
    %13 = vector.multi_reduction <add>, %12, %cst_9 [1] : vector<2x128x1280xf32> to vector<2x1280xf32>
    %14 = arith.addf %11, %13 : vector<2x1280xf32>
    %c0_10 = arith.constant 0 : index
    %c0_11 = arith.constant 0 : index
    %15 = vector.load %arg7[%c0_10, %c0_11] : memref<2x1280xf32, #tpu.memory_space<vmem>>, vector<2x1280xf32>
    tpu.vector_store %arg7[%c0_10, %c0_11], %14 {strides = array<i32>} : memref<2x1280xf32, #tpu.memory_space<vmem>>, vector<2x1280xf32>,
    %c1_i32 = arith.constant 1 : i32
    %16 = arith.cmpi eq, %arg1, %c1_i32 : i32
    %17 = arith.extui %16 : i1 to i32
    %c0_i32_12 = arith.constant 0 : i32
    %18 = arith.cmpi ne, %17, %c0_i32_12 : i32
    scf.if %18 {
      %c0_13 = arith.constant 0 : index
      %c0_14 = arith.constant 0 : index
      %19 = vector.load %arg7[%c0_13, %c0_14] : memref<2x1280xf32, #tpu.memory_space<vmem>>, vector<2x1280xf32>
      %cst_15 = arith.constant 3.906250e-03 : f32
      %20 = vector.broadcast %cst_15 : f32 to vector<2x1280xf32>
      %21 = arith.mulf %19, %20 : vector<2x1280xf32>
      %22 = arith.truncf %21 : vector<2x1280xf32> to vector<2x1280xbf16>
      %c0_16 = arith.constant 0 : index
      %c0_17 = arith.constant 0 : index
      %23 = vector.load %arg4[%c0_16, %c0_17] : memref<1280x256xbf16, #tpu.memory_space<vmem>>, vector<1280x256xbf16>
      %cst_18 = arith.constant dense<0.000000e+00> : vector<2x256xf32>
      %24 = tpu.matmul %22, %23, %cst_18 {dimension_numbers = #tpu.dot_dimension_numbers<[1], [0], [0], [1], [0, 0, 1, 1], [], []>} : vector<2x1280xbf16>, vector<1280x256xbf16>, vector<2x256xf32> -> vector<2x256xf32>
      %c0_19 = arith.constant 0 : index
      %c0_20 = arith.constant 0 : index
      %25 = vector.load %arg5[%c0_19, %c0_20] : memref<1x256xf32, #tpu.memory_space<vmem>>, vector<1x256xf32>
      %26 = vector.broadcast %25 : vector<1x256xf32> to vector<2x256xf32>
      %27 = arith.addf %24, %26 : vector<2x256xf32>
      %c0_21 = arith.constant 0 : index
      %c0_22 = arith.constant 0 : index
      %28 = vector.load %arg6[%c0_21, %c0_22] : memref<2x256xf32, #tpu.memory_space<vmem>>, vector<2x256xf32>
      tpu.vector_store %arg6[%c0_21, %c0_22], %27 {strides = array<i32>} : memref<2x256xf32, #tpu.memory_space<vmem>>, vector<2x256xf32>,
    } else {
    }
    return
  }
  func.func @transform_0(%arg0: i32, %arg1: i32) -> (i32, i32, i32) {
    %c0_i32 = arith.constant 0 : i32
    %c0_i32_0 = arith.constant 0 : i32
    return %arg0, %arg1, %c0_i32 : i32, i32, i32
  }
  func.func @transform_1(%arg0: i32, %arg1: i32) -> (i32, i32) {
    %c0_i32 = arith.constant 0 : i32
    %c0_i32_0 = arith.constant 0 : i32
    %c0_i32_1 = arith.constant 0 : i32
    return %c0_i32, %c0_i32_0 : i32, i32
  }
  func.func @transform_2(%arg0: i32, %arg1: i32) -> (i32, i32) {
    %c0_i32 = arith.constant 0 : i32
    %c0_i32_0 = arith.constant 0 : i32
    %c0_i32_1 = arith.constant 0 : i32
    return %c0_i32, %c0_i32_0 : i32, i32
  }
  func.func @transform_3(%arg0: i32, %arg1: i32) -> (i32, i32) {
    %c0_i32 = arith.constant 0 : i32
    %c0_i32_0 = arith.constant 0 : i32
    %c0_i32_1 = arith.constant 0 : i32
    return %c0_i32, %c0_i32_0 : i32, i32
  }
  func.func @transform_4(%arg0: i32, %arg1: i32) -> (i32, i32) {
    %c0_i32 = arith.constant 0 : i32
    %c0_i32_0 = arith.constant 0 : i32
    return %arg0, %c0_i32 : i32, i32
  }
}

</mosaic_0001>

<bundles_post_ra>
// kernel: net_forward.1
= control target key start
LH: loop header
LB: loop body
LE: loop exit
PB: predicated region body
PF: predicated region fallthrough
CT: control target
= control target key end

     0   :  { %9 = vsyncpa [#allocation5], 0  ;;  %s5863_s15 = smov 0   ;;  %s5865_s16 = smov 0   ;;  %s7698_s0 = inlined_call_operand.vmem [shape: bf16[2,256,128], index: 0, kind: input, shape index: {}]   ;;  %s7699_s1 = inlined_call_operand.vmem [shape: bf16[128,1280], index: 1, kind: input, shape index: {}]   ;;  %s7700_s2 = inlined_call_operand.vmem [shape: bf16[1280,256], index: 2, kind: input, shape index: {}]   ;;  %s7701_s3 = inlined_call_operand.vmem [shape: f32[1,256], index: 3, kind: input, shape index: {}]   ;;  %s7702_s4 = inlined_call_operand.hbm [shape: f32[2,256], index: 4, kind: output, shape index: {}]  }
   0x1   :  { %s5867_s17 = smov 0   ;;  %s5869_s18 = smov 0  }
   0x2   :  { %s5871_s19 = smov 0  }
   0x3 LB: > { %s4381_s20 = sadd.s32 4294967295, %s5834_s19   ;;  %s24_s21 = sadd.s32 1, %s5830_s18  ;;  %s5834_s19 = sphi %s5871_s19, %s15_s19   ;;  %s5830_s18 = sphi %s5869_s18, %s7706_s18   ;;  %s5826_s17 = sphi %s5867_s17, %s7705_s17   ;;  %s5822_s16 = sphi %s5865_s16, %s7704_s16   ;;  %s5818_s15 = sphi %s5863_s15, %s7703_s15  }
   0x4   : > { %p25_p0 = scmp.ge.s32.totalorder %s24_s21, 2  ;;  %p43_p1 = scmp.ne.s32.totalorder %s5822_s16, %s5818_s15 }
   0x5   : > { %p44_p2 = scmp.eq.s32.totalorder %s5834_s19, 0  ;;  %s36_s23 = sadd.s32 1, %s5822_s16 }
   0x6   : > { %s7708_s21 = smov (%p25_p0, %s24_s21), 0  ;;  %p4383_p5 = scmp.ge.s32.totalorder %s5834_s19, 2 }
   0x7   : > { %p45_p3 = por %p44_p2, %p43_p1  ;;  %s32_s22 = ssub.s32 %s5830_s18, %s7708_s21 }
   0x8   : > { %p34_p4 = scmp.eq.s32.totalorder %s32_s22, 0  ;;  %167 = sbr.rel (%p4383_p5) target bundleno = 33 (0x21), region = 28 }
   0xa   : > { %s5899_s24 = scalar_select %p34_p4, %s5822_s16, %s36_s23  }
   0xd   : > { %170 = sbr.rel (!%p45_p3) target bundleno = 33 (0x21), region = 32  ;;  %s172_s25 = sand.u32 (%p45_p3), 1, %s5822_s16  }
   0xe   : > { %s5419_s26 = sshll.u32 (%p45_p3), %s5830_s18, 6  ;;  %s4384_s27 = sshll.u32 (%p45_p3), %s172_s25, 7 }
   0xf   : > { %s5907_s30 = scalar_lea.vmem (%p45_p3), %s7698_s0, %s5419_s26  ;;  %s174_s5 = scalar_lea.vmem (%p45_p3), [#allocation3], %s4384_s27 }
  0x10   : > { %v197_v0 = vld [vmem:[%s5907_s30] sm:$0xff] (%p45_p3)   ;;  %v201_v1 = vld [vmem:[%s5907_s30 + $0x8] sm:$0xff] (%p45_p3)   ;;  %v205_v2 = vld [vmem:[%s5907_s30 + $0x10] sm:$0xff] (%p45_p3)  }
  0x11   : > { %198 = vst [vmem:[%s174_s5] sm:$0xff] (%p45_p3), %v197_v0   ;;  %v209_v3 = vld [vmem:[%s5907_s30 + $0x18] sm:$0xff] (%p45_p3)   ;;  %v213_v4 = vld [vmem:[%s5907_s30 + $0x20] sm:$0xff] (%p45_p3)   ;;  %v217_v5 = vld [vmem:[%s5907_s30 + $0x28] sm:$0xff] (%p45_p3)  }
  0x12   : > { %202 = vst [vmem:[%s174_s5 + $0x8] sm:$0xff] %v201_v1   ;;  %v221_v6 = vld [vmem:[%s5907_s30 + $0x30] sm:$0xff]   ;;  %v225_v7 = vld [vmem:[%s5907_s30 + $0x38] sm:$0xff]   ;;  %v229_v8 = vld [vmem:[%s5907_s30 + $0x80] sm:$0xff]  }
  0x13   : > { %206 = vst [vmem:[%s174_s5 + $0x10] sm:$0xff] %v205_v2   ;;  %v233_v9 = vld [vmem:[%s5907_s30 + $0x88] sm:$0xff]   ;;  %v237_v10 = vld [vmem:[%s5907_s30 + $0x90] sm:$0xff]   ;;  %v241_v11 = vld [vmem:[%s5907_s30 + $0x98] sm:$0xff]  }
  0x14   : > { %210 = vst [vmem:[%s174_s5 + $0x18] sm:$0xff] %v209_v3   ;;  %v245_v12 = vld [vmem:[%s5907_s30 + $0xa0] sm:$0xff]   ;;  %v249_v13 = vld [vmem:[%s5907_s30 + $0xa8] sm:$0xff]   ;;  %v253_v14 = vld [vmem:[%s5907_s30 + $0xb0] sm:$0xff]  }
  0x15   : > { %214 = vst [vmem:[%s174_s5 + $0x20] sm:$0xff] %v213_v4   ;;  %v257_v15 = vld [vmem:[%s5907_s30 + $0xb8] sm:$0xff]  }
  0x16   : > { %218 = vst [vmem:[%s174_s5 + $0x28] sm:$0xff] %v217_v5  }
  0x17   : > { %222 = vst [vmem:[%s174_s5 + $0x30] sm:$0xff] %v221_v6  }
  0x18   : > { %226 = vst [vmem:[%s174_s5 + $0x38] sm:$0xff] %v225_v7  }
  0x19   : > { %230 = vst [vmem:[%s174_s5 + $0x40] sm:$0xff] %v229_v8  }
  0x1a   : > { %234 = vst [vmem:[%s174_s5 + $0x48] sm:$0xff] %v233_v9  }
  0x1b   : > { %238 = vst [vmem:[%s174_s5 + $0x50] sm:$0xff] %v237_v10  }
  0x1c   : > { %242 = vst [vmem:[%s174_s5 + $0x58] sm:$0xff] %v241_v11  }
  0x1d   : > { %246 = vst [vmem:[%s174_s5 + $0x60] sm:$0xff] %v245_v12  }
  0x1e   : > { %250 = vst [vmem:[%s174_s5 + $0x68] sm:$0xff] %v249_v13  }
  0x1f   : > { %254 = vst [vmem:[%s174_s5 + $0x70] sm:$0xff] %v253_v14  }
  0x20   : > { %258 = vst [vmem:[%s174_s5 + $0x78] sm:$0xff] %v257_v15  }
  0x21 PF: > { %p4387_p6 = scmp.ge.s32.totalorder %s5834_s19, 1  ;;  %p347_p7 = scmp.lt.s32.totalorder %s5834_s19, 3 }
  0x23   : > { %p348_p8 = pnand %p4387_p6, %p347_p7 }
  0x24   : > { %s354_s6 = sand.u32 (!%p348_p8), 1, %s5818_s15   ;;  %p4389_p9 = scmp.ne.s32.totalorder (!%p348_p8), %s5826_s17, 0 }
  0x25   : > { %351 = sbr.rel (%p348_p8) target bundleno = 1194 (0x4aa), region = 73  ;;  %s4388_s7 = sshll.u32 (!%p348_p8), %s354_s6, 7 }
  0x26   : > { %s5928_s8 = scalar_lea.vmem (!%p348_p8), [#allocation3], %s4388_s7 }
  0x2a   : > { %379 = sbr.rel (%p4389_p9) target bundleno = 51 (0x33), region = 81 }
  0x2f   : > { %v5836_v16 = vmov 0.0  }
  0x30   : > { %380 = vst [vmem:[#allocation2] sm:$0xff] %v5836_v16 }
  0x31   : > { %381 = vst [vmem:[#allocation2 + $0x8] sm:$0xff] %v5836_v16 }
  0x32   : > { %382 = vst [vmem:[#allocation2 + $0x10] sm:$0xf] %v5836_v16 }
  0x33 PF: > { %v4736_v17 = vld [vmem:[%s7699_s1 + $0x230] sm:$0xf]  ;;  %v5511_v18 = vld [vmem:[%s7699_s1 + $0x254] sm:$0xf0]  ;;  %v5506_v19 = vld [vmem:[%s7699_s1 + $0x234] sm:$0xf] }
  0x34   : > { %v4737_v20 = vor.u32 %v5511_v18, %v4736_v17  ;;  %v4738_v21 = vld [vmem:[%s7699_s1 + $0x258] sm:$0xf0]  ;;  %v4696_v22 = vld [vmem:[%s7699_s1 + $0x1e0] sm:$0xf]  ;;  %v5501_v23 = vld [vmem:[%s7699_s1 + $0x204] sm:$0xf0] }
  0x35   : > { %v4741_v24 = vor.u32 %v5506_v19, %v4738_v21  ;;  %v5496_v25 = vld [vmem:[%s7699_s1 + $0x1e4] sm:$0xf]  ;;  %v4698_v26 = vld [vmem:[%s7699_s1 + $0x208] sm:$0xf0]  ;;  %v4697_v27 = vor.u32 %v5501_v23, %v4696_v22  ;;  %v4656_v29 = vld [vmem:[%s7699_s1 + $0x190] sm:$0xf] }
  0x36   : > { %991 = vmatpush.bf16.msra.mxu0 %v4737_v20  ;;  %5676 = vmatpush.bf16.msra.mxu2 %v4737_v20  ;;  %v4701_v28 = vor.u32 %v5496_v25, %v4698_v26  ;;  %v5491_v30 = vld [vmem:[%s7699_s1 + $0x1b4] sm:$0xf0]  ;;  %v5486_v31 = vld [vmem:[%s7699_s1 + $0x194] sm:$0xf]  ;;  %v4658_v32 = vld [vmem:[%s7699_s1 + $0x1b8] sm:$0xf0] }
  0x37   : > { %1080 = vmatpush.bf16.msra.mxu1 %v4741_v24  ;;  %5684 = vmatpush.bf16.msra.mxu3 %v4741_v24  ;;  %v4657_v33 = vor.u32 %v5491_v30, %v4656_v29  ;;  %v4661_v34 = vor.u32 %v5486_v31, %v4658_v32  ;;  %v4616_v35 = vld [vmem:[%s7699_s1 + $0x140] sm:$0xf]  ;;  %v5481_v36 = vld [vmem:[%s7699_s1 + $0x164] sm:$0xf0]  ;;  %v5476_v37 = vld [vmem:[%s7699_s1 + $0x144] sm:$0xf] }
  0x38   : > { %v4618_v38 = vld [vmem:[%s7699_s1 + $0x168] sm:$0xf0]  ;;  %v4617_v39 = vor.u32 %v5481_v36, %v4616_v35  ;;  %v4576_v41 = vld [vmem:[%s7699_s1 + $0xf0] sm:$0xf]  ;;  %v5471_v42 = vld [vmem:[%s7699_s1 + $0x114] sm:$0xf0] }
  0x39   : > { %v4621_v40 = vor.u32 %v5476_v37, %v4618_v38  ;;  %v5466_v43 = vld [vmem:[%s7699_s1 + $0xf4] sm:$0xf]  ;;  %v4578_v44 = vld [vmem:[%s7699_s1 + $0x118] sm:$0xf0]  ;;  %v4577_v45 = vor.u32 %v5471_v42, %v4576_v41  ;;  %v4536_v47 = vld [vmem:[%s7699_s1 + $0xa0] sm:$0xf] }
  0x3a   : > { %992 = vmatpush.bf16.msra.mxu0 %v4697_v27  ;;  %5677 = vmatpush.bf16.msra.mxu2 %v4697_v27  ;;  %v4581_v46 = vor.u32 %v5466_v43, %v4578_v44  ;;  %v5461_v48 = vld [vmem:[%s7699_s1 + $0xc4] sm:$0xf0]  ;;  %v5456_v49 = vld [vmem:[%s7699_s1 + $0xa4] sm:$0xf]  ;;  %v4538_v50 = vld [vmem:[%s7699_s1 + $0xc8] sm:$0xf0] }
  0x3b   : > { %1081 = vmatpush.bf16.msra.mxu1 %v4701_v28  ;;  %5685 = vmatpush.bf16.msra.mxu3 %v4701_v28  ;;  %v4537_v51 = vor.u32 %v5461_v48, %v4536_v47  ;;  %v4541_v52 = vor.u32 %v5456_v49, %v4538_v50  ;;  %v4496_v53 = vld [vmem:[%s7699_s1 + $0x50] sm:$0xf]  ;;  %v5451_v54 = vld [vmem:[%s7699_s1 + $0x74] sm:$0xf0]  ;;  %v5446_v55 = vld [vmem:[%s7699_s1 + $0x54] sm:$0xf] }
  0x3c   : > { %v4498_v56 = vld [vmem:[%s7699_s1 + $0x78] sm:$0xf0]  ;;  %v4497_v57 = vor.u32 %v5451_v54, %v4496_v53  ;;  %v4456_v59 = vld [vmem:[%s7699_s1] sm:$0xf]  ;;  %v5441_v60 = vld [vmem:[%s7699_s1 + $0x24] sm:$0xf0] }
  0x3d   : > { %v4501_v58 = vor.u32 %v5446_v55, %v4498_v56  ;;  %v5436_v61 = vld [vmem:[%s7699_s1 + $0x4] sm:$0xf]  ;;  %v4458_v62 = vld [vmem:[%s7699_s1 + $0x28] sm:$0xf0]  ;;  %v4744_v63 = vld [vmem:[%s7699_s1 + $0x238] sm:$0xf]  ;;  %v4457_v3 = vor.u32 %v5441_v60, %v4456_v59 }
  0x3e   : > { %993 = vmatpush.bf16.msra.mxu0 %v4657_v33  ;;  %5678 = vmatpush.bf16.msra.mxu2 %v4657_v33  ;;  %v5512_v0 = vld [vmem:[%s7699_s1 + $0x25c] sm:$0xf0]  ;;  %v5507_v1 = vld [vmem:[%s7699_s1 + $0x23c] sm:$0xf]  ;;  %v4746_v2 = vld [vmem:[%s7699_s1 + $0x260] sm:$0xf0]  ;;  %v4461_v4 = vor.u32 %v5436_v61, %v4458_v62 }
  0x3f   : > { %1082 = vmatpush.bf16.msra.mxu1 %v4661_v34  ;;  %5686 = vmatpush.bf16.msra.mxu3 %v4661_v34  ;;  %v6040_v5 = vld [vmem:[%s5928_s8] sm:$0xff]  ;;  %v5508_v7 = vld [vmem:[%s7699_s1 + $0x244] sm:$0xf]  ;;  %v4754_v8 = vld [vmem:[%s7699_s1 + $0x268] sm:$0xf0]  ;;  %v4745_v9 = vor.u32 %v5512_v0, %v4744_v63  ;;  %v4749_v10 = vor.u32 %v5507_v1, %v4746_v2  ;;  %vm2978_vm0 = vcmask 1041408  }
  0x40   : > { %v5428_v6 = vld [vmem:[%s5928_s8 + $0x40] sm:$0xff]  ;;  %v5513_v12 = vld [vmem:[%s7699_s1 + $0x264] sm:$0xf0]  ;;  %v5502_v14 = vld [vmem:[%s7699_s1 + $0x20c] sm:$0xf0]  ;;  %v4757_v17 = vor.u32 %v5508_v7, %v4754_v8  ;;  %vm2980_vm1 = vcmask 1045508  }
  0x41   : > { %v4752_v11 = vld [vmem:[%s7699_s1 + $0x240] sm:$0xf]  ;;  %v4704_v13 = vld [vmem:[%s7699_s1 + $0x1e8] sm:$0xf]  ;;  %v5497_v15 = vld [vmem:[%s7699_s1 + $0x1ec] sm:$0xf] }
  0x42   : > { %994 = vmatpush.bf16.msra.mxu0 %v4617_v39  ;;  %5679 = vmatpush.bf16.msra.mxu2 %v4617_v39  ;;  %v4706_v16 = vld [vmem:[%s7699_s1 + $0x210] sm:$0xf0]  ;;  %v4753_v18 = vor.u32 %v5513_v12, %v4752_v11  ;;  %v4705_v20 = vor.u32 %v5502_v14, %v4704_v13  ;;  %v4714_v22 = vld [vmem:[%s7699_s1 + $0x218] sm:$0xf0]  ;;  %v4712_v23 = vld [vmem:[%s7699_s1 + $0x1f0] sm:$0xf] }
  0x43   : > { %1083 = vmatpush.bf16.msra.mxu1 %v4621_v40  ;;  %5687 = vmatpush.bf16.msra.mxu3 %v4621_v40  ;;  %v5498_v19 = vld [vmem:[%s7699_s1 + $0x1f4] sm:$0xf]  ;;  %v4709_v21 = vor.u32 %v5497_v15, %v4706_v16  ;;  %v5503_v24 = vld [vmem:[%s7699_s1 + $0x214] sm:$0xf0]  ;;  %v5492_v26 = vld [vmem:[%s7699_s1 + $0x1bc] sm:$0xf0] }
  0x44   : > { %v4664_v25 = vld [vmem:[%s7699_s1 + $0x198] sm:$0xf]  ;;  %v5487_v27 = vld [vmem:[%s7699_s1 + $0x19c] sm:$0xf]  ;;  %v4717_v28 = vor.u32 %v5498_v19, %v4714_v22  ;;  %v4713_v29 = vor.u32 %v5503_v24, %v4712_v23  ;;  %v4666_v30 = vld [vmem:[%s7699_s1 + $0x1c0] sm:$0xf0] }
  0x45   : > { %v5488_v31 = vld [vmem:[%s7699_s1 + $0x1a4] sm:$0xf]  ;;  %v4665_v32 = vor.u32 %v5492_v26, %v4664_v25  ;;  %v4669_v33 = vor.u32 %v5487_v27, %v4666_v30  ;;  %v4674_v34 = vld [vmem:[%s7699_s1 + $0x1c8] sm:$0xf0]  ;;  %v4672_v35 = vld [vmem:[%s7699_s1 + $0x1a0] sm:$0xf] }
  0x46   : > { %995 = vmatpush.bf16.msra.mxu0 %v4577_v45  ;;  %5680 = vmatpush.bf16.msra.mxu2 %v4577_v45  ;;  %v5493_v36 = vld [vmem:[%s7699_s1 + $0x1c4] sm:$0xf0]  ;;  %v4677_v37 = vor.u32 %v5488_v31, %v4674_v34  ;;  %v5482_v42 = vld [vmem:[%s7699_s1 + $0x16c] sm:$0xf0]  ;;  %v5477_v43 = vld [vmem:[%s7699_s1 + $0x14c] sm:$0xf] }
  0x47   : > { %1084 = vmatpush.bf16.msra.mxu1 %v4581_v46  ;;  %5688 = vmatpush.bf16.msra.mxu3 %v4581_v46  ;;  %v4673_v38 = vor.u32 %v5493_v36, %v4672_v35  ;;  %v6106_v39 = vld [vmem:[%s5928_s8 + $0x8] sm:$0xff]  ;;  %v4626_v45 = vld [vmem:[%s7699_s1 + $0x170] sm:$0xf0]  ;;  %v4634_v47 = vld [vmem:[%s7699_s1 + $0x178] sm:$0xf0]  ;;  %vm2982_vm2 = vcmask 1043456  }
  0x48   : > { %v5429_v40 = vld [vmem:[%s5928_s8 + $0x48] sm:$0xff]  ;;  %v5478_v46 = vld [vmem:[%s7699_s1 + $0x154] sm:$0xf]  ;;  %v4629_v48 = vor.u32 %v5477_v43, %v4626_v45  ;;  %v4632_v50 = vld [vmem:[%s7699_s1 + $0x150] sm:$0xf]  ;;  %vm3000_vm3 = vcmask 1041409  }
  0x49   : > { %v4624_v41 = vld [vmem:[%s7699_s1 + $0x148] sm:$0xf]  ;;  %v4637_v49 = vor.u32 %v5478_v46, %v4634_v47  ;;  %v6136_v53 = vld [vmem:[%s5928_s8 + $0x10] sm:$0xff]  ;;  %v4584_v55 = vld [vmem:[%s7699_s1 + $0xf8] sm:$0xf]  ;;  %vm3002_vm4 = vcmask 1043459  }
  0x4a   : > { %996 = vmatpush.bf16.msra.mxu0 %v4537_v51  ;;  %5681 = vmatpush.bf16.msra.mxu2 %v4537_v51  ;;  %v4625_v44 = vor.u32 %v5482_v42, %v4624_v41  ;;  %v5483_v51 = vld [vmem:[%s7699_s1 + $0x174] sm:$0xf0]  ;;  %v5430_v54 = vld [vmem:[%s5928_s8 + $0x50] sm:$0xff]  ;;  %v5472_v56 = vld [vmem:[%s7699_s1 + $0x11c] sm:$0xf0]  ;;  %vm3004_vm5 = vcmask 1045509  }
  0x4b   : > { %1085 = vmatpush.bf16.msra.mxu1 %v4541_v52  ;;  %5689 = vmatpush.bf16.msra.mxu3 %v4541_v52  ;;  %v4633_v52 = vor.u32 %v5483_v51, %v4632_v50  ;;  %v4586_v59 = vld [vmem:[%s7699_s1 + $0x120] sm:$0xf0]  ;;  %v4594_v61 = vld [vmem:[%s7699_s1 + $0x128] sm:$0xf0]  ;;  %v4592_v0 = vld [vmem:[%s7699_s1 + $0x100] sm:$0xf] }
  0x4c   : > { %v5468_v60 = vld [vmem:[%s7699_s1 + $0x104] sm:$0xf]  ;;  %v5473_v1 = vld [vmem:[%s7699_s1 + $0x124] sm:$0xf0]  ;;  %v5462_v7 = vld [vmem:[%s7699_s1 + $0xcc] sm:$0xf0] }
  0x4d   : > { %v4597_v63 = vor.u32 %v5468_v60, %v4594_v61  ;;  %v4593_v2 = vor.u32 %v5473_v1, %v4592_v0  ;;  %v5457_v8 = vld [vmem:[%s7699_s1 + $0xac] sm:$0xf]  ;;  %v5458_v11 = vld [vmem:[%s7699_s1 + $0xb4] sm:$0xf]  ;;  %v4554_v12 = vld [vmem:[%s7699_s1 + $0xd8] sm:$0xf0] }
  0x4e   : > { %997 = vmatpush.bf16.msra.mxu0 %v4497_v57  ;;  %5682 = vmatpush.bf16.msra.mxu2 %v4497_v57  ;;  %v5467_v57 = vld [vmem:[%s7699_s1 + $0xfc] sm:$0xf]  ;;  %v4557_v14 = vor.u32 %v5458_v11, %v4554_v12  ;;  %v4552_v15 = vld [vmem:[%s7699_s1 + $0xb0] sm:$0xf]  ;;  %v5463_v16 = vld [vmem:[%s7699_s1 + $0xd4] sm:$0xf0] }
  0x4f   : > { %1086 = vmatpush.bf16.msra.mxu1 %v4501_v58  ;;  %5690 = vmatpush.bf16.msra.mxu3 %v4501_v58  ;;  %v4585_v58 = vor.u32 %v5472_v56, %v4584_v55  ;;  %v4589_v62 = vor.u32 %v5467_v57, %v4586_v59  ;;  %v5432_v19 = vld [vmem:[%s5928_s8 + $0x60] sm:$0xff]  ;;  %v4506_v24 = vld [vmem:[%s7699_s1 + $0x80] sm:$0xf0]  ;;  %v4514_v26 = vld [vmem:[%s7699_s1 + $0x88] sm:$0xf0]  ;;  %vm3006_vm6 = vcmask 1047559  }
  0x50   : > { %v5447_v22 = vld [vmem:[%s7699_s1 + $0x5c] sm:$0xf]  ;;  %v5448_v25 = vld [vmem:[%s7699_s1 + $0x64] sm:$0xf]  ;;  %v5453_v30 = vld [vmem:[%s7699_s1 + $0x84] sm:$0xf0] }
  0x51   : > { %v4509_v27 = vor.u32 %v5447_v22, %v4506_v24  ;;  %v4464_v34 = vld [vmem:[%s7699_s1 + $0x8] sm:$0xf]  ;;  %v5442_v35 = vld [vmem:[%s7699_s1 + $0x2c] sm:$0xf0]  ;;  %v5437_v36 = vld [vmem:[%s7699_s1 + $0xc] sm:$0xf] }
  0x52   : > { %998 = vmatpush.bf16.msra.mxu0 %v4457_v3  ;;  %5683 = vmatpush.bf16.msra.mxu2 %v4457_v3  ;;  %v6166_v3 = vld [vmem:[%s5928_s8 + $0x18] sm:$0xff]  ;;  %v4474_v41 = vld [vmem:[%s7699_s1 + $0x38] sm:$0xf0]  ;;  %v6256_v47 = vld [vmem:[%s5928_s8 + $0x30] sm:$0xff]  ;;  %p4774_p10 = scmp.ne.s32.totalorder %s5826_s17, 1 }
  0x53   : > { %1087 = vmatpush.bf16.msra.mxu1 %v4461_v4  ;;  %5691 = vmatpush.bf16.msra.mxu3 %v4461_v4  ;;  %v5431_v4 = vld [vmem:[%s5928_s8 + $0x58] sm:$0xff]  ;;  %v5514_v50 = vld [vmem:[%s7699_s1 + $0x26c] sm:$0xf0]  ;;  %v5509_v51 = vld [vmem:[%s7699_s1 + $0x24c] sm:$0xf] }
  0x54   : > { %v5443_v45 = vld [vmem:[%s7699_s1 + $0x34] sm:$0xf0]  ;;  %v5510_v56 = vld [vmem:[%s7699_s1 + $0x254] sm:$0xf]  ;;  %v4770_v57 = vld [vmem:[%s7699_s1 + $0x278] sm:$0xf0] }
  0x55   : > { %999 = vmatmul.bf16.vlgmr.msra.gmra.mxu0 %v6040_v5  ;;  %1039 = vmatmul.bf16.vlgmr.msra.gmra.mxu2 %v5428_v6  ;;  %v6283_v59 = vld [vmem:[%s5928_s8 + $0x38] sm:$0xff]  ;;  %v4773_v61 = vor.u32 %v5510_v56, %v4770_v57 }
  0x56   : > { %1169 = vmatpush.bf16.msrb.mxu2 %v4745_v9  ;;  %1088 = vmatmul.bf16.vlgmr.msra.gmra.mxu1 %v6040_v5  ;;  %v5435_v60 = vld [vmem:[%s5928_s8 + $0x78] sm:$0xff] }
  0x57   : > { %1258 = vmatpush.bf16.msrb.mxu3 %v4749_v10  ;;  %1436 = vmatpush.bf16.msrb.mxu1 %v4757_v17  ;;  %v4546_v10 = vld [vmem:[%s7699_s1 + $0xd0] sm:$0xf0]  ;;  %v4553_v17 = vor.u32 %v5463_v16, %v4552_v15 }
  0x58   : > { %1128 = vmatmul.bf16.vlgmr.msra.gmra.mxu3 %v5428_v6  ;;  %1347 = vmatpush.bf16.msrb.mxu0 %v4753_v18  ;;  %v4544_v6 = vld [vmem:[%s7699_s1 + $0xa8] sm:$0xf]  ;;  %v4549_v13 = vor.u32 %v5457_v8, %v4546_v10  ;;  %v6196_v18 = vld [vmem:[%s5928_s8 + $0x20] sm:$0xff] }
  0x59   : > { %v4545_v9 = vor.u32 %v5462_v7, %v4544_v6  ;;  %v4720_v7 = vld [vmem:[%s7699_s1 + $0x1f8] sm:$0xf]  ;;  %v5504_v8 = vld [vmem:[%s7699_s1 + $0x21c] sm:$0xf0] }
  0x5a   : > { %1170 = vmatpush.bf16.msrb.mxu2 %v4705_v20  ;;  %v4504_v20 = vld [vmem:[%s7699_s1 + $0x58] sm:$0xf]  ;;  %v4721_v11 = vor.u32 %v5504_v8, %v4720_v7 }
  0x5b   : > { %1259 = vmatpush.bf16.msrb.mxu3 %v4709_v21  ;;  %1437 = vmatpush.bf16.msrb.mxu1 %v4717_v28  ;;  %v5452_v21 = vld [vmem:[%s7699_s1 + $0x7c] sm:$0xf0]  ;;  %v4517_v28 = vor.u32 %v5448_v25, %v4514_v26 }
  0x5c   : > { %1348 = vmatpush.bf16.msrb.mxu0 %v4713_v29  ;;  %v4505_v23 = vor.u32 %v5452_v21, %v4504_v20  ;;  %v4512_v29 = vld [vmem:[%s7699_s1 + $0x60] sm:$0xf] }
  0x5d   : > { %v4513_v31 = vor.u32 %v5453_v30, %v4512_v29  ;;  %v4728_v29 = vld [vmem:[%s7699_s1 + $0x200] sm:$0xf] }
  0x5e   : > { %1171 = vmatpush.bf16.msrb.mxu2 %v4665_v32  ;;  %v6226_v32 = vld [vmem:[%s5928_s8 + $0x28] sm:$0xff] }
  0x5f   : > { %1260 = vmatpush.bf16.msrb.mxu3 %v4669_v33  ;;  %1438 = vmatpush.bf16.msrb.mxu1 %v4677_v37  ;;  %v5433_v33 = vld [vmem:[%s5928_s8 + $0x68] sm:$0xff]  ;;  %v4465_v37 = vor.u32 %v5442_v35, %v4464_v34 }
  0x60   : > { %1349 = vmatpush.bf16.msrb.mxu0 %v4673_v38  ;;  %v4466_v38 = vld [vmem:[%s7699_s1 + $0x30] sm:$0xf0]  ;;  %v5505_v34 = vld [vmem:[%s7699_s1 + $0x224] sm:$0xf0] }
  0x61   : > { %v4469_v42 = vor.u32 %v5437_v36, %v4466_v38 }
  0x62   : > { %1172 = vmatpush.bf16.msrb.mxu2 %v4625_v44  ;;  %v4472_v44 = vld [vmem:[%s7699_s1 + $0x10] sm:$0xf] }
  0x63   : > { %1261 = vmatpush.bf16.msrb.mxu3 %v4629_v48  ;;  %1439 = vmatpush.bf16.msrb.mxu1 %v4637_v49  ;;  %v4473_v46 = vor.u32 %v5443_v45, %v4472_v44  ;;  %v5434_v48 = vld [vmem:[%s5928_s8 + $0x70] sm:$0xff]  ;;  %v4760_v49 = vld [vmem:[%s7699_s1 + $0x248] sm:$0xf] }
  0x64   : > { %1350 = vmatpush.bf16.msrb.mxu0 %v4633_v52  ;;  %v4761_v52 = vor.u32 %v5514_v50, %v4760_v49 }
  0x65   : > { %1004 = vmatmul.bf16.gmra.mxu0 %v6106_v39  ;;  %1044 = vmatmul.bf16.gmra.mxu2 %v5429_v40 }
  0x66   : > { %1093 = vmatmul.bf16.gmra.mxu1 %v6106_v39  ;;  %1173 = vmatpush.bf16.msrb.mxu2 %v4585_v58  ;;  %v4768_v58 = vld [vmem:[%s7699_s1 + $0x250] sm:$0xf] }
  0x67   : > { %1262 = vmatpush.bf16.msrb.mxu3 %v4589_v62  ;;  %1440 = vmatpush.bf16.msrb.mxu1 %v4597_v63  ;;  %v5515_v62 = vld [vmem:[%s7699_s1 + $0x274] sm:$0xf0] }
  0x68   : > { %1133 = vmatmul.bf16.gmra.mxu3 %v5429_v40  ;;  %1351 = vmatpush.bf16.msrb.mxu0 %v4593_v2  ;;  %v5438_v40 = vld [vmem:[%s7699_s1 + $0x14] sm:$0xf]  ;;  %v4769_v63 = vor.u32 %v5515_v62, %v4768_v58 }
  0x69   : > { %v4477_v43 = vor.u32 %v5438_v40, %v4474_v41 }
  0x6a   : > { %1174 = vmatpush.bf16.msrb.mxu2 %v4545_v9  ;;  %v5499_v9 = vld [vmem:[%s7699_s1 + $0x1fc] sm:$0xf] }
  0x6b   : > { %1263 = vmatpush.bf16.msrb.mxu3 %v4549_v13  ;;  %1441 = vmatpush.bf16.msrb.mxu1 %v4557_v14 }
  0x6c   : > { %1352 = vmatpush.bf16.msrb.mxu0 %v4553_v17 }
  0x6e   : > { %1175 = vmatpush.bf16.msrb.mxu2 %v4505_v23 }
  0x6f   : > { %1264 = vmatpush.bf16.msrb.mxu3 %v4509_v27  ;;  %1442 = vmatpush.bf16.msrb.mxu1 %v4517_v28  ;;  %v5500_v27 = vld [vmem:[%s7699_s1 + $0x204] sm:$0xf]  ;;  %v4730_v28 = vld [vmem:[%s7699_s1 + $0x228] sm:$0xf0] }
  0x70   : > { %1353 = vmatpush.bf16.msrb.mxu0 %v4513_v31 }
  0x72   : > { %1176 = vmatpush.bf16.msrb.mxu2 %v4465_v37  ;;  %v4729_v37 = vor.u32 %v5505_v34, %v4728_v29 }
  0x73   : > { %1265 = vmatpush.bf16.msrb.mxu3 %v4469_v42  ;;  %1443 = vmatpush.bf16.msrb.mxu1 %v4477_v43 }
  0x74   : > { %1354 = vmatpush.bf16.msrb.mxu0 %v4473_v46 }
  0x75   : > { %1009 = vmatmul.bf16.gmra.mxu0 %v6136_v53  ;;  %1049 = vmatmul.bf16.gmra.mxu2 %v5430_v54 }
  0x76   : > { %1098 = vmatmul.bf16.gmra.mxu1 %v6136_v53  ;;  %1525 = vmatpush.bf16.msra.mxu2 %v4761_v52 }
  0x77   : > { %1792 = vmatpush.bf16.msra.mxu1 %v4773_v61 }
  0x78   : > { %1138 = vmatmul.bf16.gmra.mxu3 %v5430_v54  ;;  %v4762_v54 = vld [vmem:[%s7699_s1 + $0x270] sm:$0xf0]  ;;  %1703 = vmatpush.bf16.msra.mxu0 %v4769_v63 }
  0x79   : > { %v4765_v55 = vor.u32 %v5509_v51, %v4762_v54 }
  0x7a   : > { %1526 = vmatpush.bf16.msra.mxu2 %v4721_v11 }
  0x7b   : > { %1614 = vmatpush.bf16.msra.mxu3 %v4765_v55 }
  0x7c   : > { %1704 = vmatpush.bf16.msra.mxu0 %v4729_v37 }
  0x85   : > { %1014 = vmatmul.bf16.gmra.mxu0 %v6166_v3  ;;  %1054 = vmatmul.bf16.gmra.mxu2 %v5431_v4 }
  0x86   : > { %1103 = vmatmul.bf16.gmra.mxu1 %v6166_v3 }
  0x88   : > { %1143 = vmatmul.bf16.gmra.mxu3 %v5431_v4 }
  0x95   : > { %1019 = vmatmul.bf16.gmra.mxu0 %v6196_v18  ;;  %1059 = vmatmul.bf16.gmra.mxu2 %v5432_v19 }
  0x96   : > { %1108 = vmatmul.bf16.gmra.mxu1 %v6196_v18 }
  0x98   : > { %1148 = vmatmul.bf16.gmra.mxu3 %v5432_v19 }
  0xa5   : > { %1024 = vmatmul.bf16.gmra.mxu0 %v6226_v32  ;;  %1064 = vmatmul.bf16.gmra.mxu2 %v5433_v33 }
  0xa6   : > { %1113 = vmatmul.bf16.gmra.mxu1 %v6226_v32 }
  0xa8   : > { %1153 = vmatmul.bf16.gmra.mxu3 %v5433_v33  ;;  %v4733_v33 = vor.u32 %v5500_v27, %v4730_v28  ;;  %v5489_v27 = vld [vmem:[%s7699_s1 + $0x1ac] sm:$0xf] }
  0xaa   : > { %1793 = vmatpush.bf16.msra.mxu1 %v4733_v33 }
  0xb5   : > { %1029 = vmatmul.bf16.gmra.mxu0 %v6256_v47  ;;  %1069 = vmatmul.bf16.gmra.mxu2 %v5434_v48 }
  0xb6   : > { %1118 = vmatmul.bf16.gmra.mxu1 %v6256_v47 }
  0xb8   : > { %1158 = vmatmul.bf16.gmra.mxu3 %v5434_v48 }
  0xc5   : > { %1034 = vmatmul.bf16.gmra.mxu0 %v6283_v59  ;;  %1074 = vmatmul.bf16.gmra.mxu2 %v5435_v60 }
  0xc6   : > { %1123 = vmatmul.bf16.gmra.mxu1 %v6283_v59 }
  0xc8   : > { %1163 = vmatmul.bf16.gmra.mxu3 %v5435_v60 }
  0xd2   : > { %v1000_v0 = vpop.f32.mrf.mxu0 }
  0xd3   : > { %v1089_v1 = vpop.f32.mrf.mxu1  ;;  %v1881_v2 = vmax.f32 %v1000_v0, 0.0 }
  0xd4   : > { %v1882_v4 = vmax.f32 %v1089_v1, 0.0 }
  0xd5   : > { %1177 = vmatmul.bf16.vlgmr.msrb.gmra.mxu2 %v6040_v5  ;;  %1355 = vmatmul.bf16.vlgmr.msrb.gmra.mxu0 %v6040_v5  ;;  %v2201_v14 = vmin.f32 %v1881_v2, 6.0 }
  0xd6   : > { %1444 = vmatmul.bf16.vlgmr.msrb.gmra.mxu1 %v6040_v5  ;;  %v2202_v17 = vmin.f32 %v1882_v4, 6.0 }
  0xd8   : > { %1266 = vmatmul.bf16.vlgmr.msrb.gmra.mxu3 %v6040_v5  ;;  %v1040_v6 = vpop.f32.mrf.mxu2  ;;  %v4722_v5 = vld [vmem:[%s7699_s1 + $0x220] sm:$0xf0] }
  0xd9   : > { %v4725_v13 = vor.u32 %v5499_v9, %v4722_v5  ;;  %v2041_v22 = vmax.f32 %v1040_v6, 0.0 }
  0xda   : > { %v1002_v12 = vpop.f32.mrf.mxu0 }
  0xdb   : > { %v1129_v10 = vpop.f32.mrf.mxu3  ;;  %v1891_v15 = vmax.f32 %v1002_v12, 0.0  ;;  %v1091_v16 = vpop.f32.mrf.mxu1  ;;  %1615 = vmatpush.bf16.msra.mxu3 %v4725_v13  ;;  %v2361_v38 = vmin.f32 %v2041_v22, 6.0 }
  0xdc   : > { %v1892_v19 = vmax.f32 %v1091_v16, 0.0  ;;  %v2042_v23 = vmax.f32 %v1129_v10, 0.0 }
  0xdd   : > { %v2211_v20 = vmin.f32 %v1891_v15, 6.0 }
  0xde   : > { %v2212_v21 = vmin.f32 %v1892_v19, 6.0  ;;  %v2362_v43 = vmin.f32 %v2042_v23, 6.0 }
  0xdf   : > { %v2524_v24 = vadd.f32 %v2211_v20, %v2201_v14 }
  0xe0   : > { %v2545_v25 = vadd.f32 %v2212_v21, %v2202_v17  ;;  %v1042_v26 = vpop.f32.mrf.mxu2 }
  0xe1   : > { %v2051_v30 = vmax.f32 %v1042_v26, 0.0  ;;  %v5494_v26 = vld [vmem:[%s7699_s1 + $0x1cc] sm:$0xf0] }
  0xe2   : > { %v1005_v36 = vpop.f32.mrf.mxu0 }
  0xe3   : > { %v1131_v31 = vpop.f32.mrf.mxu3  ;;  %v2371_v40 = vmin.f32 %v2051_v30, 6.0  ;;  %v1901_v41 = vmax.f32 %v1005_v36, 0.0  ;;  %v1094_v42 = vpop.f32.mrf.mxu1 }
  0xe4   : > { %v2052_v35 = vmax.f32 %v1131_v31, 0.0  ;;  %v1902_v45 = vmax.f32 %v1094_v42, 0.0 }
  0xe5   : > { %v2734_v46 = vadd.f32 %v2371_v40, %v2361_v38  ;;  %v2221_v48 = vmin.f32 %v1901_v41, 6.0  ;;  %1182 = vmatmul.bf16.gmra.mxu2 %v6106_v39  ;;  %1360 = vmatmul.bf16.gmra.mxu0 %v6106_v39 }
  0xe6   : > { %v2372_v44 = vmin.f32 %v2052_v35, 6.0  ;;  %v2222_v50 = vmin.f32 %v1902_v45, 6.0  ;;  %1449 = vmatmul.bf16.gmra.mxu1 %v6106_v39 }
  0xe7   : > { %v2525_v51 = vadd.f32 %v2524_v24, %v2221_v48 }
  0xe8   : > { %v2755_v49 = vadd.f32 %v2372_v44, %v2362_v43  ;;  %1271 = vmatmul.bf16.gmra.mxu3 %v6106_v39  ;;  %v2546_v52 = vadd.f32 %v2545_v25, %v2222_v50  ;;  %v1045_v54 = vpop.f32.mrf.mxu2  ;;  %v4680_v25 = vld [vmem:[%s7699_s1 + $0x1a8] sm:$0xf]  ;;  %v4690_v50 = vld [vmem:[%s7699_s1 + $0x1d8] sm:$0xf0] }
  0xe9   : > { %v2061_v55 = vmax.f32 %v1045_v54, 0.0  ;;  %v4681_v30 = vor.u32 %v5494_v26, %v4680_v25 }
  0xea   : > { %v1007_v58 = vpop.f32.mrf.mxu0 }
  0xeb   : > { %v1134_v56 = vpop.f32.mrf.mxu3  ;;  %v2381_v60 = vmin.f32 %v2061_v55, 6.0  ;;  %v1911_v61 = vmax.f32 %v1007_v58, 0.0  ;;  %v1096_v62 = vpop.f32.mrf.mxu1  ;;  %1527 = vmatpush.bf16.msra.mxu2 %v4681_v30 }
  0xec   : > { %v2062_v57 = vmax.f32 %v1134_v56, 0.0  ;;  %v1912_v0 = vmax.f32 %v1096_v62, 0.0  ;;  %v5495_v56 = vld [vmem:[%s7699_s1 + $0x1d4] sm:$0xf0] }
  0xed   : > { %v2735_v1 = vadd.f32 %v2734_v46, %v2381_v60  ;;  %v2231_v2 = vmin.f32 %v1911_v61, 6.0 }
  0xee   : > { %v2382_v63 = vmin.f32 %v2062_v57, 6.0  ;;  %v2232_v6 = vmin.f32 %v1912_v0, 6.0 }
  0xef   : > { %v2526_v7 = vadd.f32 %v2525_v51, %v2231_v2  ;;  %v4688_v51 = vld [vmem:[%s7699_s1 + $0x1b0] sm:$0xf] }
  0xf0   : > { %v2756_v4 = vadd.f32 %v2755_v49, %v2382_v63  ;;  %v2547_v8 = vadd.f32 %v2546_v52, %v2232_v6  ;;  %v1047_v9 = vpop.f32.mrf.mxu2  ;;  %v5490_v49 = vld [vmem:[%s7699_s1 + $0x1b4] sm:$0xf]  ;;  %v4689_v60 = vor.u32 %v5495_v56, %v4688_v51 }
  0xf1   : > { %v2071_v39 = vmax.f32 %v1047_v9, 0.0  ;;  %v4693_v55 = vor.u32 %v5490_v49, %v4690_v50 }
  0xf2   : > { %v1010_v5 = vpop.f32.mrf.mxu0  ;;  %1705 = vmatpush.bf16.msra.mxu0 %v4689_v60 }
  0xf3   : > { %v1136_v10 = vpop.f32.mrf.mxu3  ;;  %v2391_v12 = vmin.f32 %v2071_v39, 6.0  ;;  %v1921_v13 = vmax.f32 %v1010_v5, 0.0  ;;  %v1099_v14 = vpop.f32.mrf.mxu1  ;;  %1794 = vmatpush.bf16.msra.mxu1 %v4693_v55 }
  0xf4   : > { %v2072_v11 = vmax.f32 %v1136_v10, 0.0  ;;  %v1922_v16 = vmax.f32 %v1099_v14, 0.0 }
  0xf5   : > { %v2736_v17 = vadd.f32 %v2735_v1, %v2391_v12  ;;  %v2241_v19 = vmin.f32 %v1921_v13, 6.0  ;;  %1187 = vmatmul.bf16.gmra.mxu2 %v6136_v53  ;;  %1365 = vmatmul.bf16.gmra.mxu0 %v6136_v53 }
  0xf6   : > { %v2392_v15 = vmin.f32 %v2072_v11, 6.0  ;;  %v2242_v21 = vmin.f32 %v1922_v16, 6.0  ;;  %1454 = vmatmul.bf16.gmra.mxu1 %v6136_v53 }
  0xf7   : > { %v2527_v22 = vadd.f32 %v2526_v7, %v2241_v19 }
  0xf8   : > { %v2757_v20 = vadd.f32 %v2756_v4, %v2392_v15  ;;  %1276 = vmatmul.bf16.gmra.mxu3 %v6136_v53  ;;  %v2548_v23 = vadd.f32 %v2547_v8, %v2242_v21  ;;  %v1050_v24 = vpop.f32.mrf.mxu2  ;;  %v4682_v53 = vld [vmem:[%s7699_s1 + $0x1d0] sm:$0xf0] }
  0xf9   : > { %v2081_v28 = vmax.f32 %v1050_v24, 0.0  ;;  %v4685_v34 = vor.u32 %v5489_v27, %v4682_v53 }
  0xfa   : > { %v1012_v33 = vpop.f32.mrf.mxu0 }
  0xfb   : > { %v1139_v29 = vpop.f32.mrf.mxu3  ;;  %v2401_v35 = vmin.f32 %v2081_v28, 6.0  ;;  %v1931_v36 = vmax.f32 %v1012_v33, 0.0  ;;  %v1101_v37 = vpop.f32.mrf.mxu1  ;;  %1616 = vmatpush.bf16.msra.mxu3 %v4685_v34 }
  0xfc   : > { %v2082_v31 = vmax.f32 %v1139_v29, 0.0  ;;  %v1932_v40 = vmax.f32 %v1101_v37, 0.0 }
  0xfd   : > { %v2737_v41 = vadd.f32 %v2736_v17, %v2401_v35  ;;  %v2251_v42 = vmin.f32 %v1931_v36, 6.0 }
  0xfe   : > { %v2402_v38 = vmin.f32 %v2082_v31, 6.0  ;;  %v2252_v44 = vmin.f32 %v1932_v40, 6.0 }
  0xff   : > { %v2528_v45 = vadd.f32 %v2527_v22, %v2251_v42  ;;  %v4640_v42 = vld [vmem:[%s7699_s1 + $0x158] sm:$0xf] }
 0x100   : > { %v2758_v43 = vadd.f32 %v2757_v20, %v2402_v38  ;;  %v2549_v46 = vadd.f32 %v2548_v23, %v2252_v44  ;;  %v1052_v48 = vpop.f32.mrf.mxu2  ;;  %v5479_v44 = vld [vmem:[%s7699_s1 + $0x15c] sm:$0xf] }
 0x101   : > { %v2091_v52 = vmax.f32 %v1052_v48, 0.0 }
 0x102   : > { %v1015_v58 = vpop.f32.mrf.mxu0 }
 0x103   : > { %v1141_v54 = vpop.f32.mrf.mxu3  ;;  %v2411_v61 = vmin.f32 %v2091_v52, 6.0  ;;  %v1941_v62 = vmax.f32 %v1015_v58, 0.0  ;;  %v1104_v63 = vpop.f32.mrf.mxu1 }
 0x104   : > { %v2092_v57 = vmax.f32 %v1141_v54, 0.0  ;;  %v1942_v1 = vmax.f32 %v1104_v63, 0.0 }
 0x105   : > { %v2738_v2 = vadd.f32 %v2737_v41, %v2411_v61  ;;  %v2261_v4 = vmin.f32 %v1941_v62, 6.0  ;;  %1192 = vmatmul.bf16.gmra.mxu2 %v6166_v3  ;;  %1370 = vmatmul.bf16.gmra.mxu0 %v6166_v3 }
 0x106   : > { %v2412_v0 = vmin.f32 %v2092_v57, 6.0  ;;  %v2262_v7 = vmin.f32 %v1942_v1, 6.0  ;;  %1459 = vmatmul.bf16.gmra.mxu1 %v6166_v3 }
 0x107   : > { %v2529_v8 = vadd.f32 %v2528_v45, %v2261_v4  ;;  %v4650_v4 = vld [vmem:[%s7699_s1 + $0x188] sm:$0xf0] }
 0x108   : > { %v2759_v6 = vadd.f32 %v2758_v43, %v2412_v0  ;;  %1281 = vmatmul.bf16.gmra.mxu3 %v6166_v3  ;;  %v2550_v9 = vadd.f32 %v2549_v46, %v2262_v7  ;;  %v1055_v39 = vpop.f32.mrf.mxu2  ;;  %v5484_v43 = vld [vmem:[%s7699_s1 + $0x17c] sm:$0xf0] }
 0x109   : > { %v2101_v10 = vmax.f32 %v1055_v39, 0.0  ;;  %v4641_v48 = vor.u32 %v5484_v43, %v4640_v42  ;;  %v5485_v39 = vld [vmem:[%s7699_s1 + $0x184] sm:$0xf0] }
 0x10a   : > { %v1017_v12 = vpop.f32.mrf.mxu0 }
 0x10b   : > { %v1144_v11 = vpop.f32.mrf.mxu3  ;;  %v2421_v13 = vmin.f32 %v2101_v10, 6.0  ;;  %v1951_v14 = vmax.f32 %v1017_v12, 0.0  ;;  %v1106_v15 = vpop.f32.mrf.mxu1  ;;  %1528 = vmatpush.bf16.msra.mxu2 %v4641_v48 }
 0x10c   : > { %v2102_v5 = vmax.f32 %v1144_v11, 0.0  ;;  %v1952_v17 = vmax.f32 %v1106_v15, 0.0 }
 0x10d   : > { %v2739_v19 = vadd.f32 %v2738_v2, %v2421_v13  ;;  %v2271_v20 = vmin.f32 %v1951_v14, 6.0  ;;  %v5480_v2 = vld [vmem:[%s7699_s1 + $0x164] sm:$0xf] }
 0x10e   : > { %v2422_v16 = vmin.f32 %v2102_v5, 6.0  ;;  %v2272_v22 = vmin.f32 %v1952_v17, 6.0 }
 0x10f   : > { %v2530_v23 = vadd.f32 %v2529_v8, %v2271_v20 }
 0x110   : > { %v2760_v21 = vadd.f32 %v2759_v6, %v2422_v16  ;;  %v2551_v24 = vadd.f32 %v2550_v9, %v2272_v22  ;;  %v1057_v25 = vpop.f32.mrf.mxu2  ;;  %v4648_v6 = vld [vmem:[%s7699_s1 + $0x160] sm:$0xf]  ;;  %v4653_v9 = vor.u32 %v5480_v2, %v4650_v4 }
 0x111   : > { %v2111_v3 = vmax.f32 %v1057_v25, 0.0  ;;  %v4649_v5 = vor.u32 %v5485_v39, %v4648_v6 }
 0x112   : > { %v1020_v28 = vpop.f32.mrf.mxu0  ;;  %1795 = vmatpush.bf16.msra.mxu1 %v4653_v9 }
 0x113   : > { %v1146_v26 = vpop.f32.mrf.mxu3  ;;  %v2431_v29 = vmin.f32 %v2111_v3, 6.0  ;;  %v1961_v30 = vmax.f32 %v1020_v28, 0.0  ;;  %v1109_v53 = vpop.f32.mrf.mxu1  ;;  %1706 = vmatpush.bf16.msra.mxu0 %v4649_v5 }
 0x114   : > { %v2112_v27 = vmax.f32 %v1146_v26, 0.0  ;;  %v1962_v33 = vmax.f32 %v1109_v53, 0.0 }
 0x115   : > { %v2740_v34 = vadd.f32 %v2739_v19, %v2431_v29  ;;  %v2281_v35 = vmin.f32 %v1961_v30, 6.0  ;;  %1197 = vmatmul.bf16.gmra.mxu2 %v6196_v18  ;;  %1375 = vmatmul.bf16.gmra.mxu0 %v6196_v18 }
 0x116   : > { %v2432_v31 = vmin.f32 %v2112_v27, 6.0  ;;  %v2282_v37 = vmin.f32 %v1962_v33, 6.0  ;;  %1464 = vmatmul.bf16.gmra.mxu1 %v6196_v18 }
 0x117   : > { %v2531_v38 = vadd.f32 %v2530_v23, %v2281_v35 }
 0x118   : > { %v2761_v36 = vadd.f32 %v2760_v21, %v2432_v31  ;;  %1286 = vmatmul.bf16.gmra.mxu3 %v6196_v18  ;;  %v2552_v40 = vadd.f32 %v2551_v24, %v2282_v37  ;;  %v1060_v41 = vpop.f32.mrf.mxu2  ;;  %v4642_v18 = vld [vmem:[%s7699_s1 + $0x180] sm:$0xf0] }
 0x119   : > { %v2121_v45 = vmax.f32 %v1060_v41, 0.0  ;;  %v4645_v51 = vor.u32 %v5479_v44, %v4642_v18 }
 0x11a   : > { %v1022_v50 = vpop.f32.mrf.mxu0 }
 0x11b   : > { %v1149_v46 = vpop.f32.mrf.mxu3  ;;  %v2441_v52 = vmin.f32 %v2121_v45, 6.0  ;;  %v1971_v54 = vmax.f32 %v1022_v50, 0.0  ;;  %v1111_v55 = vpop.f32.mrf.mxu1  ;;  %1617 = vmatpush.bf16.msra.mxu3 %v4645_v51 }
 0x11c   : > { %v2122_v49 = vmax.f32 %v1149_v46, 0.0  ;;  %v1972_v57 = vmax.f32 %v1111_v55, 0.0 }
 0x11d   : > { %v2741_v58 = vadd.f32 %v2740_v34, %v2441_v52  ;;  %v2291_v60 = vmin.f32 %v1971_v54, 6.0 }
 0x11e   : > { %v2442_v56 = vmin.f32 %v2122_v49, 6.0  ;;  %v2292_v62 = vmin.f32 %v1972_v57, 6.0 }
 0x11f   : > { %v2532_v63 = vadd.f32 %v2531_v38, %v2291_v60 }
 0x120   : > { %v2762_v61 = vadd.f32 %v2761_v36, %v2442_v56  ;;  %v2553_v0 = vadd.f32 %v2552_v40, %v2292_v62  ;;  %v1062_v1 = vpop.f32.mrf.mxu2 }
 0x121   : > { %v2131_v7 = vmax.f32 %v1062_v1, 0.0 }
 0x122   : > { %v1025_v11 = vpop.f32.mrf.mxu0 }
 0x123   : > { %v1151_v8 = vpop.f32.mrf.mxu3  ;;  %v2451_v12 = vmin.f32 %v2131_v7, 6.0  ;;  %v1981_v13 = vmax.f32 %v1025_v11, 0.0  ;;  %v1114_v14 = vpop.f32.mrf.mxu1 }
 0x124   : > { %v2132_v10 = vmax.f32 %v1151_v8, 0.0  ;;  %v1982_v16 = vmax.f32 %v1114_v14, 0.0 }
 0x125   : > { %v2742_v17 = vadd.f32 %v2741_v58, %v2451_v12  ;;  %v2301_v19 = vmin.f32 %v1981_v13, 6.0  ;;  %1202 = vmatmul.bf16.gmra.mxu2 %v6226_v32  ;;  %1380 = vmatmul.bf16.gmra.mxu0 %v6226_v32 }
 0x126   : > { %v2452_v15 = vmin.f32 %v2132_v10, 6.0  ;;  %v2302_v21 = vmin.f32 %v1982_v16, 6.0  ;;  %1469 = vmatmul.bf16.gmra.mxu1 %v6226_v32 }
 0x127   : > { %v2533_v22 = vadd.f32 %v2532_v63, %v2301_v19 }
 0x128   : > { %v2763_v20 = vadd.f32 %v2762_v61, %v2452_v15  ;;  %1291 = vmatmul.bf16.gmra.mxu3 %v6226_v32  ;;  %v2554_v23 = vadd.f32 %v2553_v0, %v2302_v21  ;;  %v1065_v24 = vpop.f32.mrf.mxu2 }
 0x129   : > { %v2141_v25 = vmax.f32 %v1065_v24, 0.0  ;;  %v5474_v24 = vld [vmem:[%s7699_s1 + $0x12c] sm:$0xf0] }
 0x12a   : > { %v1027_v27 = vpop.f32.mrf.mxu0 }
 0x12b   : > { %v1154_v3 = vpop.f32.mrf.mxu3  ;;  %v2461_v28 = vmin.f32 %v2141_v25, 6.0  ;;  %v1991_v29 = vmax.f32 %v1027_v27, 0.0  ;;  %v1116_v30 = vpop.f32.mrf.mxu1  ;;  %v4602_v27 = vld [vmem:[%s7699_s1 + $0x130] sm:$0xf0] }
 0x12c   : > { %v2142_v26 = vmax.f32 %v1154_v3, 0.0  ;;  %v1992_v31 = vmax.f32 %v1116_v30, 0.0 }
 0x12d   : > { %v2743_v33 = vadd.f32 %v2742_v17, %v2461_v28  ;;  %v2311_v34 = vmin.f32 %v1991_v29, 6.0 }
 0x12e   : > { %v2462_v53 = vmin.f32 %v2142_v26, 6.0  ;;  %v2312_v36 = vmin.f32 %v1992_v31, 6.0  ;;  %v5469_v26 = vld [vmem:[%s7699_s1 + $0x10c] sm:$0xf]  ;;  %v4608_v31 = vld [vmem:[%s7699_s1 + $0x110] sm:$0xf] }
 0x12f   : > { %v2534_v37 = vadd.f32 %v2533_v22, %v2311_v34  ;;  %v4605_v30 = vor.u32 %v5469_v26, %v4602_v27 }
 0x130   : > { %v2764_v35 = vadd.f32 %v2763_v20, %v2462_v53  ;;  %v2555_v38 = vadd.f32 %v2554_v23, %v2312_v36  ;;  %v1067_v40 = vpop.f32.mrf.mxu2  ;;  %v4600_v23 = vld [vmem:[%s7699_s1 + $0x108] sm:$0xf]  ;;  %v4610_v53 = vld [vmem:[%s7699_s1 + $0x138] sm:$0xf0] }
 0x131   : > { %v2151_v32 = vmax.f32 %v1067_v40, 0.0  ;;  %v4601_v3 = vor.u32 %v5474_v24, %v4600_v23  ;;  %1618 = vmatpush.bf16.msra.mxu3 %v4605_v30 }
 0x132   : > { %v1030_v43 = vpop.f32.mrf.mxu0 }
 0x133   : > { %v1156_v41 = vpop.f32.mrf.mxu3  ;;  %v2471_v44 = vmin.f32 %v2151_v32, 6.0  ;;  %v2001_v45 = vmax.f32 %v1030_v43, 0.0  ;;  %v1119_v46 = vpop.f32.mrf.mxu1  ;;  %1529 = vmatpush.bf16.msra.mxu2 %v4601_v3 }
 0x134   : > { %v2152_v42 = vmax.f32 %v1156_v41, 0.0  ;;  %v2002_v18 = vmax.f32 %v1119_v46, 0.0 }
 0x135   : > { %v2744_v49 = vadd.f32 %v2743_v33, %v2471_v44  ;;  %v2321_v50 = vmin.f32 %v2001_v45, 6.0  ;;  %1207 = vmatmul.bf16.gmra.mxu2 %v6256_v47  ;;  %1385 = vmatmul.bf16.gmra.mxu0 %v6256_v47  ;;  %v5475_v33 = vld [vmem:[%s7699_s1 + $0x134] sm:$0xf0] }
 0x136   : > { %v2472_v48 = vmin.f32 %v2152_v42, 6.0  ;;  %v2322_v52 = vmin.f32 %v2002_v18, 6.0  ;;  %1474 = vmatmul.bf16.gmra.mxu1 %v6256_v47 }
 0x137   : > { %v2535_v54 = vadd.f32 %v2534_v37, %v2321_v50  ;;  %v4609_v37 = vor.u32 %v5475_v33, %v4608_v31 }
 0x138   : > { %v2765_v51 = vadd.f32 %v2764_v35, %v2472_v48  ;;  %1296 = vmatmul.bf16.gmra.mxu3 %v6256_v47  ;;  %v2556_v55 = vadd.f32 %v2555_v38, %v2322_v52  ;;  %v1070_v56 = vpop.f32.mrf.mxu2 }
 0x139   : > { %v2161_v57 = vmax.f32 %v1070_v56, 0.0  ;;  %1707 = vmatpush.bf16.msra.mxu0 %v4609_v37 }
 0x13a   : > { %v1032_v61 = vpop.f32.mrf.mxu0 }
 0x13b   : > { %v1159_v58 = vpop.f32.mrf.mxu3  ;;  %v2481_v62 = vmin.f32 %v2161_v57, 6.0  ;;  %v2011_v63 = vmax.f32 %v1032_v61, 0.0  ;;  %v1121_v0 = vpop.f32.mrf.mxu1 }
 0x13c   : > { %v2162_v60 = vmax.f32 %v1159_v58, 0.0  ;;  %v2012_v2 = vmax.f32 %v1121_v0, 0.0 }
 0x13d   : > { %v2745_v4 = vadd.f32 %v2744_v49, %v2481_v62  ;;  %v2331_v6 = vmin.f32 %v2011_v63, 6.0 }
 0x13e   : > { %v2482_v1 = vmin.f32 %v2162_v60, 6.0  ;;  %v2332_v8 = vmin.f32 %v2012_v2, 6.0 }
 0x13f   : > { %v2536_v9 = vadd.f32 %v2535_v54, %v2331_v6 }
 0x140   : > { %v2766_v7 = vadd.f32 %v2765_v51, %v2482_v1  ;;  %v2557_v39 = vadd.f32 %v2556_v55, %v2332_v8  ;;  %v1072_v10 = vpop.f32.mrf.mxu2 }
 0x141   : > { %v2171_v47 = vmax.f32 %v1072_v10, 0.0 }
 0x142   : > { %v1035_v12 = vpop.f32.mrf.mxu0 }
 0x143   : > { %v1161_v11 = vpop.f32.mrf.mxu3  ;;  %v2491_v13 = vmin.f32 %v2171_v47, 6.0  ;;  %v2021_v14 = vmax.f32 %v1035_v12, 0.0  ;;  %v1124_v15 = vpop.f32.mrf.mxu1  ;;  %v4560_v12 = vld [vmem:[%s7699_s1 + $0xb8] sm:$0xf] }
 0x144   : > { %v2172_v5 = vmax.f32 %v1161_v11, 0.0  ;;  %v2022_v17 = vmax.f32 %v1124_v15, 0.0 }
 0x145   : > { %v2746_v19 = vadd.f32 %v2745_v4, %v2491_v13  ;;  %v2341_v20 = vmin.f32 %v2021_v14, 6.0  ;;  %1212 = vmatmul.bf16.gmra.mxu2 %v6283_v59  ;;  %1390 = vmatmul.bf16.gmra.mxu0 %v6283_v59  ;;  %v5740_v4 = vld [vmem:[%s5928_s8 + $0x40] sm:$0xff] }
 0x146   : > { %v2492_v16 = vmin.f32 %v2172_v5, 6.0  ;;  %v2342_v22 = vmin.f32 %v2022_v17, 6.0  ;;  %1479 = vmatmul.bf16.gmra.mxu1 %v6283_v59  ;;  %v5464_v13 = vld [vmem:[%s7699_s1 + $0xdc] sm:$0xf0]  ;;  %v5459_v17 = vld [vmem:[%s7699_s1 + $0xbc] sm:$0xf] }
 0x147   : > { %v2537_v25 = vadd.f32 %v2536_v9, %v2341_v20 }
 0x148   : > { %v2767_v21 = vadd.f32 %v2766_v7, %v2492_v16  ;;  %1301 = vmatmul.bf16.gmra.mxu3 %v6283_v59  ;;  %v5470_v59 = vld [vmem:[%s7699_s1 + $0x114] sm:$0xf]  ;;  %v2558_v28 = vadd.f32 %v2557_v39, %v2342_v22  ;;  %v1075_v29 = vpop.f32.mrf.mxu2  ;;  %v4561_v16 = vor.u32 %v5464_v13, %v4560_v12 }
 0x149   : > { %v2181_v34 = vmax.f32 %v1075_v29, 0.0  ;;  %v4613_v36 = vor.u32 %v5470_v59, %v4610_v53 }
 0x14a   : > { %v1037_v40 = vpop.f32.mrf.mxu0  ;;  %1530 = vmatpush.bf16.msra.mxu2 %v4561_v16 }
 0x14b   : > { %v1164_v35 = vpop.f32.mrf.mxu3  ;;  %v2501_v32 = vmin.f32 %v2181_v34, 6.0  ;;  %v2031_v41 = vmax.f32 %v1037_v40, 0.0  ;;  %v1126_v42 = vpop.f32.mrf.mxu1  ;;  %1796 = vmatpush.bf16.msra.mxu1 %v4613_v36 }
 0x14c   : > { %v2182_v38 = vmax.f32 %v1164_v35, 0.0  ;;  %v2032_v44 = vmax.f32 %v1126_v42, 0.0 }
 0x14d   : > { %v2747_v45 = vadd.f32 %v2746_v19, %v2501_v32  ;;  %v2351_v46 = vmin.f32 %v2031_v41, 6.0  ;;  %v4562_v19 = vld [vmem:[%s7699_s1 + $0xe0] sm:$0xf0] }
 0x14e   : > { %v2502_v43 = vmin.f32 %v2182_v38, 6.0  ;;  %v2352_v18 = vmin.f32 %v2032_v44, 6.0  ;;  %v4565_v24 = vor.u32 %v5459_v17, %v4562_v19 }
 0x14f   : > { %v2538_v49 = vadd.f32 %v2537_v25, %v2351_v46  ;;  %v4570_v46 = vld [vmem:[%s7699_s1 + $0xe8] sm:$0xf0] }
 0x150   : > { %v2768_v48 = vadd.f32 %v2767_v21, %v2502_v43  ;;  %v2559_v50 = vadd.f32 %v2558_v28, %v2352_v18  ;;  %v1077_v51 = vpop.f32.mrf.mxu2  ;;  %1619 = vmatpush.bf16.msra.mxu3 %v4565_v24 }
 0x151   : > { %v2539_v52 = vrot.slane %v2538_v49, 4  ;;  %v2191_v54 = vmax.f32 %v1077_v51, 0.0  ;;  %v5465_v51 = vld [vmem:[%s7699_s1 + $0xe4] sm:$0xf0] }
 0x152   : > { %v2560_v56 = vrot.slane %v2559_v50, 4  ;;  %v1356_v58 = vpop.f32.mrf.mxu0 }
 0x153   : > { %v1166_v55 = vpop.f32.mrf.mxu3  ;;  %v2540_v60 = vadd.f32 %v2539_v52, %v2538_v49  ;;  %v2511_v61 = vmin.f32 %v2191_v54, 6.0  ;;  %v1445_v62 = vpop.f32.mrf.mxu1  ;;  %v1885_v39 = vmax.f32 %v1356_v58, 0.0 }
 0x154   : > { %v2192_v57 = vmax.f32 %v1166_v55, 0.0  ;;  %v2561_v63 = vadd.f32 %v2560_v56, %v2559_v50  ;;  %v1886_v11 = vmax.f32 %v1445_v62, 0.0  ;;  %v4568_v50 = vld [vmem:[%s7699_s1 + $0xc0] sm:$0xf] }
 0x155   : > { %v2541_v1 = vrot.slane %v2540_v60, 2  ;;  %v2748_v2 = vadd.f32 %v2747_v45, %v2511_v61  ;;  %1217 = vmatmul.bf16.gmra.mxu2 %v5740_v4  ;;  %1395 = vmatmul.bf16.gmra.mxu0 %v5740_v4  ;;  %v2205_v3 = vmin.f32 %v1885_v39, 6.0  ;;  %v5460_v45 = vld [vmem:[%s7699_s1 + $0xc4] sm:$0xf]  ;;  %v4569_v56 = vor.u32 %v5465_v51, %v4568_v50  ;;  %v4522_v50 = vld [vmem:[%s7699_s1 + $0x90] sm:$0xf0] }
 0x156   : > { %v2512_v0 = vmin.f32 %v2192_v57, 6.0  ;;  %v2562_v6 = vrot.slane %v2561_v63, 2  ;;  %1484 = vmatmul.bf16.gmra.mxu1 %v5740_v4  ;;  %v2206_v29 = vmin.f32 %v1886_v11, 6.0  ;;  %v4573_v49 = vor.u32 %v5460_v45, %v4570_v46  ;;  %v5454_v45 = vld [vmem:[%s7699_s1 + $0x8c] sm:$0xf0] }
 0x157   : > { %v2542_v8 = vadd.f32 %v2541_v1, %v2540_v60  ;;  %v2749_v9 = vrot.slane %v2748_v2, 4  ;;  %1708 = vmatpush.bf16.msra.mxu0 %v4569_v56  ;;  %v5449_v46 = vld [vmem:[%s7699_s1 + $0x6c] sm:$0xf] }
 0x158   : > { %v2769_v7 = vadd.f32 %v2768_v48, %v2512_v0  ;;  %1306 = vmatmul.bf16.gmra.mxu3 %v5740_v4  ;;  %v2563_v10 = vadd.f32 %v2562_v6, %v2561_v63  ;;  %v1178_v5 = vpop.f32.mrf.mxu2  ;;  %1797 = vmatpush.bf16.msra.mxu1 %v4573_v49 }
 0x159   : > { %v2750_v14 = vadd.f32 %v2749_v9, %v2748_v2  ;;  %v2543_v20 = vrot.slane %v2542_v8, 1  ;;  %v1883_v37 = vmax.f32 %v1178_v5, 0.0 }
 0x15a   : > { %v2770_v47 = vrot.slane %v2769_v7, 4  ;;  %v2564_v21 = vrot.slane %v2563_v10, 1  ;;  %v1358_v23 = vpop.f32.mrf.mxu0 }
 0x15b   : > { %v1267_v15 = vpop.f32.mrf.mxu3  ;;  %v2751_v25 = vrot.slane %v2750_v14, 2  ;;  %v1895_v26 = vmax.f32 %v1358_v23, 0.0  ;;  %v1447_v27 = vpop.f32.mrf.mxu1  ;;  %v2544_v33 = vadd.f32 %v2543_v20, %v2542_v8  ;;  %v2203_v57 = vmin.f32 %v1883_v37, 6.0  ;;  %v5742_v37 = vld [vmem:[%s5928_s8 + $0x50] sm:$0xff] }
 0x15c   : > { %v2771_v22 = vadd.f32 %v2770_v47, %v2769_v7  ;;  %v2565_v59 = vadd.f32 %v2564_v21, %v2563_v10  ;;  %v1896_v30 = vmax.f32 %v1447_v27, 0.0  ;;  %v1884_v38 = vmax.f32 %v1267_v15, 0.0  ;;  %v5741_v7 = vld [vmem:[%s5928_s8 + $0x48] sm:$0xff] }
 0x15d   : > { %v2752_v53 = vadd.f32 %v2751_v25, %v2750_v14  ;;  %v2215_v31 = vmin.f32 %v1895_v26, 6.0 }
 0x15e   : > { %v2772_v28 = vrot.slane %v2771_v22, 2  ;;  %v2964_v34 = vrot.slane %v2565_v59, 6  ;;  %v2216_v36 = vmin.f32 %v1896_v30, 6.0  ;;  %v2204_v58 = vmin.f32 %v1884_v38, 6.0 }
 0x15f   : > { %v2608_v40 = vadd.f32 %v2215_v31, %v2205_v3  ;;  %v2753_v41 = vrot.slane %v2752_v53, 1 }
 0x160   : > { %v2773_v35 = vadd.f32 %v2772_v28, %v2771_v22  ;;  %v6433_v32 = vsel %vm2978_vm0, %v2544_v33, %v2964_v34  ;;  %v2629_v43 = vadd.f32 %v2216_v36, %v2206_v29  ;;  %v1180_v44 = vpop.f32.mrf.mxu2 }
 0x161   : > { %v1893_v48 = vmax.f32 %v1180_v44, 0.0  ;;  %v2754_v63 = vadd.f32 %v2753_v41, %v2752_v53  ;;  %v4520_v44 = vld [vmem:[%s7699_s1 + $0x68] sm:$0xf] }
 0x162   : > { %v2774_v42 = vrot.slane %v2773_v35, 1  ;;  %v1361_v55 = vpop.f32.mrf.mxu0  ;;  %v4521_v49 = vor.u32 %v5454_v45, %v4520_v44 }
 0x163   : > { %v1269_v18 = vpop.f32.mrf.mxu3  ;;  %v2213_v60 = vmin.f32 %v1893_v48, 6.0  ;;  %v1905_v61 = vmax.f32 %v1361_v55, 0.0  ;;  %v1450_v62 = vpop.f32.mrf.mxu1 }
 0x164   : > { %v2775_v52 = vadd.f32 %v2774_v42, %v2773_v35  ;;  %v1894_v54 = vmax.f32 %v1269_v18, 0.0  ;;  %v1906_v2 = vmax.f32 %v1450_v62, 0.0  ;;  %1531 = vmatpush.bf16.msra.mxu2 %v4521_v49 }
 0x165   : > { %v2566_v4 = vadd.f32 %v2213_v60, %v2203_v57  ;;  %v2225_v6 = vmin.f32 %v1905_v61, 6.0  ;;  %1222 = vmatmul.bf16.gmra.mxu2 %v5741_v7  ;;  %1400 = vmatmul.bf16.gmra.mxu0 %v5741_v7 }
 0x166   : > { %v2971_v0 = vrot.slane %v2775_v52, 6  ;;  %v2214_v1 = vmin.f32 %v1894_v54, 6.0  ;;  %v2226_v39 = vmin.f32 %v1906_v2, 6.0  ;;  %1489 = vmatmul.bf16.gmra.mxu1 %v5741_v7  ;;  %v4525_v54 = vor.u32 %v5449_v46, %v4522_v50 }
 0x167   : > { %v2609_v10 = vadd.f32 %v2608_v40, %v2225_v6  ;;  %v5450_v6 = vld [vmem:[%s7699_s1 + $0x74] sm:$0xf] }
 0x168   : > { %v6449_v8 = vsel %vm2978_vm0, %v2754_v63, %v2971_v0  ;;  %v2587_v9 = vadd.f32 %v2214_v1, %v2204_v58  ;;  %1311 = vmatmul.bf16.gmra.mxu3 %v5741_v7  ;;  %v2630_v47 = vadd.f32 %v2629_v43, %v2226_v39  ;;  %v1183_v11 = vpop.f32.mrf.mxu2  ;;  %v4530_v7 = vld [vmem:[%s7699_s1 + $0x98] sm:$0xf0] }
 0x169   : > { %v1903_v5 = vmax.f32 %v1183_v11, 0.0  ;;  %1620 = vmatpush.bf16.msra.mxu3 %v4525_v54  ;;  %v5455_v11 = vld [vmem:[%s7699_s1 + $0x94] sm:$0xf0] }
 0x16a   : > { %v1363_v14 = vpop.f32.mrf.mxu0 }
 0x16b   : > { %v1272_v12 = vpop.f32.mrf.mxu3  ;;  %v2223_v15 = vmin.f32 %v1903_v5, 6.0  ;;  %v1915_v16 = vmax.f32 %v1363_v14, 0.0  ;;  %v1452_v17 = vpop.f32.mrf.mxu1 }
 0x16c   : > { %v1904_v13 = vmax.f32 %v1272_v12, 0.0  ;;  %v1916_v20 = vmax.f32 %v1452_v17, 0.0 }
 0x16d   : > { %v2567_v21 = vadd.f32 %v2566_v4, %v2223_v15  ;;  %v2235_v22 = vmin.f32 %v1915_v16, 6.0 }
 0x16e   : > { %v2224_v19 = vmin.f32 %v1904_v13, 6.0  ;;  %v2236_v24 = vmin.f32 %v1916_v20, 6.0 }
 0x16f   : > { %v2610_v25 = vadd.f32 %v2609_v10, %v2235_v22  ;;  %v5743_v22 = vld [vmem:[%s5928_s8 + $0x58] sm:$0xff] }
 0x170   : > { %v2588_v23 = vadd.f32 %v2587_v9, %v2224_v19  ;;  %v2631_v3 = vadd.f32 %v2630_v47, %v2236_v24  ;;  %v1185_v26 = vpop.f32.mrf.mxu2  ;;  %v4528_v9 = vld [vmem:[%s7699_s1 + $0x70] sm:$0xf]  ;;  %v4533_v47 = vor.u32 %v5450_v6, %v4530_v7  ;;  %v4482_v6 = vld [vmem:[%s7699_s1 + $0x40] sm:$0xf0] }
 0x171   : > { %v1913_v27 = vmax.f32 %v1185_v26, 0.0  ;;  %v4529_v13 = vor.u32 %v5455_v11, %v4528_v9 }
 0x172   : > { %v1366_v29 = vpop.f32.mrf.mxu0  ;;  %1798 = vmatpush.bf16.msra.mxu1 %v4533_v47 }
 0x173   : > { %v1274_v59 = vpop.f32.mrf.mxu3  ;;  %v2233_v30 = vmin.f32 %v1913_v27, 6.0  ;;  %v1925_v53 = vmax.f32 %v1366_v29, 0.0  ;;  %v1455_v31 = vpop.f32.mrf.mxu1  ;;  %1709 = vmatpush.bf16.msra.mxu0 %v4529_v13 }
 0x174   : > { %v1914_v28 = vmax.f32 %v1274_v59, 0.0  ;;  %v1926_v34 = vmax.f32 %v1455_v31, 0.0 }
 0x175   : > { %v2568_v35 = vadd.f32 %v2567_v21, %v2233_v30  ;;  %v2245_v36 = vmin.f32 %v1925_v53, 6.0  ;;  %1227 = vmatmul.bf16.gmra.mxu2 %v5742_v37  ;;  %1405 = vmatmul.bf16.gmra.mxu0 %v5742_v37 }
 0x176   : > { %v2234_v33 = vmin.f32 %v1914_v28, 6.0  ;;  %v2246_v40 = vmin.f32 %v1926_v34, 6.0  ;;  %1494 = vmatmul.bf16.gmra.mxu1 %v5742_v37 }
 0x177   : > { %v2611_v41 = vadd.f32 %v2610_v25, %v2245_v36 }
 0x178   : > { %v2589_v38 = vadd.f32 %v2588_v23, %v2234_v33  ;;  %1316 = vmatmul.bf16.gmra.mxu3 %v5742_v37  ;;  %v2632_v42 = vadd.f32 %v2631_v3, %v2246_v40  ;;  %v1188_v43 = vpop.f32.mrf.mxu2 }
 0x179   : > { %v1923_v48 = vmax.f32 %v1188_v43, 0.0 }
 0x17a   : > { %v1368_v52 = vpop.f32.mrf.mxu0 }
 0x17b   : > { %v1277_v18 = vpop.f32.mrf.mxu3  ;;  %v2243_v55 = vmin.f32 %v1923_v48, 6.0  ;;  %v1935_v56 = vmax.f32 %v1368_v52, 0.0  ;;  %v1457_v57 = vpop.f32.mrf.mxu1 }
 0x17c   : > { %v1924_v51 = vmax.f32 %v1277_v18, 0.0  ;;  %v1936_v60 = vmax.f32 %v1457_v57, 0.0 }
 0x17d   : > { %v2569_v61 = vadd.f32 %v2568_v35, %v2243_v55  ;;  %v2255_v62 = vmin.f32 %v1935_v56, 6.0  ;;  %v5744_v55 = vld [vmem:[%s5928_s8 + $0x60] sm:$0xff] }
 0x17e   : > { %v2244_v58 = vmin.f32 %v1924_v51, 6.0  ;;  %v2256_v0 = vmin.f32 %v1936_v60, 6.0 }
 0x17f   : > { %v2612_v1 = vadd.f32 %v2611_v41, %v2255_v62  ;;  %v4480_v62 = vld [vmem:[%s7699_s1 + $0x18] sm:$0xf] }
 0x180   : > { %v2590_v63 = vadd.f32 %v2589_v38, %v2244_v58  ;;  %v2633_v2 = vadd.f32 %v2632_v42, %v2256_v0  ;;  %v1190_v4 = vpop.f32.mrf.mxu2  ;;  %v5439_v0 = vld [vmem:[%s7699_s1 + $0x1c] sm:$0xf] }
 0x181   : > { %v1933_v39 = vmax.f32 %v1190_v4, 0.0 }
 0x182   : > { %v1371_v12 = vpop.f32.mrf.mxu0 }
 0x183   : > { %v1279_v10 = vpop.f32.mrf.mxu3  ;;  %v2253_v14 = vmin.f32 %v1933_v39, 6.0  ;;  %v1945_v15 = vmax.f32 %v1371_v12, 0.0  ;;  %v1460_v16 = vpop.f32.mrf.mxu1  ;;  %v4485_v39 = vor.u32 %v5439_v0, %v4482_v6 }
 0x184   : > { %v1934_v5 = vmax.f32 %v1279_v10, 0.0  ;;  %v1946_v19 = vmax.f32 %v1460_v16, 0.0 }
 0x185   : > { %v2570_v20 = vadd.f32 %v2569_v61, %v2253_v14  ;;  %v2265_v21 = vmin.f32 %v1945_v15, 6.0  ;;  %1232 = vmatmul.bf16.gmra.mxu2 %v5743_v22  ;;  %1410 = vmatmul.bf16.gmra.mxu0 %v5743_v22 }
 0x186   : > { %v2254_v17 = vmin.f32 %v1934_v5, 6.0  ;;  %v2266_v24 = vmin.f32 %v1946_v19, 6.0  ;;  %1499 = vmatmul.bf16.gmra.mxu1 %v5743_v22  ;;  %1621 = vmatpush.bf16.msra.mxu3 %v4485_v39 }
 0x187   : > { %v2613_v25 = vadd.f32 %v2612_v1, %v2265_v21  ;;  %v5440_v21 = vld [vmem:[%s7699_s1 + $0x24] sm:$0xf] }
 0x188   : > { %v2591_v23 = vadd.f32 %v2590_v63, %v2254_v17  ;;  %1321 = vmatmul.bf16.gmra.mxu3 %v5743_v22  ;;  %v2634_v3 = vadd.f32 %v2633_v2, %v2266_v24  ;;  %v1193_v26 = vpop.f32.mrf.mxu2  ;;  %v5444_v63 = vld [vmem:[%s7699_s1 + $0x3c] sm:$0xf0]  ;;  %v4490_v22 = vld [vmem:[%s7699_s1 + $0x48] sm:$0xf0] }
 0x189   : > { %v1943_v27 = vmax.f32 %v1193_v26, 0.0  ;;  %v4481_v4 = vor.u32 %v5444_v63, %v4480_v62  ;;  %v5445_v26 = vld [vmem:[%s7699_s1 + $0x44] sm:$0xf0] }
 0x18a   : > { %v1373_v29 = vpop.f32.mrf.mxu0 }
 0x18b   : > { %v1282_v59 = vpop.f32.mrf.mxu3  ;;  %v2263_v30 = vmin.f32 %v1943_v27, 6.0  ;;  %v1955_v53 = vmax.f32 %v1373_v29, 0.0  ;;  %v1462_v31 = vpop.f32.mrf.mxu1  ;;  %1532 = vmatpush.bf16.msra.mxu2 %v4481_v4 }
 0x18c   : > { %v1944_v28 = vmax.f32 %v1282_v59, 0.0  ;;  %v1956_v34 = vmax.f32 %v1462_v31, 0.0 }
 0x18d   : > { %v2571_v35 = vadd.f32 %v2570_v20, %v2263_v30  ;;  %v2275_v36 = vmin.f32 %v1955_v53, 6.0 }
 0x18e   : > { %v2264_v33 = vmin.f32 %v1944_v28, 6.0  ;;  %v2276_v38 = vmin.f32 %v1956_v34, 6.0 }
 0x18f   : > { %v2614_v40 = vadd.f32 %v2613_v25, %v2275_v36  ;;  %v5745_v36 = vld [vmem:[%s5928_s8 + $0x68] sm:$0xff] }
 0x190   : > { %v2592_v37 = vadd.f32 %v2591_v23, %v2264_v33  ;;  %v2635_v41 = vadd.f32 %v2634_v3, %v2276_v38  ;;  %v1195_v42 = vpop.f32.mrf.mxu2  ;;  %v4488_v23 = vld [vmem:[%s7699_s1 + $0x20] sm:$0xf]  ;;  %v4493_v3 = vor.u32 %v5440_v21, %v4490_v22 }
 0x191   : > { %v1953_v43 = vmax.f32 %v1195_v42, 0.0  ;;  %v4489_v28 = vor.u32 %v5445_v26, %v4488_v23 }
 0x192   : > { %v1376_v46 = vpop.f32.mrf.mxu0  ;;  %1799 = vmatpush.bf16.msra.mxu1 %v4493_v3 }
 0x193   : > { %v1284_v44 = vpop.f32.mrf.mxu3  ;;  %v2273_v48 = vmin.f32 %v1953_v43, 6.0  ;;  %v1965_v18 = vmax.f32 %v1376_v46, 0.0  ;;  %v1465_v49 = vpop.f32.mrf.mxu1  ;;  %1710 = vmatpush.bf16.msra.mxu0 %v4489_v28 }
 0x194   : > { %v1954_v45 = vmax.f32 %v1284_v44, 0.0  ;;  %v1966_v51 = vmax.f32 %v1465_v49, 0.0 }
 0x195   : > { %v2572_v52 = vadd.f32 %v2571_v35, %v2273_v48  ;;  %v2285_v54 = vmin.f32 %v1965_v18, 6.0  ;;  %1237 = vmatmul.bf16.gmra.mxu2 %v5744_v55  ;;  %1415 = vmatmul.bf16.gmra.mxu0 %v5744_v55 }
 0x196   : > { %v2274_v50 = vmin.f32 %v1954_v45, 6.0  ;;  %v2286_v57 = vmin.f32 %v1966_v51, 6.0  ;;  %1504 = vmatmul.bf16.gmra.mxu1 %v5744_v55 }
 0x197   : > { %v2615_v58 = vadd.f32 %v2614_v40, %v2285_v54 }
 0x198   : > { %v2593_v56 = vadd.f32 %v2592_v37, %v2274_v50  ;;  %1326 = vmatmul.bf16.gmra.mxu3 %v5744_v55  ;;  %v2636_v60 = vadd.f32 %v2635_v41, %v2286_v57  ;;  %v1198_v61 = vpop.f32.mrf.mxu2 }
 0x199   : > { %v1963_v1 = vmax.f32 %v1198_v61, 0.0 }
 0x19a   : > { %v1378_v9 = vpop.f32.mrf.mxu0 }
 0x19b   : > { %v1287_v2 = vpop.f32.mrf.mxu3  ;;  %v2283_v10 = vmin.f32 %v1963_v1, 6.0  ;;  %v1975_v47 = vmax.f32 %v1378_v9, 0.0  ;;  %v1467_v11 = vpop.f32.mrf.mxu1 }
 0x19c   : > { %v1964_v7 = vmax.f32 %v1287_v2, 0.0  ;;  %v1976_v12 = vmax.f32 %v1467_v11, 0.0 }
 0x19d   : > { %v2573_v13 = vadd.f32 %v2572_v52, %v2283_v10  ;;  %v2295_v14 = vmin.f32 %v1975_v47, 6.0  ;;  %v5746_v10 = vld [vmem:[%s5928_s8 + $0x70] sm:$0xff] }
 0x19e   : > { %v2284_v5 = vmin.f32 %v1964_v7, 6.0  ;;  %v2296_v16 = vmin.f32 %v1976_v12, 6.0 }
 0x19f   : > { %v2616_v17 = vadd.f32 %v2615_v58, %v2295_v14 }
 0x1a0   : > { %v2594_v15 = vadd.f32 %v2593_v56, %v2284_v5  ;;  %v2637_v19 = vadd.f32 %v2636_v60, %v2296_v16  ;;  %v1200_v20 = vpop.f32.mrf.mxu2 }
 0x1a1   : > { %v1973_v24 = vmax.f32 %v1200_v20, 0.0 }
 0x1a2   : > { %v1381_v59 = vpop.f32.mrf.mxu0 }
 0x1a3   : > { %v1289_v25 = vpop.f32.mrf.mxu3  ;;  %v2293_v29 = vmin.f32 %v1973_v24, 6.0  ;;  %v1985_v30 = vmax.f32 %v1381_v59, 0.0  ;;  %v1470_v53 = vpop.f32.mrf.mxu1 }
 0x1a4   : > { %v1974_v27 = vmax.f32 %v1289_v25, 0.0  ;;  %v1986_v33 = vmax.f32 %v1470_v53, 0.0 }
 0x1a5   : > { %v2574_v34 = vadd.f32 %v2573_v13, %v2293_v29  ;;  %v2305_v35 = vmin.f32 %v1985_v30, 6.0  ;;  %1242 = vmatmul.bf16.gmra.mxu2 %v5745_v36  ;;  %1420 = vmatmul.bf16.gmra.mxu0 %v5745_v36 }
 0x1a6   : > { %v2294_v31 = vmin.f32 %v1974_v27, 6.0  ;;  %v2306_v38 = vmin.f32 %v1986_v33, 6.0  ;;  %1509 = vmatmul.bf16.gmra.mxu1 %v5745_v36 }
 0x1a7   : > { %v2617_v40 = vadd.f32 %v2616_v17, %v2305_v35 }
 0x1a8   : > { %v2595_v37 = vadd.f32 %v2594_v15, %v2294_v31  ;;  %1331 = vmatmul.bf16.gmra.mxu3 %v5745_v36  ;;  %v2638_v41 = vadd.f32 %v2637_v19, %v2306_v38  ;;  %v1203_v42 = vpop.f32.mrf.mxu2 }
 0x1a9   : > { %v1983_v43 = vmax.f32 %v1203_v42, 0.0 }
 0x1aa   : > { %v1383_v46 = vpop.f32.mrf.mxu0 }
 0x1ab   : > { %v1292_v44 = vpop.f32.mrf.mxu3  ;;  %v2303_v48 = vmin.f32 %v1983_v43, 6.0  ;;  %v1995_v18 = vmax.f32 %v1383_v46, 0.0  ;;  %v1472_v49 = vpop.f32.mrf.mxu1 }
 0x1ac   : > { %v1984_v45 = vmax.f32 %v1292_v44, 0.0  ;;  %v1996_v51 = vmax.f32 %v1472_v49, 0.0 }
 0x1ad   : > { %v2575_v52 = vadd.f32 %v2574_v34, %v2303_v48  ;;  %v2315_v54 = vmin.f32 %v1995_v18, 6.0 }
 0x1ae   : > { %v2304_v50 = vmin.f32 %v1984_v45, 6.0  ;;  %v2316_v56 = vmin.f32 %v1996_v51, 6.0 }
 0x1af   : > { %v2618_v57 = vadd.f32 %v2617_v40, %v2315_v54 }
 0x1b0   : > { %v2596_v55 = vadd.f32 %v2595_v37, %v2304_v50  ;;  %v2639_v58 = vadd.f32 %v2638_v41, %v2316_v56  ;;  %v1205_v60 = vpop.f32.mrf.mxu2  ;;  %v5747_v41 = vld [vmem:[%s5928_s8 + $0x78] sm:$0xff] }
 0x1b1   : > { %v1993_v61 = vmax.f32 %v1205_v60, 0.0 }
 0x1b2   : > { %v1386_v0 = vpop.f32.mrf.mxu0 }
 0x1b3   : > { %v1294_v62 = vpop.f32.mrf.mxu3  ;;  %v2313_v1 = vmin.f32 %v1993_v61, 6.0  ;;  %v2005_v2 = vmax.f32 %v1386_v0, 0.0  ;;  %v1475_v4 = vpop.f32.mrf.mxu1 }
 0x1b4   : > { %v1994_v63 = vmax.f32 %v1294_v62, 0.0  ;;  %v2006_v7 = vmax.f32 %v1475_v4, 0.0 }
 0x1b5   : > { %v2576_v9 = vadd.f32 %v2575_v52, %v2313_v1  ;;  %v2325_v39 = vmin.f32 %v2005_v2, 6.0  ;;  %1247 = vmatmul.bf16.gmra.mxu2 %v5746_v10  ;;  %1425 = vmatmul.bf16.gmra.mxu0 %v5746_v10 }
 0x1b6   : > { %v2314_v6 = vmin.f32 %v1994_v63, 6.0  ;;  %v2326_v11 = vmin.f32 %v2006_v7, 6.0  ;;  %1514 = vmatmul.bf16.gmra.mxu1 %v5746_v10 }
 0x1b7   : > { %v2619_v5 = vadd.f32 %v2618_v57, %v2325_v39 }
 0x1b8   : > { %v2597_v47 = vadd.f32 %v2596_v55, %v2314_v6  ;;  %1336 = vmatmul.bf16.gmra.mxu3 %v5746_v10  ;;  %v2640_v12 = vadd.f32 %v2639_v58, %v2326_v11  ;;  %v1208_v13 = vpop.f32.mrf.mxu2 }
 0x1b9   : > { %v2003_v14 = vmax.f32 %v1208_v13, 0.0 }
 0x1ba   : > { %v1388_v17 = vpop.f32.mrf.mxu0 }
 0x1bb   : > { %v1297_v15 = vpop.f32.mrf.mxu3  ;;  %v2323_v19 = vmin.f32 %v2003_v14, 6.0  ;;  %v2015_v20 = vmax.f32 %v1388_v17, 0.0  ;;  %v1477_v21 = vpop.f32.mrf.mxu1  ;;  %v5748_v14 = vld [vmem:[%s5928_s8] sm:$0xff] }
 0x1bc   : > { %v2004_v16 = vmax.f32 %v1297_v15, 0.0  ;;  %v2016_v23 = vmax.f32 %v1477_v21, 0.0 }
 0x1bd   : > { %v2577_v24 = vadd.f32 %v2576_v9, %v2323_v19  ;;  %v2335_v25 = vmin.f32 %v2015_v20, 6.0 }
 0x1be   : > { %v2324_v22 = vmin.f32 %v2004_v16, 6.0  ;;  %v2336_v26 = vmin.f32 %v2016_v23, 6.0 }
 0x1bf   : > { %v2620_v27 = vadd.f32 %v2619_v5, %v2335_v25 }
 0x1c0   : > { %v2598_v3 = vadd.f32 %v2597_v47, %v2324_v22  ;;  %v2641_v59 = vadd.f32 %v2640_v12, %v2336_v26  ;;  %v1210_v28 = vpop.f32.mrf.mxu2 }
 0x1c1   : > { %v2013_v29 = vmax.f32 %v1210_v28, 0.0 }
 0x1c2   : > { %v1391_v31 = vpop.f32.mrf.mxu0 }
 0x1c3   : > { %v1299_v30 = vpop.f32.mrf.mxu3  ;;  %v2333_v33 = vmin.f32 %v2013_v29, 6.0  ;;  %v2025_v34 = vmax.f32 %v1391_v31, 0.0  ;;  %v1480_v35 = vpop.f32.mrf.mxu1 }
 0x1c4   : > { %v2014_v53 = vmax.f32 %v1299_v30, 0.0  ;;  %v2026_v37 = vmax.f32 %v1480_v35, 0.0 }
 0x1c5   : > { %v2578_v38 = vadd.f32 %v2577_v24, %v2333_v33  ;;  %v2345_v40 = vmin.f32 %v2025_v34, 6.0  ;;  %1252 = vmatmul.bf16.gmra.mxu2 %v5747_v41  ;;  %1430 = vmatmul.bf16.gmra.mxu0 %v5747_v41 }
 0x1c6   : > { %v2334_v36 = vmin.f32 %v2014_v53, 6.0  ;;  %v2346_v43 = vmin.f32 %v2026_v37, 6.0  ;;  %1519 = vmatmul.bf16.gmra.mxu1 %v5747_v41 }
 0x1c7   : > { %v2621_v44 = vadd.f32 %v2620_v27, %v2345_v40 }
 0x1c8   : > { %v2599_v42 = vadd.f32 %v2598_v3, %v2334_v36  ;;  %1341 = vmatmul.bf16.gmra.mxu3 %v5747_v41  ;;  %v2642_v45 = vadd.f32 %v2641_v59, %v2346_v43  ;;  %v1213_v46 = vpop.f32.mrf.mxu2 }
 0x1c9   : > { %v2023_v48 = vmax.f32 %v1213_v46, 0.0 }
 0x1ca   : > { %v1393_v50 = vpop.f32.mrf.mxu0 }
 0x1cb   : > { %v1302_v18 = vpop.f32.mrf.mxu3  ;;  %v2343_v51 = vmin.f32 %v2023_v48, 6.0  ;;  %v2035_v52 = vmax.f32 %v1393_v50, 0.0  ;;  %v1482_v54 = vpop.f32.mrf.mxu1 }
 0x1cc   : > { %v2024_v49 = vmax.f32 %v1302_v18, 0.0  ;;  %v2036_v56 = vmax.f32 %v1482_v54, 0.0 }
 0x1cd   : > { %v2579_v57 = vadd.f32 %v2578_v38, %v2343_v51  ;;  %v2355_v58 = vmin.f32 %v2035_v52, 6.0 }
 0x1ce   : > { %v2344_v55 = vmin.f32 %v2024_v49, 6.0  ;;  %v2356_v61 = vmin.f32 %v2036_v56, 6.0 }
 0x1cf   : > { %v2622_v62 = vadd.f32 %v2621_v44, %v2355_v58 }
 0x1d0   : > { %v2600_v60 = vadd.f32 %v2599_v42, %v2344_v55  ;;  %v2643_v63 = vadd.f32 %v2642_v45, %v2356_v61  ;;  %v1215_v0 = vpop.f32.mrf.mxu2 }
 0x1d1   : > { %v2623_v1 = vrot.slane %v2622_v62, 4  ;;  %v2033_v2 = vmax.f32 %v1215_v0, 0.0 }
 0x1d2   : > { %v2644_v6 = vrot.slane %v2643_v63, 4  ;;  %v1396_v9 = vpop.f32.mrf.mxu0 }
 0x1d3   : > { %v1304_v4 = vpop.f32.mrf.mxu3  ;;  %v2624_v39 = vadd.f32 %v2623_v1, %v2622_v62  ;;  %v2353_v10 = vmin.f32 %v2033_v2, 6.0  ;;  %v1485_v47 = vpop.f32.mrf.mxu1  ;;  %v2045_v20 = vmax.f32 %v1396_v9, 0.0 }
 0x1d4   : > { %v2034_v7 = vmax.f32 %v1304_v4, 0.0  ;;  %v2645_v11 = vadd.f32 %v2644_v6, %v2643_v63  ;;  %v2046_v23 = vmax.f32 %v1485_v47, 0.0 }
 0x1d5   : > { %v2625_v12 = vrot.slane %v2624_v39, 2  ;;  %v2580_v13 = vadd.f32 %v2579_v57, %v2353_v10  ;;  %1533 = vmatmul.bf16.vlgmr.msra.gmra.mxu2 %v5748_v14  ;;  %1711 = vmatmul.bf16.vlgmr.msra.gmra.mxu0 %v5748_v14  ;;  %v2365_v30 = vmin.f32 %v2045_v20, 6.0 }
 0x1d6   : > { %v2354_v5 = vmin.f32 %v2034_v7, 6.0  ;;  %v2646_v15 = vrot.slane %v2645_v11, 2  ;;  %1800 = vmatmul.bf16.vlgmr.msra.gmra.mxu1 %v5748_v14  ;;  %v2366_v35 = vmin.f32 %v2046_v23, 6.0 }
 0x1d7   : > { %v2626_v17 = vadd.f32 %v2625_v12, %v2624_v39  ;;  %v2581_v19 = vrot.slane %v2580_v13, 4  ;;  %v5749_v39 = vld [vmem:[%s5928_s8 + $0x8] sm:$0xff] }
 0x1d8   : > { %v2601_v16 = vadd.f32 %v2600_v60, %v2354_v5  ;;  %1622 = vmatmul.bf16.vlgmr.msra.gmra.mxu3 %v5748_v14  ;;  %v2647_v21 = vadd.f32 %v2646_v15, %v2645_v11  ;;  %v1218_v24 = vpop.f32.mrf.mxu2 }
 0x1d9   : > { %v2582_v25 = vadd.f32 %v2581_v19, %v2580_v13  ;;  %v2627_v26 = vrot.slane %v2626_v17, 1  ;;  %v2043_v45 = vmax.f32 %v1218_v24, 0.0 }
 0x1da   : > { %v2602_v22 = vrot.slane %v2601_v16, 4  ;;  %v2648_v27 = vrot.slane %v2647_v21, 1  ;;  %v1398_v28 = vpop.f32.mrf.mxu0 }
 0x1db   : > { %v1307_v3 = vpop.f32.mrf.mxu3  ;;  %v2583_v29 = vrot.slane %v2582_v25, 2  ;;  %v2055_v53 = vmax.f32 %v1398_v28, 0.0  ;;  %v1487_v31 = vpop.f32.mrf.mxu1  ;;  %v2628_v40 = vadd.f32 %v2627_v26, %v2626_v17  ;;  %v2363_v61 = vmin.f32 %v2043_v45, 6.0 }
 0x1dc   : > { %v2603_v59 = vadd.f32 %v2602_v22, %v2601_v16  ;;  %v2649_v33 = vadd.f32 %v2648_v27, %v2647_v21  ;;  %v2056_v36 = vmax.f32 %v1487_v31, 0.0  ;;  %v2044_v49 = vmax.f32 %v1307_v3, 0.0 }
 0x1dd   : > { %v2584_v37 = vadd.f32 %v2583_v29, %v2582_v25  ;;  %v2375_v38 = vmin.f32 %v2055_v53, 6.0 }
 0x1de   : > { %v2604_v34 = vrot.slane %v2603_v59, 2  ;;  %v2967_v41 = vrot.slane %v2649_v33, 6  ;;  %v2376_v43 = vmin.f32 %v2056_v36, 6.0  ;;  %v2364_v2 = vmin.f32 %v2044_v49, 6.0 }
 0x1df   : > { %v2585_v44 = vrot.slane %v2584_v37, 1  ;;  %v2818_v46 = vadd.f32 %v2375_v38, %v2365_v30 }
 0x1e0   : > { %v2605_v42 = vadd.f32 %v2604_v34, %v2603_v59  ;;  %v6507_v48 = vsel %vm2978_vm0, %v2628_v40, %v2967_v41  ;;  %v2839_v50 = vadd.f32 %v2376_v43, %v2366_v35  ;;  %v1220_v51 = vpop.f32.mrf.mxu2  ;;  %v5750_v41 = vld [vmem:[%s5928_s8 + $0x10] sm:$0xff] }
 0x1e1   : > { %v2586_v52 = vadd.f32 %v2585_v44, %v2584_v37  ;;  %v2053_v54 = vmax.f32 %v1220_v51, 0.0 }
 0x1e2   : > { %v2606_v18 = vrot.slane %v2605_v42, 1  ;;  %v1401_v58 = vpop.f32.mrf.mxu0 }
 0x1e3   : > { %v1309_v55 = vpop.f32.mrf.mxu3  ;;  %v2965_v60 = vrot.slane %v2586_v52, 4  ;;  %v2373_v62 = vmin.f32 %v2053_v54, 6.0  ;;  %v2065_v63 = vmax.f32 %v1401_v58, 0.0  ;;  %v1490_v0 = vpop.f32.mrf.mxu1 }
 0x1e4   : > { %v2607_v56 = vadd.f32 %v2606_v18, %v2605_v42  ;;  %v2054_v57 = vmax.f32 %v1309_v55, 0.0  ;;  %v2066_v6 = vmax.f32 %v1490_v0, 0.0 }
 0x1e5   : > { %v2776_v7 = vadd.f32 %v2373_v62, %v2363_v61  ;;  %v2385_v9 = vmin.f32 %v2065_v63, 6.0  ;;  %1538 = vmatmul.bf16.gmra.mxu2 %v5749_v39  ;;  %1716 = vmatmul.bf16.gmra.mxu0 %v5749_v39 }
 0x1e6   : > { %v2966_v1 = vrot.slane %v2607_v56, 2  ;;  %v2374_v4 = vmin.f32 %v2054_v57, 6.0  ;;  %v2386_v11 = vmin.f32 %v2066_v6, 6.0  ;;  %1805 = vmatmul.bf16.gmra.mxu1 %v5749_v39 }
 0x1e7   : > { %v2819_v12 = vadd.f32 %v2818_v46, %v2385_v9 }
 0x1e8   : > { %v2981_v10 = vsel %vm2980_vm1, %v2965_v60, %v2966_v1  ;;  %v2797_v47 = vadd.f32 %v2374_v4, %v2364_v2  ;;  %1627 = vmatmul.bf16.gmra.mxu3 %v5749_v39  ;;  %v2840_v13 = vadd.f32 %v2839_v50, %v2386_v11  ;;  %v1223_v14 = vpop.f32.mrf.mxu2 }
 0x1e9   : > { %v6513_v5 = vsel %vm2982_vm2, %v6433_v32, %v2981_v10  ;;  %v2063_v15 = vmax.f32 %v1223_v14, 0.0  ;;  %v5751_v10 = vld [vmem:[%s5928_s8 + $0x18] sm:$0xff] }
 0x1ea   : > { %v1403_v19 = vpop.f32.mrf.mxu0 }
 0x1eb   : > { %v1312_v16 = vpop.f32.mrf.mxu3  ;;  %v2383_v20 = vmin.f32 %v2063_v15, 6.0  ;;  %v2075_v21 = vmax.f32 %v1403_v19, 0.0  ;;  %v1492_v22 = vpop.f32.mrf.mxu1 }
 0x1ec   : > { %v2064_v17 = vmax.f32 %v1312_v16, 0.0  ;;  %v2076_v24 = vmax.f32 %v1492_v22, 0.0 }
 0x1ed   : > { %v2777_v25 = vadd.f32 %v2776_v7, %v2383_v20  ;;  %v2395_v3 = vmin.f32 %v2075_v21, 6.0 }
 0x1ee   : > { %v2384_v23 = vmin.f32 %v2064_v17, 6.0  ;;  %v2396_v27 = vmin.f32 %v2076_v24, 6.0 }
 0x1ef   : > { %v2820_v59 = vadd.f32 %v2819_v12, %v2395_v3 }
 0x1f0   : > { %v2798_v26 = vadd.f32 %v2797_v47, %v2384_v23  ;;  %v2841_v32 = vadd.f32 %v2840_v13, %v2396_v27  ;;  %v1225_v28 = vpop.f32.mrf.mxu2 }
 0x1f1   : > { %v2073_v29 = vmax.f32 %v1225_v28, 0.0  ;;  %v5752_v28 = vld [vmem:[%s5928_s8 + $0x20] sm:$0xff] }
 0x1f2   : > { %v1406_v31 = vpop.f32.mrf.mxu0 }
 0x1f3   : > { %v1314_v30 = vpop.f32.mrf.mxu3  ;;  %v2393_v33 = vmin.f32 %v2073_v29, 6.0  ;;  %v2085_v34 = vmax.f32 %v1406_v31, 0.0  ;;  %v1495_v35 = vpop.f32.mrf.mxu1 }
 0x1f4   : > { %v2074_v53 = vmax.f32 %v1314_v30, 0.0  ;;  %v2086_v37 = vmax.f32 %v1495_v35, 0.0 }
 0x1f5   : > { %v2778_v38 = vadd.f32 %v2777_v25, %v2393_v33  ;;  %v2405_v40 = vmin.f32 %v2085_v34, 6.0  ;;  %1543 = vmatmul.bf16.gmra.mxu2 %v5750_v41  ;;  %1721 = vmatmul.bf16.gmra.mxu0 %v5750_v41 }
 0x1f6   : > { %v2394_v36 = vmin.f32 %v2074_v53, 6.0  ;;  %v2406_v43 = vmin.f32 %v2086_v37, 6.0  ;;  %1810 = vmatmul.bf16.gmra.mxu1 %v5750_v41 }
 0x1f7   : > { %v2821_v44 = vadd.f32 %v2820_v59, %v2405_v40 }
 0x1f8   : > { %v2799_v42 = vadd.f32 %v2798_v26, %v2394_v36  ;;  %1632 = vmatmul.bf16.gmra.mxu3 %v5750_v41  ;;  %v2842_v45 = vadd.f32 %v2841_v32, %v2406_v43  ;;  %v1228_v46 = vpop.f32.mrf.mxu2 }
 0x1f9   : > { %v2083_v18 = vmax.f32 %v1228_v46, 0.0 }
 0x1fa   : > { %v1408_v51 = vpop.f32.mrf.mxu0 }
 0x1fb   : > { %v1317_v49 = vpop.f32.mrf.mxu3  ;;  %v2403_v52 = vmin.f32 %v2083_v18, 6.0  ;;  %v2095_v54 = vmax.f32 %v1408_v51, 0.0  ;;  %v1497_v55 = vpop.f32.mrf.mxu1  ;;  %v5753_v51 = vld [vmem:[%s5928_s8 + $0x28] sm:$0xff] }
 0x1fc   : > { %v2084_v50 = vmax.f32 %v1317_v49, 0.0  ;;  %v2096_v57 = vmax.f32 %v1497_v55, 0.0 }
 0x1fd   : > { %v6516_v58 = vadd.f32 %v2778_v38, %v2403_v52  ;;  %v2415_v60 = vmin.f32 %v2095_v54, 6.0 }
 0x1fe   : > { %v2404_v56 = vmin.f32 %v2084_v50, 6.0  ;;  %v2416_v62 = vmin.f32 %v2096_v57, 6.0 }
 0x1ff   : > { %v2822_v63 = vadd.f32 %v2821_v44, %v2415_v60 }
 0x200   : > { %v6518_v61 = vadd.f32 %v2799_v42, %v2404_v56  ;;  %v2843_v0 = vadd.f32 %v2842_v45, %v2416_v62  ;;  %v6520_v1 = vpop.f32.mrf.mxu2 }
 0x202   : > { %v1411_v4 = vpop.f32.mrf.mxu0 }
 0x203   : > { %v6522_v2 = vpop.f32.mrf.mxu3  ;;  %v2105_v6 = vmax.f32 %v1411_v4, 0.0  ;;  %v1500_v7 = vpop.f32.mrf.mxu1 }
 0x204   : > { %v2106_v9 = vmax.f32 %v1500_v7, 0.0 }
 0x205   : > { %v2425_v39 = vmin.f32 %v2105_v6, 6.0  ;;  %1548 = vmatmul.bf16.gmra.mxu2 %v5751_v10  ;;  %1726 = vmatmul.bf16.gmra.mxu0 %v5751_v10 }
 0x206   : > { %v2426_v47 = vmin.f32 %v2106_v9, 6.0  ;;  %1815 = vmatmul.bf16.gmra.mxu1 %v5751_v10 }
 0x207   : > { %v2823_v11 = vadd.f32 %v2822_v63, %v2425_v39 }
 0x208   : > { %1637 = vmatmul.bf16.gmra.mxu3 %v5751_v10  ;;  %v2844_v12 = vadd.f32 %v2843_v0, %v2426_v47  ;;  %v6525_v13 = vpop.f32.mrf.mxu2 }
 0x20a   : > { %v1413_v15 = vpop.f32.mrf.mxu0 }
 0x20b   : > { %v6527_v14 = vpop.f32.mrf.mxu3  ;;  %v2115_v16 = vmax.f32 %v1413_v15, 0.0  ;;  %v1502_v17 = vpop.f32.mrf.mxu1 }
 0x20c   : > { %v2116_v19 = vmax.f32 %v1502_v17, 0.0  ;;  %v5754_v17 = vld [vmem:[%s5928_s8 + $0x30] sm:$0xff] }
 0x20d   : > { %v2435_v20 = vmin.f32 %v2115_v16, 6.0 }
 0x20e   : > { %v2436_v21 = vmin.f32 %v2116_v19, 6.0 }
 0x20f   : > { %v2824_v22 = vadd.f32 %v2823_v11, %v2435_v20 }
 0x210   : > { %v2845_v23 = vadd.f32 %v2844_v12, %v2436_v21  ;;  %v6529_v24 = vpop.f32.mrf.mxu2 }
 0x212   : > { %v1416_v3 = vpop.f32.mrf.mxu0 }
 0x213   : > { %v6531_v25 = vpop.f32.mrf.mxu3  ;;  %v2125_v26 = vmax.f32 %v1416_v3, 0.0  ;;  %v1505_v27 = vpop.f32.mrf.mxu1 }
 0x214   : > { %v2126_v59 = vmax.f32 %v1505_v27, 0.0 }
 0x215   : > { %v2445_v32 = vmin.f32 %v2125_v26, 6.0  ;;  %1553 = vmatmul.bf16.gmra.mxu2 %v5752_v28  ;;  %1731 = vmatmul.bf16.gmra.mxu0 %v5752_v28  ;;  %v2094_v26 = vmax.f32 %v6522_v2, 0.0 }
 0x216   : > { %v2446_v29 = vmin.f32 %v2126_v59, 6.0  ;;  %1820 = vmatmul.bf16.gmra.mxu1 %v5752_v28  ;;  %v2103_v59 = vmax.f32 %v6525_v13, 0.0 }
 0x217   : > { %v2825_v30 = vadd.f32 %v2824_v22, %v2445_v32 }
 0x218   : > { %1642 = vmatmul.bf16.gmra.mxu3 %v5752_v28  ;;  %v2846_v53 = vadd.f32 %v2845_v23, %v2446_v29  ;;  %v6534_v31 = vpop.f32.mrf.mxu2  ;;  %v2093_v23 = vmax.f32 %v6520_v1, 0.0  ;;  %v2104_v29 = vmax.f32 %v6527_v14, 0.0 }
 0x21a   : > { %v1418_v34 = vpop.f32.mrf.mxu0 }
 0x21b   : > { %v6536_v33 = vpop.f32.mrf.mxu3  ;;  %v2135_v35 = vmax.f32 %v1418_v34, 0.0  ;;  %v1507_v36 = vpop.f32.mrf.mxu1  ;;  %v2113_v34 = vmax.f32 %v6529_v24, 0.0 }
 0x21c   : > { %v2136_v37 = vmax.f32 %v1507_v36, 0.0  ;;  %v2414_v36 = vmin.f32 %v2094_v26, 6.0  ;;  %v2124_v13 = vmax.f32 %v6536_v33, 0.0 }
 0x21d   : > { %v2455_v38 = vmin.f32 %v2135_v35, 6.0 }
 0x21e   : > { %v2456_v40 = vmin.f32 %v2136_v37, 6.0  ;;  %v2114_v37 = vmax.f32 %v6531_v25, 0.0 }
 0x21f   : > { %v2826_v41 = vadd.f32 %v2825_v30, %v2455_v38  ;;  %v2423_v38 = vmin.f32 %v2103_v59, 6.0 }
 0x220   : > { %v2847_v42 = vadd.f32 %v2846_v53, %v2456_v40  ;;  %v6538_v43 = vpop.f32.mrf.mxu2  ;;  %v2413_v53 = vmin.f32 %v2093_v23, 6.0  ;;  %v2123_v40 = vmax.f32 %v6534_v31, 0.0 }
 0x222   : > { %v1421_v45 = vpop.f32.mrf.mxu0  ;;  %v2780_v14 = vadd.f32 %v6516_v58, %v2413_v53 }
 0x223   : > { %v6540_v44 = vpop.f32.mrf.mxu3  ;;  %v2145_v46 = vmax.f32 %v1421_v45, 0.0  ;;  %v1510_v18 = vpop.f32.mrf.mxu1 }
 0x224   : > { %v2146_v49 = vmax.f32 %v1510_v18, 0.0  ;;  %v2133_v18 = vmax.f32 %v6538_v43, 0.0  ;;  %v2134_v25 = vmax.f32 %v6540_v44, 0.0  ;;  %v2781_v31 = vadd.f32 %v2780_v14, %v2423_v38 }
 0x225   : > { %v2465_v50 = vmin.f32 %v2145_v46, 6.0  ;;  %1558 = vmatmul.bf16.gmra.mxu2 %v5753_v51  ;;  %1736 = vmatmul.bf16.gmra.mxu0 %v5753_v51  ;;  %v2433_v46 = vmin.f32 %v2113_v34, 6.0 }
 0x226   : > { %v2466_v52 = vmin.f32 %v2146_v49, 6.0  ;;  %1825 = vmatmul.bf16.gmra.mxu1 %v5753_v51  ;;  %v2801_v49 = vadd.f32 %v6518_v61, %v2414_v36 }
 0x227   : > { %v2827_v54 = vadd.f32 %v2826_v41, %v2465_v50  ;;  %v2424_v41 = vmin.f32 %v2104_v29, 6.0  ;;  %v2434_v50 = vmin.f32 %v2114_v37, 6.0  ;;  %v2782_v43 = vadd.f32 %v2781_v31, %v2433_v46 }
 0x228   : > { %1647 = vmatmul.bf16.gmra.mxu3 %v5753_v51  ;;  %v2848_v55 = vadd.f32 %v2847_v42, %v2466_v52  ;;  %v6543_v56 = vpop.f32.mrf.mxu2  ;;  %v2443_v52 = vmin.f32 %v2123_v40, 6.0 }
 0x22a   : > { %v1423_v60 = vpop.f32.mrf.mxu0 }
 0x22b   : > { %v6545_v57 = vpop.f32.mrf.mxu3  ;;  %v2155_v62 = vmax.f32 %v1423_v60, 0.0  ;;  %v1512_v63 = vpop.f32.mrf.mxu1  ;;  %v2802_v60 = vadd.f32 %v2801_v49, %v2424_v41 }
 0x22c   : > { %v2156_v0 = vmax.f32 %v1512_v63, 0.0  ;;  %v2144_v58 = vmax.f32 %v6545_v57, 0.0 }
 0x22d   : > { %v2475_v4 = vmin.f32 %v2155_v62, 6.0  ;;  %v2444_v62 = vmin.f32 %v2124_v13, 6.0  ;;  %v2803_v44 = vadd.f32 %v2802_v60, %v2434_v50 }
 0x22e   : > { %v2476_v6 = vmin.f32 %v2156_v0, 6.0  ;;  %v2453_v0 = vmin.f32 %v2133_v18, 6.0 }
 0x22f   : > { %v2828_v7 = vadd.f32 %v2827_v54, %v2475_v4  ;;  %v2143_v54 = vmax.f32 %v6543_v56, 0.0 }
 0x230   : > { %v2849_v9 = vadd.f32 %v2848_v55, %v2476_v6  ;;  %v6547_v39 = vpop.f32.mrf.mxu2  ;;  %v5755_v6 = vld [vmem:[%s5928_s8 + $0x38] sm:$0xff] }
 0x231   : > { %v2153_v61 = vmax.f32 %v6547_v39, 0.0 }
 0x232   : > { %v1426_v47 = vpop.f32.mrf.mxu0 }
 0x233   : > { %v6549_v10 = vpop.f32.mrf.mxu3  ;;  %v2165_v11 = vmax.f32 %v1426_v47, 0.0  ;;  %v1515_v12 = vpop.f32.mrf.mxu1  ;;  %v2783_v47 = vadd.f32 %v2782_v43, %v2443_v52 }
 0x234   : > { %v2166_v15 = vmax.f32 %v1515_v12, 0.0 }
 0x235   : > { %v2485_v16 = vmin.f32 %v2165_v11, 6.0  ;;  %1563 = vmatmul.bf16.gmra.mxu2 %v5754_v17  ;;  %1741 = vmatmul.bf16.gmra.mxu0 %v5754_v17  ;;  %v2463_v11 = vmin.f32 %v2143_v54, 6.0 }
 0x236   : > { %v2486_v19 = vmin.f32 %v2166_v15, 6.0  ;;  %1830 = vmatmul.bf16.gmra.mxu1 %v5754_v17  ;;  %v2804_v15 = vadd.f32 %v2803_v44, %v2444_v62 }
 0x237   : > { %v2829_v20 = vadd.f32 %v2828_v7, %v2485_v16  ;;  %v2454_v7 = vmin.f32 %v2134_v25, 6.0  ;;  %v2464_v16 = vmin.f32 %v2144_v58, 6.0 }
 0x238   : > { %1652 = vmatmul.bf16.gmra.mxu3 %v5754_v17  ;;  %v2850_v21 = vadd.f32 %v2849_v9, %v2486_v19  ;;  %v6552_v22 = vpop.f32.mrf.mxu2  ;;  %v2154_v9 = vmax.f32 %v6549_v10, 0.0 }
 0x239   : > { %v2163_v57 = vmax.f32 %v6552_v22, 0.0 }
 0x23a   : > { %v1428_v27 = vpop.f32.mrf.mxu0  ;;  %v2474_v10 = vmin.f32 %v2154_v9, 6.0 }
 0x23b   : > { %v6555_v3 = vpop.f32.mrf.mxu3  ;;  %v2175_v32 = vmax.f32 %v1428_v27, 0.0  ;;  %v1517_v28 = vpop.f32.mrf.mxu1  ;;  %v2805_v27 = vadd.f32 %v2804_v15, %v2454_v7  ;;  %v2483_v29 = vmin.f32 %v2163_v57, 6.0 }
 0x23c   : > { %v2176_v30 = vmax.f32 %v1517_v28, 0.0  ;;  %v2164_v39 = vmax.f32 %v6555_v3, 0.0 }
 0x23d   : > { %v2495_v35 = vmin.f32 %v2175_v32, 6.0  ;;  %v2806_v34 = vadd.f32 %v2805_v27, %v2464_v16 }
 0x23e   : > { %v2496_v1 = vmin.f32 %v2176_v30, 6.0 }
 0x23f   : > { %v2830_v2 = vadd.f32 %v2829_v20, %v2495_v35  ;;  %v2784_v20 = vadd.f32 %v2783_v47, %v2453_v0  ;;  %v2484_v35 = vmin.f32 %v2164_v39, 6.0  ;;  %v2807_v40 = vadd.f32 %v2806_v34, %v2474_v10 }
 0x240   : > { %v2851_v42 = vadd.f32 %v2850_v21, %v2496_v1  ;;  %v1250_v45 = vpop.f32.mrf.mxu2  ;;  %v2473_v21 = vmin.f32 %v2153_v61, 6.0 }
 0x241   : > { %v2173_v23 = vmax.f32 %v1250_v45, 0.0  ;;  %v2785_v28 = vadd.f32 %v2784_v20, %v2463_v11  ;;  %v2808_v14 = vadd.f32 %v2807_v40, %v2484_v35 }
 0x242   : > { %v1431_v51 = vpop.f32.mrf.mxu0 }
 0x243   : > { %v1339_v24 = vpop.f32.mrf.mxu3  ;;  %v2185_v33 = vmax.f32 %v1431_v51, 0.0  ;;  %v1520_v55 = vpop.f32.mrf.mxu1  ;;  %v2786_v3 = vadd.f32 %v2785_v28, %v2473_v21  ;;  %v2493_v1 = vmin.f32 %v2173_v23, 6.0 }
 0x244   : > { %v2186_v63 = vmax.f32 %v1520_v55, 0.0  ;;  %v2174_v59 = vmax.f32 %v1339_v24, 0.0 }
 0x245   : > { %v2505_v4 = vmin.f32 %v2185_v33, 6.0  ;;  %1568 = vmatmul.bf16.gmra.mxu2 %v5755_v6  ;;  %1746 = vmatmul.bf16.gmra.mxu0 %v5755_v6  ;;  %v2787_v13 = vadd.f32 %v2786_v3, %v2483_v29 }
 0x246   : > { %v2506_v56 = vmin.f32 %v2186_v63, 6.0  ;;  %1835 = vmatmul.bf16.gmra.mxu1 %v5755_v6 }
 0x247   : > { %v2831_v12 = vadd.f32 %v2830_v2, %v2505_v4  ;;  %v2494_v2 = vmin.f32 %v2174_v59, 6.0  ;;  %v2788_v49 = vadd.f32 %v2787_v13, %v2493_v1 }
 0x248   : > { %1657 = vmatmul.bf16.gmra.mxu3 %v5755_v6  ;;  %v2852_v17 = vadd.f32 %v2851_v42, %v2506_v56  ;;  %v1253_v19 = vpop.f32.mrf.mxu2  ;;  %v5756_v6 = vld [vmem:[%s5928_s8 + $0x40] sm:$0xff] }
 0x249   : > { %v2183_v30 = vmax.f32 %v1253_v19, 0.0  ;;  %v2809_v31 = vadd.f32 %v2808_v14, %v2494_v2 }
 0x24a   : > { %v1433_v32 = vpop.f32.mrf.mxu0 }
 0x24b   : > { %v1342_v26 = vpop.f32.mrf.mxu3  ;;  %v2195_v53 = vmax.f32 %v1433_v32, 0.0  ;;  %v1522_v22 = vpop.f32.mrf.mxu1  ;;  %v2503_v42 = vmin.f32 %v2183_v30, 6.0 }
 0x24c   : > { %v2184_v36 = vmax.f32 %v1342_v26, 0.0  ;;  %v2196_v37 = vmax.f32 %v1522_v22, 0.0 }
 0x24d   : > { %v2515_v38 = vmin.f32 %v2195_v53, 6.0  ;;  %v2789_v55 = vadd.f32 %v2788_v49, %v2503_v42 }
 0x24e   : > { %v2516_v41 = vmin.f32 %v2196_v37, 6.0  ;;  %v2504_v46 = vmin.f32 %v2184_v36, 6.0 }
 0x24f   : > { %v2832_v45 = vadd.f32 %v2831_v12, %v2515_v38 }
 0x250   : > { %v2853_v18 = vadd.f32 %v2852_v17, %v2516_v41  ;;  %v1255_v24 = vpop.f32.mrf.mxu2  ;;  %v2810_v63 = vadd.f32 %v2809_v31, %v2504_v46 }
 0x251   : > { %v2833_v50 = vrot.slane %v2832_v45, 4  ;;  %v2193_v25 = vmax.f32 %v1255_v24, 0.0 }
 0x252   : > { %v2854_v52 = vrot.slane %v2853_v18, 4  ;;  %v1712_v33 = vpop.f32.mrf.mxu0 }
 0x253   : > { %v1344_v51 = vpop.f32.mrf.mxu3  ;;  %v2834_v60 = vadd.f32 %v2833_v50, %v2832_v45  ;;  %v2513_v62 = vmin.f32 %v2193_v25, 6.0  ;;  %v1801_v58 = vpop.f32.mrf.mxu1  ;;  %v1889_v47 = vmax.f32 %v1712_v33, 0.0 }
 0x254   : > { %v2194_v54 = vmax.f32 %v1344_v51, 0.0  ;;  %v2855_v43 = vadd.f32 %v2854_v52, %v2853_v18  ;;  %v1890_v12 = vmax.f32 %v1801_v58, 0.0  ;;  %v5757_v58 = vld [vmem:[%s5928_s8 + $0x48] sm:$0xff] }
 0x255   : > { %v2835_v61 = vrot.slane %v2834_v60, 2  ;;  %v2790_v4 = vadd.f32 %v2789_v55, %v2513_v62  ;;  %1573 = vmatmul.bf16.gmra.mxu2 %v5756_v6  ;;  %1751 = vmatmul.bf16.gmra.mxu0 %v5756_v6  ;;  %v2209_v26 = vmin.f32 %v1889_v47, 6.0 }
 0x256   : > { %v2514_v0 = vmin.f32 %v2194_v54, 6.0  ;;  %v2856_v44 = vrot.slane %v2855_v43, 2  ;;  %1840 = vmatmul.bf16.gmra.mxu1 %v5756_v6  ;;  %v2210_v28 = vmin.f32 %v1890_v12, 6.0 }
 0x257   : > { %v2836_v9 = vadd.f32 %v2835_v61, %v2834_v60  ;;  %v2791_v56 = vrot.slane %v2790_v4, 4 }
 0x258   : > { %v2811_v7 = vadd.f32 %v2810_v63, %v2514_v0  ;;  %1662 = vmatmul.bf16.gmra.mxu3 %v5756_v6  ;;  %v2857_v11 = vadd.f32 %v2856_v44, %v2855_v43  ;;  %v1534_v15 = vpop.f32.mrf.mxu2 }
 0x259   : > { %v2792_v16 = vadd.f32 %v2791_v56, %v2790_v4  ;;  %v2837_v17 = vrot.slane %v2836_v9, 1  ;;  %v1887_v3 = vmax.f32 %v1534_v15, 0.0 }
 0x25a   : > { %v2812_v57 = vrot.slane %v2811_v7, 4  ;;  %v2858_v19 = vrot.slane %v2857_v11, 1  ;;  %v1714_v21 = vpop.f32.mrf.mxu0 }
 0x25b   : > { %v1623_v39 = vpop.f32.mrf.mxu3  ;;  %v2793_v23 = vrot.slane %v2792_v16, 2  ;;  %v1899_v27 = vmax.f32 %v1714_v21, 0.0  ;;  %v1803_v10 = vpop.f32.mrf.mxu1  ;;  %v2838_v22 = vadd.f32 %v2837_v17, %v2836_v9  ;;  %v2207_v50 = vmin.f32 %v1887_v3, 6.0 }
 0x25c   : > { %v2813_v20 = vadd.f32 %v2812_v57, %v2811_v7  ;;  %v2859_v59 = vadd.f32 %v2858_v19, %v2857_v11  ;;  %v1900_v29 = vmax.f32 %v1803_v10, 0.0  ;;  %v1888_v2 = vmax.f32 %v1623_v39, 0.0  ;;  %v2521_v39 = vld [vmem:[#allocation2] sm:$0xff] }
 0x25d   : > { %v2794_v30 = vadd.f32 %v2793_v23, %v2792_v16  ;;  %v2219_v53 = vmin.f32 %v1899_v27, 6.0 }
 0x25e   : > { %v2814_v32 = vrot.slane %v2813_v20, 2  ;;  %v2974_v34 = vrot.slane %v2859_v59, 6  ;;  %v2220_v36 = vmin.f32 %v1900_v29, 6.0  ;;  %v2208_v54 = vmin.f32 %v1888_v2, 6.0  ;;  %v5758_v2 = vld [vmem:[%s5928_s8 + $0x50] sm:$0xff] }
 0x25f   : > { %v2795_v37 = vrot.slane %v2794_v30, 1  ;;  %v2692_v1 = vadd.f32 %v2219_v53, %v2209_v26 }
 0x260   : > { %v2815_v35 = vadd.f32 %v2814_v32, %v2813_v20  ;;  %v6577_v38 = vsel %vm2978_vm0, %v2838_v22, %v2974_v34  ;;  %v2713_v41 = vadd.f32 %v2220_v36, %v2210_v28  ;;  %v1536_v13 = vpop.f32.mrf.mxu2 }
 0x261   : > { %v2796_v42 = vadd.f32 %v2795_v37, %v2794_v30  ;;  %v1897_v45 = vmax.f32 %v1536_v13, 0.0 }
 0x262   : > { %v2816_v40 = vrot.slane %v2815_v35, 1  ;;  %v1717_v24 = vpop.f32.mrf.mxu0 }
 0x263   : > { %v1625_v14 = vpop.f32.mrf.mxu3  ;;  %v2972_v49 = vrot.slane %v2796_v42, 4  ;;  %v2217_v25 = vmin.f32 %v1897_v45, 6.0  ;;  %v1909_v51 = vmax.f32 %v1717_v24, 0.0  ;;  %v1806_v31 = vpop.f32.mrf.mxu1 }
 0x264   : > { %v2817_v46 = vadd.f32 %v2816_v40, %v2815_v35  ;;  %v1898_v18 = vmax.f32 %v1625_v14, 0.0  ;;  %v1910_v55 = vmax.f32 %v1806_v31, 0.0 }
 0x265   : > { %v2650_v60 = vadd.f32 %v2217_v25, %v2207_v50  ;;  %v2229_v62 = vmin.f32 %v1909_v51, 6.0  ;;  %1578 = vmatmul.bf16.gmra.mxu2 %v5757_v58  ;;  %1756 = vmatmul.bf16.gmra.mxu0 %v5757_v58 }
 0x266   : > { %v2973_v52 = vrot.slane %v2817_v46, 2  ;;  %v2218_v33 = vmin.f32 %v1898_v18, 6.0  ;;  %v2230_v0 = vmin.f32 %v1910_v55, 6.0  ;;  %1845 = vmatmul.bf16.gmra.mxu1 %v5757_v58 }
 0x267   : > { %v2693_v4 = vadd.f32 %v2692_v1, %v2229_v62 }
 0x268   : > { %v2989_v63 = vsel %vm2980_vm1, %v2972_v49, %v2973_v52  ;;  %v2671_v43 = vadd.f32 %v2218_v33, %v2208_v54  ;;  %1667 = vmatmul.bf16.gmra.mxu3 %v5757_v58  ;;  %v2714_v44 = vadd.f32 %v2713_v41, %v2230_v0  ;;  %v1539_v7 = vpop.f32.mrf.mxu2 }
 0x269   : > { %v2990_v61 = vsel %vm2982_vm2, %v6449_v8, %v2989_v63  ;;  %v1907_v9 = vmax.f32 %v1539_v7, 0.0 }
 0x26a   : > { %v2999_v6 = vrot.slane %v2990_v61, 7  ;;  %v1719_v11 = vpop.f32.mrf.mxu0 }
 0x26b   : > { %v1628_v56 = vpop.f32.mrf.mxu3  ;;  %v2227_v12 = vmin.f32 %v1907_v9, 6.0  ;;  %v1919_v15 = vmax.f32 %v1719_v11, 0.0  ;;  %v1808_v16 = vpop.f32.mrf.mxu1 }
 0x26c   : > { %v1908_v47 = vmax.f32 %v1628_v56, 0.0  ;;  %v3001_v57 = vsel %vm3000_vm3, %v2999_v6, %v6513_v5  ;;  %v1920_v19 = vmax.f32 %v1808_v16, 0.0 }
 0x26d   : > { %v3003_v8 = vsel %vm3002_vm4, %v2999_v6, %v3001_v57  ;;  %v2651_v21 = vadd.f32 %v2650_v60, %v2227_v12  ;;  %v2239_v23 = vmin.f32 %v1919_v15, 6.0  ;;  %v5759_v57 = vld [vmem:[%s5928_s8 + $0x58] sm:$0xff] }
 0x26e   : > { %v2228_v17 = vmin.f32 %v1908_v47, 6.0  ;;  %v3005_v20 = vsel %vm3004_vm5, %v2999_v6, %v3003_v8  ;;  %v2240_v10 = vmin.f32 %v1920_v19, 6.0 }
 0x26f   : > { %v3007_v26 = vsel %vm3006_vm6, %v2999_v6, %v3005_v20  ;;  %v2694_v5 = vadd.f32 %v2693_v4, %v2239_v23 }
 0x270   : > { %v2672_v27 = vadd.f32 %v2671_v43, %v2228_v17  ;;  %v3025_v59 = vadd.f32 %v3007_v26, %v2521_v39  ;;  %v2715_v32 = vadd.f32 %v2714_v44, %v2240_v10  ;;  %v1541_v28 = vpop.f32.mrf.mxu2 }
 0x271   : > { %v1917_v29 = vmax.f32 %v1541_v28, 0.0 }
 0x272   : > { %3028 = vst [vmem:[#allocation2] sm:$0xff] %v3025_v59  ;;  %v1722_v22 = vpop.f32.mrf.mxu0 }
 0x273   : > { %v1630_v30 = vpop.f32.mrf.mxu3  ;;  %v2237_v34 = vmin.f32 %v1917_v29, 6.0  ;;  %v1929_v35 = vmax.f32 %v1722_v22, 0.0  ;;  %v1811_v36 = vpop.f32.mrf.mxu1 }
 0x274   : > { %v1918_v53 = vmax.f32 %v1630_v30, 0.0  ;;  %v1930_v3 = vmax.f32 %v1811_v36, 0.0 }
 0x275   : > { %v2652_v1 = vadd.f32 %v2651_v21, %v2237_v34  ;;  %v2249_v40 = vmin.f32 %v1929_v35, 6.0  ;;  %1583 = vmatmul.bf16.gmra.mxu2 %v5758_v2  ;;  %1761 = vmatmul.bf16.gmra.mxu0 %v5758_v2 }
 0x276   : > { %v2238_v37 = vmin.f32 %v1918_v53, 6.0  ;;  %v2250_v13 = vmin.f32 %v1930_v3, 6.0  ;;  %1850 = vmatmul.bf16.gmra.mxu1 %v5758_v2 }
 0x277   : > { %v2695_v42 = vadd.f32 %v2694_v5, %v2249_v40 }
 0x278   : > { %v2673_v41 = vadd.f32 %v2672_v27, %v2238_v37  ;;  %1672 = vmatmul.bf16.gmra.mxu3 %v5758_v2  ;;  %v2716_v45 = vadd.f32 %v2715_v32, %v2250_v13  ;;  %v1544_v14 = vpop.f32.mrf.mxu2 }
 0x279   : > { %v1927_v46 = vmax.f32 %v1544_v14, 0.0 }
 0x27a   : > { %v1724_v49 = vpop.f32.mrf.mxu0 }
 0x27b   : > { %v1633_v18 = vpop.f32.mrf.mxu3  ;;  %v2247_v50 = vmin.f32 %v1927_v46, 6.0  ;;  %v1939_v25 = vmax.f32 %v1724_v49, 0.0  ;;  %v1813_v51 = vpop.f32.mrf.mxu1 }
 0x27c   : > { %v1928_v24 = vmax.f32 %v1633_v18, 0.0  ;;  %v1940_v52 = vmax.f32 %v1813_v51, 0.0 }
 0x27d   : > { %v2653_v54 = vadd.f32 %v2652_v1, %v2247_v50  ;;  %v2259_v33 = vmin.f32 %v1939_v25, 6.0 }
 0x27e   : > { %v2248_v31 = vmin.f32 %v1928_v24, 6.0  ;;  %v2260_v60 = vmin.f32 %v1940_v52, 6.0 }
 0x27f   : > { %v2696_v62 = vadd.f32 %v2695_v42, %v2259_v33 }
 0x280   : > { %v2674_v55 = vadd.f32 %v2673_v41, %v2248_v31  ;;  %v2717_v58 = vadd.f32 %v2716_v45, %v2260_v60  ;;  %v1546_v63 = vpop.f32.mrf.mxu2  ;;  %v5760_v45 = vld [vmem:[%s5928_s8 + $0x60] sm:$0xff] }
 0x281   : > { %v1937_v43 = vmax.f32 %v1546_v63, 0.0 }
 0x282   : > { %v1727_v4 = vpop.f32.mrf.mxu0 }
 0x283   : > { %v1635_v0 = vpop.f32.mrf.mxu3  ;;  %v2257_v6 = vmin.f32 %v1937_v43, 6.0  ;;  %v1949_v44 = vmax.f32 %v1727_v4, 0.0  ;;  %v1816_v7 = vpop.f32.mrf.mxu1 }
 0x284   : > { %v1938_v61 = vmax.f32 %v1635_v0, 0.0  ;;  %v1950_v56 = vmax.f32 %v1816_v7, 0.0 }
 0x285   : > { %v2654_v47 = vadd.f32 %v2653_v54, %v2257_v6  ;;  %v2269_v11 = vmin.f32 %v1949_v44, 6.0  ;;  %1588 = vmatmul.bf16.gmra.mxu2 %v5759_v57  ;;  %1766 = vmatmul.bf16.gmra.mxu0 %v5759_v57 }
 0x286   : > { %v2258_v9 = vmin.f32 %v1938_v61, 6.0  ;;  %v2270_v15 = vmin.f32 %v1950_v56, 6.0  ;;  %1855 = vmatmul.bf16.gmra.mxu1 %v5759_v57 }
 0x287   : > { %v2697_v16 = vadd.f32 %v2696_v62, %v2269_v11 }
 0x288   : > { %v2675_v12 = vadd.f32 %v2674_v55, %v2258_v9  ;;  %1677 = vmatmul.bf16.gmra.mxu3 %v5759_v57  ;;  %v2718_v39 = vadd.f32 %v2717_v58, %v2270_v15  ;;  %v1549_v8 = vpop.f32.mrf.mxu2 }
 0x289   : > { %v1947_v17 = vmax.f32 %v1549_v8, 0.0 }
 0x28a   : > { %v1729_v21 = vpop.f32.mrf.mxu0 }
 0x28b   : > { %v1638_v19 = vpop.f32.mrf.mxu3  ;;  %v2267_v23 = vmin.f32 %v1947_v17, 6.0  ;;  %v1959_v26 = vmax.f32 %v1729_v21, 0.0  ;;  %v1818_v27 = vpop.f32.mrf.mxu1 }
 0x28c   : > { %v1948_v20 = vmax.f32 %v1638_v19, 0.0  ;;  %v1960_v59 = vmax.f32 %v1818_v27, 0.0 }
 0x28d   : > { %v2655_v5 = vadd.f32 %v2654_v47, %v2267_v23  ;;  %v2279_v32 = vmin.f32 %v1959_v26, 6.0 }
 0x28e   : > { %v2268_v10 = vmin.f32 %v1948_v20, 6.0  ;;  %v2280_v29 = vmin.f32 %v1960_v59, 6.0 }
 0x28f   : > { %v2698_v30 = vadd.f32 %v2697_v16, %v2279_v32 }
 0x290   : > { %v2676_v28 = vadd.f32 %v2675_v12, %v2268_v10  ;;  %v2719_v53 = vadd.f32 %v2718_v39, %v2280_v29  ;;  %v1551_v22 = vpop.f32.mrf.mxu2  ;;  %v5761_v39 = vld [vmem:[%s5928_s8 + $0x68] sm:$0xff] }
 0x291   : > { %v1957_v34 = vmax.f32 %v1551_v22, 0.0 }
 0x292   : > { %v1732_v37 = vpop.f32.mrf.mxu0 }
 0x293   : > { %v1640_v35 = vpop.f32.mrf.mxu3  ;;  %v2277_v3 = vmin.f32 %v1957_v34, 6.0  ;;  %v1969_v1 = vmax.f32 %v1732_v37, 0.0  ;;  %v1821_v40 = vpop.f32.mrf.mxu1 }
 0x294   : > { %v1958_v36 = vmax.f32 %v1640_v35, 0.0  ;;  %v1970_v41 = vmax.f32 %v1821_v40, 0.0 }
 0x295   : > { %v2656_v13 = vadd.f32 %v2655_v5, %v2277_v3  ;;  %v2289_v42 = vmin.f32 %v1969_v1, 6.0  ;;  %1593 = vmatmul.bf16.gmra.mxu2 %v5760_v45  ;;  %1771 = vmatmul.bf16.gmra.mxu0 %v5760_v45 }
 0x296   : > { %v2278_v2 = vmin.f32 %v1958_v36, 6.0  ;;  %v2290_v46 = vmin.f32 %v1970_v41, 6.0  ;;  %1860 = vmatmul.bf16.gmra.mxu1 %v5760_v45 }
 0x297   : > { %v2699_v18 = vadd.f32 %v2698_v30, %v2289_v42 }
 0x298   : > { %v2677_v14 = vadd.f32 %v2676_v28, %v2278_v2  ;;  %1682 = vmatmul.bf16.gmra.mxu3 %v5760_v45  ;;  %v2720_v24 = vadd.f32 %v2719_v53, %v2290_v46  ;;  %v1554_v49 = vpop.f32.mrf.mxu2 }
 0x299   : > { %v1967_v50 = vmax.f32 %v1554_v49, 0.0 }
 0x29a   : > { %v1734_v31 = vpop.f32.mrf.mxu0 }
 0x29b   : > { %v1643_v25 = vpop.f32.mrf.mxu3  ;;  %v2287_v52 = vmin.f32 %v1967_v50, 6.0  ;;  %v1979_v54 = vmax.f32 %v1734_v31, 0.0  ;;  %v1823_v33 = vpop.f32.mrf.mxu1 }
 0x29c   : > { %v1968_v51 = vmax.f32 %v1643_v25, 0.0  ;;  %v1980_v60 = vmax.f32 %v1823_v33, 0.0 }
 0x29d   : > { %v2657_v62 = vadd.f32 %v2656_v13, %v2287_v52  ;;  %v2299_v58 = vmin.f32 %v1979_v54, 6.0 }
 0x29e   : > { %v2288_v55 = vmin.f32 %v1968_v51, 6.0  ;;  %v2300_v43 = vmin.f32 %v1980_v60, 6.0 }
 0x29f   : > { %v2700_v0 = vadd.f32 %v2699_v18, %v2299_v58 }
 0x2a0   : > { %v2678_v63 = vadd.f32 %v2677_v14, %v2288_v55  ;;  %v2721_v61 = vadd.f32 %v2720_v24, %v2300_v43  ;;  %v1556_v4 = vpop.f32.mrf.mxu2  ;;  %v5762_v24 = vld [vmem:[%s5928_s8 + $0x70] sm:$0xff] }
 0x2a1   : > { %v1977_v6 = vmax.f32 %v1556_v4, 0.0 }
 0x2a2   : > { %v1737_v9 = vpop.f32.mrf.mxu0 }
 0x2a3   : > { %v1645_v44 = vpop.f32.mrf.mxu3  ;;  %v2297_v56 = vmin.f32 %v1977_v6, 6.0  ;;  %v1989_v47 = vmax.f32 %v1737_v9, 0.0  ;;  %v1826_v11 = vpop.f32.mrf.mxu1 }
 0x2a4   : > { %v1978_v7 = vmax.f32 %v1645_v44, 0.0  ;;  %v1990_v12 = vmax.f32 %v1826_v11, 0.0 }
 0x2a5   : > { %v2658_v15 = vadd.f32 %v2657_v62, %v2297_v56  ;;  %v2309_v16 = vmin.f32 %v1989_v47, 6.0  ;;  %1598 = vmatmul.bf16.gmra.mxu2 %v5761_v39  ;;  %1776 = vmatmul.bf16.gmra.mxu0 %v5761_v39 }
 0x2a6   : > { %v2298_v57 = vmin.f32 %v1978_v7, 6.0  ;;  %v2310_v17 = vmin.f32 %v1990_v12, 6.0  ;;  %1865 = vmatmul.bf16.gmra.mxu1 %v5761_v39 }
 0x2a7   : > { %v2701_v19 = vadd.f32 %v2700_v0, %v2309_v16 }
 0x2a8   : > { %v2679_v8 = vadd.f32 %v2678_v63, %v2298_v57  ;;  %1687 = vmatmul.bf16.gmra.mxu3 %v5761_v39  ;;  %v2722_v20 = vadd.f32 %v2721_v61, %v2310_v17  ;;  %v1559_v21 = vpop.f32.mrf.mxu2 }
 0x2a9   : > { %v1987_v23 = vmax.f32 %v1559_v21, 0.0 }
 0x2aa   : > { %v1739_v10 = vpop.f32.mrf.mxu0 }
 0x2ab   : > { %v1648_v26 = vpop.f32.mrf.mxu3  ;;  %v2307_v59 = vmin.f32 %v1987_v23, 6.0  ;;  %v1999_v5 = vmax.f32 %v1739_v10, 0.0  ;;  %v1828_v32 = vpop.f32.mrf.mxu1 }
 0x2ac   : > { %v1988_v27 = vmax.f32 %v1648_v26, 0.0  ;;  %v2000_v29 = vmax.f32 %v1828_v32, 0.0 }
 0x2ad   : > { %v2659_v30 = vadd.f32 %v2658_v15, %v2307_v59  ;;  %v2319_v53 = vmin.f32 %v1999_v5, 6.0 }
 0x2ae   : > { %v2308_v28 = vmin.f32 %v1988_v27, 6.0  ;;  %v2320_v34 = vmin.f32 %v2000_v29, 6.0 }
 0x2af   : > { %v2702_v35 = vadd.f32 %v2701_v19, %v2319_v53 }
 0x2b0   : > { %v2680_v22 = vadd.f32 %v2679_v8, %v2308_v28  ;;  %v2723_v36 = vadd.f32 %v2722_v20, %v2320_v34  ;;  %v1561_v37 = vpop.f32.mrf.mxu2  ;;  %v5763_v20 = vld [vmem:[%s5928_s8 + $0x78] sm:$0xff] }
 0x2b1   : > { %v1997_v3 = vmax.f32 %v1561_v37, 0.0 }
 0x2b2   : > { %v1742_v2 = vpop.f32.mrf.mxu0 }
 0x2b3   : > { %v1650_v1 = vpop.f32.mrf.mxu3  ;;  %v2317_v41 = vmin.f32 %v1997_v3, 6.0  ;;  %v2009_v13 = vmax.f32 %v1742_v2, 0.0  ;;  %v1831_v42 = vpop.f32.mrf.mxu1 }
 0x2b4   : > { %v1998_v40 = vmax.f32 %v1650_v1, 0.0  ;;  %v2010_v14 = vmax.f32 %v1831_v42, 0.0 }
 0x2b5   : > { %v2660_v46 = vadd.f32 %v2659_v30, %v2317_v41  ;;  %v2329_v18 = vmin.f32 %v2009_v13, 6.0  ;;  %1603 = vmatmul.bf16.gmra.mxu2 %v5762_v24  ;;  %1781 = vmatmul.bf16.gmra.mxu0 %v5762_v24 }
 0x2b6   : > { %v2318_v45 = vmin.f32 %v1998_v40, 6.0  ;;  %v2330_v50 = vmin.f32 %v2010_v14, 6.0  ;;  %1870 = vmatmul.bf16.gmra.mxu1 %v5762_v24 }
 0x2b7   : > { %v2703_v25 = vadd.f32 %v2702_v35, %v2329_v18 }
 0x2b8   : > { %v2681_v49 = vadd.f32 %v2680_v22, %v2318_v45  ;;  %1692 = vmatmul.bf16.gmra.mxu3 %v5762_v24  ;;  %v2724_v51 = vadd.f32 %v2723_v36, %v2330_v50  ;;  %v1564_v31 = vpop.f32.mrf.mxu2 }
 0x2b9   : > { %v2007_v52 = vmax.f32 %v1564_v31, 0.0 }
 0x2ba   : > { %v1744_v55 = vpop.f32.mrf.mxu0 }
 0x2bb   : > { %v1653_v54 = vpop.f32.mrf.mxu3  ;;  %v2327_v60 = vmin.f32 %v2007_v52, 6.0  ;;  %v2019_v62 = vmax.f32 %v1744_v55, 0.0  ;;  %v1833_v58 = vpop.f32.mrf.mxu1 }
 0x2bc   : > { %v2008_v33 = vmax.f32 %v1653_v54, 0.0  ;;  %v2020_v43 = vmax.f32 %v1833_v58, 0.0 }
 0x2bd   : > { %v2661_v0 = vadd.f32 %v2660_v46, %v2327_v60  ;;  %v2339_v61 = vmin.f32 %v2019_v62, 6.0 }
 0x2be   : > { %v2328_v63 = vmin.f32 %v2008_v33, 6.0  ;;  %v2340_v6 = vmin.f32 %v2020_v43, 6.0 }
 0x2bf   : > { %v2704_v44 = vadd.f32 %v2703_v25, %v2339_v61 }
 0x2c0   : > { %v2682_v4 = vadd.f32 %v2681_v49, %v2328_v63  ;;  %v2725_v7 = vadd.f32 %v2724_v51, %v2340_v6  ;;  %v1566_v9 = vpop.f32.mrf.mxu2 }
 0x2c1   : > { %v2017_v56 = vmax.f32 %v1566_v9, 0.0 }
 0x2c2   : > { %v1747_v57 = vpop.f32.mrf.mxu0 }
 0x2c3   : > { %v1655_v47 = vpop.f32.mrf.mxu3  ;;  %v2337_v12 = vmin.f32 %v2017_v56, 6.0  ;;  %v2029_v15 = vmax.f32 %v1747_v57, 0.0  ;;  %v1836_v16 = vpop.f32.mrf.mxu1 }
 0x2c4   : > { %v2018_v11 = vmax.f32 %v1655_v47, 0.0  ;;  %v2030_v8 = vmax.f32 %v1836_v16, 0.0 }
 0x2c5   : > { %v2662_v17 = vadd.f32 %v2661_v0, %v2337_v12  ;;  %v2349_v19 = vmin.f32 %v2029_v15, 6.0  ;;  %1608 = vmatmul.bf16.gmra.mxu2 %v5763_v20  ;;  %1786 = vmatmul.bf16.gmra.mxu0 %v5763_v20 }
 0x2c6   : > { %v2338_v39 = vmin.f32 %v2018_v11, 6.0  ;;  %v2350_v23 = vmin.f32 %v2030_v8, 6.0  ;;  %1875 = vmatmul.bf16.gmra.mxu1 %v5763_v20 }
 0x2c7   : > { %v2705_v26 = vadd.f32 %v2704_v44, %v2349_v19 }
 0x2c8   : > { %v2683_v21 = vadd.f32 %v2682_v4, %v2338_v39  ;;  %1697 = vmatmul.bf16.gmra.mxu3 %v5763_v20  ;;  %v2726_v27 = vadd.f32 %v2725_v7, %v2350_v23  ;;  %v1569_v10 = vpop.f32.mrf.mxu2 }
 0x2c9   : > { %v2027_v59 = vmax.f32 %v1569_v10, 0.0 }
 0x2ca   : > { %v1749_v28 = vpop.f32.mrf.mxu0 }
 0x2cb   : > { %v1658_v5 = vpop.f32.mrf.mxu3  ;;  %v2347_v29 = vmin.f32 %v2027_v59, 6.0  ;;  %v2039_v30 = vmax.f32 %v1749_v28, 0.0  ;;  %v1838_v53 = vpop.f32.mrf.mxu1 }
 0x2cc   : > { %v2028_v32 = vmax.f32 %v1658_v5, 0.0  ;;  %v2040_v34 = vmax.f32 %v1838_v53, 0.0 }
 0x2cd   : > { %v2663_v35 = vadd.f32 %v2662_v17, %v2347_v29  ;;  %v2359_v36 = vmin.f32 %v2039_v30, 6.0 }
 0x2ce   : > { %v2348_v22 = vmin.f32 %v2028_v32, 6.0  ;;  %v2360_v3 = vmin.f32 %v2040_v34, 6.0 }
 0x2cf   : > { %v2706_v1 = vadd.f32 %v2705_v26, %v2359_v36 }
 0x2d0   : > { %v2684_v37 = vadd.f32 %v2683_v21, %v2348_v22  ;;  %v2727_v40 = vadd.f32 %v2726_v27, %v2360_v3  ;;  %v1571_v2 = vpop.f32.mrf.mxu2 }
 0x2d1   : > { %v2707_v41 = vrot.slane %v2706_v1, 4  ;;  %v2037_v13 = vmax.f32 %v1571_v2, 0.0 }
 0x2d2   : > { %v2728_v45 = vrot.slane %v2727_v40, 4  ;;  %v1752_v46 = vpop.f32.mrf.mxu0 }
 0x2d3   : > { %v1660_v42 = vpop.f32.mrf.mxu3  ;;  %v2708_v18 = vadd.f32 %v2707_v41, %v2706_v1  ;;  %v2357_v24 = vmin.f32 %v2037_v13, 6.0  ;;  %v1841_v49 = vpop.f32.mrf.mxu1  ;;  %v2049_v60 = vmax.f32 %v1752_v46, 0.0 }
 0x2d4   : > { %v2038_v14 = vmax.f32 %v1660_v42, 0.0  ;;  %v2729_v50 = vadd.f32 %v2728_v45, %v2727_v40  ;;  %v2050_v63 = vmax.f32 %v1841_v49, 0.0 }
 0x2d5   : > { %v2709_v51 = vrot.slane %v2708_v18, 2  ;;  %v2664_v31 = vadd.f32 %v2663_v35, %v2357_v24  ;;  %v2369_v56 = vmin.f32 %v2049_v60, 6.0 }
 0x2d6   : > { %v2358_v25 = vmin.f32 %v2038_v14, 6.0  ;;  %v2730_v52 = vrot.slane %v2729_v50, 2  ;;  %v2370_v15 = vmin.f32 %v2050_v63, 6.0 }
 0x2d7   : > { %v2710_v33 = vadd.f32 %v2709_v51, %v2708_v18  ;;  %v2665_v55 = vrot.slane %v2664_v31, 4 }
 0x2d8   : > { %v2685_v54 = vadd.f32 %v2684_v37, %v2358_v25  ;;  %v2731_v62 = vadd.f32 %v2730_v52, %v2729_v50  ;;  %v1574_v43 = vpop.f32.mrf.mxu2 }
 0x2d9   : > { %v2666_v0 = vadd.f32 %v2665_v55, %v2664_v31  ;;  %v2711_v4 = vrot.slane %v2710_v33, 1  ;;  %v2047_v26 = vmax.f32 %v1574_v43, 0.0 }
 0x2da   : > { %v2686_v58 = vrot.slane %v2685_v54, 4  ;;  %v2732_v6 = vrot.slane %v2731_v62, 1  ;;  %v1754_v7 = vpop.f32.mrf.mxu0 }
 0x2db   : > { %v1663_v61 = vpop.f32.mrf.mxu3  ;;  %v2667_v9 = vrot.slane %v2666_v0, 2  ;;  %v2059_v47 = vmax.f32 %v1754_v7, 0.0  ;;  %v1843_v11 = vpop.f32.mrf.mxu1  ;;  %v2712_v17 = vadd.f32 %v2711_v4, %v2710_v33  ;;  %v2367_v37 = vmin.f32 %v2047_v26, 6.0 }
 0x2dc   : > { %v2687_v44 = vadd.f32 %v2686_v58, %v2685_v54  ;;  %v2733_v57 = vadd.f32 %v2732_v6, %v2731_v62  ;;  %v2060_v16 = vmax.f32 %v1843_v11, 0.0  ;;  %v2048_v5 = vmax.f32 %v1663_v61, 0.0 }
 0x2dd   : > { %v2668_v39 = vadd.f32 %v2667_v9, %v2666_v0  ;;  %v2379_v8 = vmin.f32 %v2059_v47, 6.0 }
 0x2de   : > { %v2688_v12 = vrot.slane %v2687_v44, 2  ;;  %v2970_v19 = vrot.slane %v2733_v57, 6  ;;  %v2380_v21 = vmin.f32 %v2060_v16, 6.0  ;;  %v2368_v41 = vmin.f32 %v2048_v5, 6.0 }
 0x2df   : > { %v2669_v23 = vrot.slane %v2668_v39, 1  ;;  %v2902_v27 = vadd.f32 %v2379_v8, %v2369_v56 }
 0x2e0   : > { %v2689_v20 = vadd.f32 %v2688_v12, %v2687_v44  ;;  %v6595_v10 = vsel %vm2978_vm0, %v2712_v17, %v2970_v19  ;;  %v2923_v32 = vadd.f32 %v2380_v21, %v2370_v15  ;;  %v1576_v28 = vpop.f32.mrf.mxu2 }
 0x2e1   : > { %v2670_v29 = vadd.f32 %v2669_v23, %v2668_v39  ;;  %v2057_v30 = vmax.f32 %v1576_v28, 0.0 }
 0x2e2   : > { %v2690_v59 = vrot.slane %v2689_v20, 1  ;;  %v1757_v35 = vpop.f32.mrf.mxu0 }
 0x2e3   : > { %v1665_v53 = vpop.f32.mrf.mxu3  ;;  %v2968_v36 = vrot.slane %v2670_v29, 4  ;;  %v2377_v3 = vmin.f32 %v2057_v30, 6.0  ;;  %v2069_v1 = vmax.f32 %v1757_v35, 0.0  ;;  %v1846_v40 = vpop.f32.mrf.mxu1 }
 0x2e4   : > { %v2691_v22 = vadd.f32 %v2690_v59, %v2689_v20  ;;  %v2058_v34 = vmax.f32 %v1665_v53, 0.0  ;;  %v2070_v42 = vmax.f32 %v1846_v40, 0.0 }
 0x2e5   : > { %v2860_v45 = vadd.f32 %v2377_v3, %v2367_v37  ;;  %v2389_v14 = vmin.f32 %v2069_v1, 6.0 }
 0x2e6   : > { %v2969_v2 = vrot.slane %v2691_v22, 2  ;;  %v2378_v13 = vmin.f32 %v2058_v34, 6.0  ;;  %v2390_v24 = vmin.f32 %v2070_v42, 6.0 }
 0x2e7   : > { %v2903_v50 = vadd.f32 %v2902_v27, %v2389_v14 }
 0x2e8   : > { %v2985_v46 = vsel %vm2980_vm1, %v2968_v36, %v2969_v2  ;;  %v2881_v18 = vadd.f32 %v2378_v13, %v2368_v41  ;;  %v2924_v25 = vadd.f32 %v2923_v32, %v2390_v24  ;;  %v1579_v51 = vpop.f32.mrf.mxu2 }
 0x2e9   : > { %v6600_v49 = vsel %vm2982_vm2, %v6507_v48, %v2985_v46  ;;  %v2067_v31 = vmax.f32 %v1579_v51, 0.0 }
 0x2ea   : > { %v1759_v33 = vpop.f32.mrf.mxu0 }
 0x2eb   : > { %v1668_v52 = vpop.f32.mrf.mxu3  ;;  %v2387_v55 = vmin.f32 %v2067_v31, 6.0  ;;  %v2079_v60 = vmax.f32 %v1759_v33, 0.0  ;;  %v1848_v62 = vpop.f32.mrf.mxu1 }
 0x2ec   : > { %v2068_v54 = vmax.f32 %v1668_v52, 0.0  ;;  %v2080_v63 = vmax.f32 %v1848_v62, 0.0 }
 0x2ed   : > { %v2861_v43 = vadd.f32 %v2860_v45, %v2387_v55  ;;  %v2399_v0 = vmin.f32 %v2079_v60, 6.0 }
 0x2ee   : > { %v2388_v58 = vmin.f32 %v2068_v54, 6.0  ;;  %v2400_v4 = vmin.f32 %v2080_v63, 6.0 }
 0x2ef   : > { %v2904_v6 = vadd.f32 %v2903_v50, %v2399_v0 }
 0x2f0   : > { %v2882_v61 = vadd.f32 %v2881_v18, %v2388_v58  ;;  %v2925_v44 = vadd.f32 %v2924_v25, %v2400_v4  ;;  %v1581_v48 = vpop.f32.mrf.mxu2 }
 0x2f1   : > { %v2077_v7 = vmax.f32 %v1581_v48, 0.0 }
 0x2f2   : > { %v1762_v47 = vpop.f32.mrf.mxu0 }
 0x2f3   : > { %v1670_v9 = vpop.f32.mrf.mxu3  ;;  %v2397_v11 = vmin.f32 %v2077_v7, 6.0  ;;  %v2089_v57 = vmax.f32 %v1762_v47, 0.0  ;;  %v1851_v12 = vpop.f32.mrf.mxu1 }
 0x2f4   : > { %v2078_v56 = vmax.f32 %v1670_v9, 0.0  ;;  %v2090_v16 = vmax.f32 %v1851_v12, 0.0 }
 0x2f5   : > { %v2862_v39 = vadd.f32 %v2861_v43, %v2397_v11  ;;  %v2409_v8 = vmin.f32 %v2089_v57, 6.0 }
 0x2f6   : > { %v2398_v15 = vmin.f32 %v2078_v56, 6.0  ;;  %v2410_v19 = vmin.f32 %v2090_v16, 6.0 }
 0x2f7   : > { %v2905_v20 = vadd.f32 %v2904_v6, %v2409_v8 }
 0x2f8   : > { %v2883_v17 = vadd.f32 %v2882_v61, %v2398_v15  ;;  %v2926_v21 = vadd.f32 %v2925_v44, %v2410_v19  ;;  %v1584_v23 = vpop.f32.mrf.mxu2 }
 0x2f9   : > { %v2087_v26 = vmax.f32 %v1584_v23, 0.0 }
 0x2fa   : > { %v1764_v5 = vpop.f32.mrf.mxu0 }
 0x2fb   : > { %v1673_v27 = vpop.f32.mrf.mxu3  ;;  %v2407_v32 = vmin.f32 %v2087_v26, 6.0  ;;  %v1853_v28 = vpop.f32.mrf.mxu1  ;;  %v2099_v55 = vmax.f32 %v1764_v5, 0.0 }
 0x2fc   : > { %v2088_v59 = vmax.f32 %v1673_v27, 0.0  ;;  %v2100_v60 = vmax.f32 %v1853_v28, 0.0 }
 0x2fd   : > { %v2863_v30 = vadd.f32 %v2862_v39, %v2407_v32  ;;  %v2419_v61 = vmin.f32 %v2099_v55, 6.0 }
 0x2fe   : > { %v2408_v29 = vmin.f32 %v2088_v59, 6.0  ;;  %v2420_v4 = vmin.f32 %v2100_v60, 6.0 }
 0x2ff   : > { %v2906_v16 = vadd.f32 %v2905_v20, %v2419_v61 }
 0x300   : > { %v2884_v53 = vadd.f32 %v2883_v17, %v2408_v29  ;;  %v1586_v22 = vpop.f32.mrf.mxu2  ;;  %v2927_v39 = vadd.f32 %v2926_v21, %v2420_v4 }
 0x301   : > { %v2097_v62 = vmax.f32 %v1586_v22, 0.0 }
 0x302   : > { %v1767_v35 = vpop.f32.mrf.mxu0 }
 0x303   : > { %v1675_v34 = vpop.f32.mrf.mxu3  ;;  %v1856_v36 = vpop.f32.mrf.mxu1  ;;  %v2109_v43 = vmax.f32 %v1767_v35, 0.0  ;;  %v2417_v48 = vmin.f32 %v2097_v62, 6.0 }
 0x304   : > { %v2098_v58 = vmax.f32 %v1675_v34, 0.0  ;;  %v2110_v6 = vmax.f32 %v1856_v36, 0.0 }
 0x305   : > { %v2429_v12 = vmin.f32 %v2109_v43, 6.0  ;;  %v2864_v19 = vadd.f32 %v2863_v30, %v2417_v48 }
 0x306   : > { %v2418_v47 = vmin.f32 %v2098_v58, 6.0  ;;  %v2430_v8 = vmin.f32 %v2110_v6, 6.0 }
 0x307   : > { %v2907_v22 = vadd.f32 %v2906_v16, %v2429_v12 }
 0x308   : > { %v1589_v37 = vpop.f32.mrf.mxu2  ;;  %v2885_v59 = vadd.f32 %v2884_v53, %v2418_v47  ;;  %v2928_v36 = vadd.f32 %v2927_v39, %v2430_v8 }
 0x309   : > { %v2107_v7 = vmax.f32 %v1589_v37, 0.0 }
 0x30a   : > { %v1769_v1 = vpop.f32.mrf.mxu0 }
 0x30b   : > { %v1678_v3 = vpop.f32.mrf.mxu3  ;;  %v1858_v40 = vpop.f32.mrf.mxu1  ;;  %v2119_v11 = vmax.f32 %v1769_v1, 0.0  ;;  %v2427_v23 = vmin.f32 %v2107_v7, 6.0 }
 0x30c   : > { %v2108_v9 = vmax.f32 %v1678_v3, 0.0  ;;  %v2120_v57 = vmax.f32 %v1858_v40, 0.0 }
 0x30d   : > { %v2439_v5 = vmin.f32 %v2119_v11, 6.0  ;;  %v2865_v1 = vadd.f32 %v2864_v19, %v2427_v23 }
 0x30e   : > { %v2428_v26 = vmin.f32 %v2108_v9, 6.0  ;;  %v2440_v32 = vmin.f32 %v2120_v57, 6.0 }
 0x310   : > { %v1591_v2 = vpop.f32.mrf.mxu2  ;;  %v2886_v40 = vadd.f32 %v2885_v59, %v2428_v26  ;;  %v2929_v55 = vadd.f32 %v2928_v36, %v2440_v32 }
 0x311   : > { %v2117_v15 = vmax.f32 %v1591_v2, 0.0 }
 0x312   : > { %v1772_v13 = vpop.f32.mrf.mxu0 }
 0x313   : > { %v1680_v41 = vpop.f32.mrf.mxu3  ;;  %v6602_v42 = vpop.f32.mrf.mxu1  ;;  %v2129_v27 = vmax.f32 %v1772_v13, 0.0  ;;  %v2437_v34 = vmin.f32 %v2117_v15, 6.0 }
 0x314   : > { %v2118_v17 = vmax.f32 %v1680_v41, 0.0  ;;  %v2130_v28 = vmax.f32 %v6602_v42, 0.0  ;;  %v2908_v42 = vadd.f32 %v2907_v22, %v2439_v5 }
 0x315   : > { %v2449_v2 = vmin.f32 %v2129_v27, 6.0  ;;  %v2866_v60 = vadd.f32 %v2865_v1, %v2437_v34 }
 0x316   : > { %v2438_v30 = vmin.f32 %v2118_v17, 6.0 }
 0x317   : > { %v2909_v6 = vadd.f32 %v2908_v42, %v2449_v2 }
 0x318   : > { %v6604_v45 = vpop.f32.mrf.mxu2 }
 0x319   : > { %v2127_v35 = vmax.f32 %v6604_v45, 0.0  ;;  %v2450_v45 = vmin.f32 %v2130_v28, 6.0 }
 0x31a   : > { %v6608_v46 = vpop.f32.mrf.mxu0 }
 0x31b   : > { %v6606_v14 = vpop.f32.mrf.mxu3  ;;  %v6610_v18 = vpop.f32.mrf.mxu1  ;;  %v2139_v37 = vmax.f32 %v6608_v46, 0.0  ;;  %v2447_v62 = vmin.f32 %v2127_v35, 6.0  ;;  %v2887_v46 = vadd.f32 %v2886_v40, %v2438_v30  ;;  %v2930_v9 = vadd.f32 %v2929_v55, %v2450_v45 }
 0x31c   : > { %v2128_v20 = vmax.f32 %v6606_v14, 0.0  ;;  %v2140_v53 = vmax.f32 %v6610_v18, 0.0 }
 0x31d   : > { %v2459_v61 = vmin.f32 %v2139_v37, 6.0  ;;  %v2867_v12 = vadd.f32 %v2866_v60, %v2447_v62 }
 0x31e   : > { %v2448_v58 = vmin.f32 %v2128_v20, 6.0  ;;  %v2460_v18 = vmin.f32 %v2140_v53, 6.0 }
 0x320   : > { %v6612_v24 = vpop.f32.mrf.mxu2  ;;  %v2931_v8 = vadd.f32 %v2930_v9, %v2460_v18 }
 0x321   : > { %v2137_v41 = vmax.f32 %v6612_v24, 0.0 }
 0x322   : > { %v6616_v25 = vpop.f32.mrf.mxu0 }
 0x323   : > { %v6614_v50 = vpop.f32.mrf.mxu3  ;;  %v6618_v51 = vpop.f32.mrf.mxu1  ;;  %v2149_v43 = vmax.f32 %v6616_v25, 0.0  ;;  %v2457_v48 = vmin.f32 %v2137_v41, 6.0  ;;  %v2888_v25 = vadd.f32 %v2887_v46, %v2448_v58 }
 0x324   : > { %v2138_v14 = vmax.f32 %v6614_v50, 0.0  ;;  %v2150_v4 = vmax.f32 %v6618_v51, 0.0  ;;  %v2910_v51 = vadd.f32 %v2909_v6, %v2459_v61 }
 0x325   : > { %v2469_v15 = vmin.f32 %v2149_v43, 6.0 }
 0x326   : > { %v2458_v47 = vmin.f32 %v2138_v14, 6.0  ;;  %v2470_v17 = vmin.f32 %v2150_v4, 6.0 }
 0x327   : > { %v2911_v28 = vadd.f32 %v2910_v51, %v2469_v15 }
 0x328   : > { %v6620_v31 = vpop.f32.mrf.mxu2  ;;  %v2889_v59 = vadd.f32 %v2888_v25, %v2458_v47  ;;  %v2932_v35 = vadd.f32 %v2931_v8, %v2470_v17 }
 0x329   : > { %v2147_v24 = vmax.f32 %v6620_v31, 0.0 }
 0x32a   : > { %v6624_v54 = vpop.f32.mrf.mxu0 }
 0x32b   : > { %v6622_v52 = vpop.f32.mrf.mxu3  ;;  %v6626_v33 = vpop.f32.mrf.mxu1  ;;  %v2159_v7 = vmax.f32 %v6624_v54, 0.0  ;;  %v2868_v54 = vadd.f32 %v2867_v12, %v2457_v48  ;;  %v2467_v23 = vmin.f32 %v2147_v24, 6.0 }
 0x32c   : > { %v2148_v50 = vmax.f32 %v6622_v52, 0.0  ;;  %v2160_v11 = vmax.f32 %v6626_v33, 0.0 }
 0x32d   : > { %v2479_v26 = vmin.f32 %v2159_v7, 6.0  ;;  %v2869_v30 = vadd.f32 %v2868_v54, %v2467_v23 }
 0x32e   : > { %v2468_v33 = vmin.f32 %v2148_v50, 6.0  ;;  %v2480_v5 = vmin.f32 %v2160_v11, 6.0 }
 0x32f   : > { %v2912_v37 = vadd.f32 %v2911_v28, %v2479_v26 }
 0x330   : > { %v6628_v63 = vpop.f32.mrf.mxu2  ;;  %v2890_v1 = vadd.f32 %v2889_v59, %v2468_v33  ;;  %v2933_v40 = vadd.f32 %v2932_v35, %v2480_v5 }
 0x331   : > { %v2157_v22 = vmax.f32 %v6628_v63, 0.0 }
 0x332   : > { %v6632_v44 = vpop.f32.mrf.mxu0 }
 0x333   : > { %v6630_v0 = vpop.f32.mrf.mxu3  ;;  %v6634_v56 = vpop.f32.mrf.mxu1  ;;  %v2169_v16 = vmax.f32 %v6632_v44, 0.0  ;;  %v2477_v42 = vmin.f32 %v2157_v22, 6.0 }
 0x334   : > { %v2170_v31 = vmax.f32 %v6634_v56, 0.0  ;;  %v2158_v20 = vmax.f32 %v6630_v0, 0.0 }
 0x335   : > { %v2489_v44 = vmin.f32 %v2169_v16, 6.0  ;;  %v2870_v7 = vadd.f32 %v2869_v30, %v2477_v42 }
 0x336   : > { %v2490_v36 = vmin.f32 %v2170_v31, 6.0  ;;  %v2478_v60 = vmin.f32 %v2158_v20, 6.0 }
 0x337   : > { %v2913_v63 = vadd.f32 %v2912_v37, %v2489_v44 }
 0x338   : > { %v6637_v29 = vpop.f32.mrf.mxu2  ;;  %v2934_v0 = vadd.f32 %v2933_v40, %v2490_v36  ;;  %v2891_v11 = vadd.f32 %v2890_v1, %v2478_v60 }
 0x339   : > { %v2167_v53 = vmax.f32 %v6637_v29, 0.0 }
 0x33a   : > { %v1784_v3 = vpop.f32.mrf.mxu0 }
 0x33b   : > { %v6641_v21 = vpop.f32.mrf.mxu3  ;;  %v1873_v13 = vpop.f32.mrf.mxu1  ;;  %v2179_v27 = vmax.f32 %v1784_v3, 0.0  ;;  %v2487_v46 = vmin.f32 %v2167_v53, 6.0 }
 0x33c   : > { %v2180_v32 = vmax.f32 %v1873_v13, 0.0  ;;  %v2168_v2 = vmax.f32 %v6641_v21, 0.0 }
 0x33d   : > { %v2499_v3 = vmin.f32 %v2179_v27, 6.0  ;;  %v2871_v15 = vadd.f32 %v2870_v7, %v2487_v46 }
 0x33e   : > { %v2500_v41 = vmin.f32 %v2180_v32, 6.0  ;;  %v2488_v6 = vmin.f32 %v2168_v2, 6.0 }
 0x33f   : > { %v2914_v61 = vadd.f32 %v2913_v63, %v2499_v3 }
 0x340   : > { %v1606_v57 = vpop.f32.mrf.mxu2  ;;  %v2935_v48 = vadd.f32 %v2934_v0, %v2500_v41  ;;  %v2892_v51 = vadd.f32 %v2891_v11, %v2488_v6 }
 0x341   : > { %v2177_v55 = vmax.f32 %v1606_v57, 0.0 }
 0x342   : > { %v1787_v19 = vpop.f32.mrf.mxu0 }
 0x343   : > { %v1695_v39 = vpop.f32.mrf.mxu3  ;;  %v1876_v52 = vpop.f32.mrf.mxu1  ;;  %v2189_v34 = vmax.f32 %v1787_v19, 0.0  ;;  %v2497_v9 = vmin.f32 %v2177_v55, 6.0 }
 0x344   : > { %v2190_v56 = vmax.f32 %v1876_v52, 0.0  ;;  %v2178_v62 = vmax.f32 %v1695_v39, 0.0 }
 0x345   : > { %v2509_v45 = vmin.f32 %v2189_v34, 6.0  ;;  %v2872_v19 = vadd.f32 %v2871_v15, %v2497_v9 }
 0x346   : > { %v2510_v58 = vmin.f32 %v2190_v56, 6.0  ;;  %v2498_v57 = vmin.f32 %v2178_v62, 6.0 }
 0x347   : > { %v2915_v47 = vadd.f32 %v2914_v61, %v2509_v45 }
 0x348   : > { %v1609_v13 = vpop.f32.mrf.mxu2  ;;  %v2936_v12 = vadd.f32 %v2935_v48, %v2510_v58  ;;  %v2893_v27 = vadd.f32 %v2892_v51, %v2498_v57 }
 0x349   : > { %v2187_v29 = vmax.f32 %v1609_v13, 0.0 }
 0x34a   : > { %v1789_v43 = vpop.f32.mrf.mxu0 }
 0x34b   : > { %v1698_v14 = vpop.f32.mrf.mxu3  ;;  %v2199_v18 = vmax.f32 %v1789_v43, 0.0  ;;  %v1878_v4 = vpop.f32.mrf.mxu1  ;;  %v2507_v16 = vmin.f32 %v2187_v29, 6.0 }
 0x34c   : > { %v2188_v21 = vmax.f32 %v1698_v14, 0.0  ;;  %v2200_v24 = vmax.f32 %v1878_v4, 0.0 }
 0x34d   : > { %v2519_v50 = vmin.f32 %v2199_v18, 6.0  ;;  %v2873_v33 = vadd.f32 %v2872_v19, %v2507_v16  ;;  %v2523_v18 = vld [vmem:[#allocation2 + $0x10] sm:$0xf] }
 0x34e   : > { %v2520_v25 = vmin.f32 %v2200_v24, 6.0  ;;  %v2508_v8 = vmin.f32 %v2188_v21, 6.0 }
 0x34f   : > { %v2916_v39 = vadd.f32 %v2915_v47, %v2519_v50  ;;  %v2522_v50 = vld [vmem:[#allocation2 + $0x8] sm:$0xff] }
 0x350   : > { %v2937_v17 = vadd.f32 %v2936_v12, %v2520_v25  ;;  %v1611_v31 = vpop.f32.mrf.mxu2  ;;  %v2894_v28 = vadd.f32 %v2893_v27, %v2508_v8 }
 0x351   : > { %v2917_v54 = vrot.slane %v2916_v39, 4  ;;  %v2197_v23 = vmax.f32 %v1611_v31, 0.0 }
 0x352   : > { %v2938_v52 = vrot.slane %v2937_v17, 4 }
 0x353   : > { %v1700_v26 = vpop.f32.mrf.mxu3  ;;  %v2918_v5 = vadd.f32 %v2917_v54, %v2916_v39  ;;  %v2517_v32 = vmin.f32 %v2197_v23, 6.0 }
 0x354   : > { %v2198_v59 = vmax.f32 %v1700_v26, 0.0  ;;  %v2939_v22 = vadd.f32 %v2938_v52, %v2937_v17 }
 0x355   : > { %v2919_v34 = vrot.slane %v2918_v5, 2  ;;  %v2874_v35 = vadd.f32 %v2873_v33, %v2517_v32 }
 0x356   : > { %v2518_v44 = vmin.f32 %v2198_v59, 6.0  ;;  %v2940_v20 = vrot.slane %v2939_v22, 2 }
 0x357   : > { %v2920_v56 = vadd.f32 %v2919_v34, %v2918_v5  ;;  %v2875_v30 = vrot.slane %v2874_v35, 4 }
 0x358   : > { %v2895_v36 = vadd.f32 %v2894_v28, %v2518_v44  ;;  %v2941_v37 = vadd.f32 %v2940_v20, %v2939_v22 }
 0x359   : > { %v2876_v3 = vadd.f32 %v2875_v30, %v2874_v35  ;;  %v2921_v1 = vrot.slane %v2920_v56, 1 }
 0x35a   : > { %v2896_v53 = vrot.slane %v2895_v36, 4  ;;  %v2942_v40 = vrot.slane %v2941_v37, 1 }
 0x35b   : > { %v2877_v41 = vrot.slane %v2876_v3, 2  ;;  %v2922_v55 = vadd.f32 %v2921_v1, %v2920_v56 }
 0x35c   : > { %v2897_v2 = vadd.f32 %v2896_v53, %v2895_v36  ;;  %v2943_v13 = vadd.f32 %v2942_v40, %v2941_v37 }
 0x35d   : > { %v2878_v63 = vadd.f32 %v2877_v41, %v2876_v3 }
 0x35e   : > { %v2898_v42 = vrot.slane %v2897_v2, 2  ;;  %v2977_v45 = vrot.slane %v2943_v13, 6 }
 0x35f   : > { %v2879_v60 = vrot.slane %v2878_v63, 1 }
 0x360   : > { %v2899_v14 = vadd.f32 %v2898_v42, %v2897_v2  ;;  %v2994_v0 = vsel %vm2978_vm0, %v2922_v55, %v2977_v45 }
 0x361   : > { %v3017_v58 = vrot.slane %v2994_v0, 7  ;;  %v2880_v43 = vadd.f32 %v2879_v60, %v2878_v63 }
 0x362   : > { %v2900_v62 = vrot.slane %v2899_v14, 1 }
 0x363   : > { %v3018_v61 = vsel %vm3000_vm3, %v3017_v58, %v6595_v10  ;;  %v2975_v29 = vrot.slane %v2880_v43, 4 }
 0x364   : > { %v2901_v46 = vadd.f32 %v2900_v62, %v2899_v14  ;;  %v3019_v4 = vsel %vm3002_vm4, %v3017_v58, %v3018_v61 }
 0x365   : > { %v3020_v48 = vsel %vm3004_vm5, %v3017_v58, %v3019_v4 }
 0x366   : > { %v2976_v6 = vrot.slane %v2901_v46, 2  ;;  %v3021_v21 = vsel %vm3006_vm6, %v3017_v58, %v3020_v48 }
 0x367   : > { %v3027_v7 = vadd.f32 %v3021_v21, %v2523_v18 }
 0x368   : > { %v2992_v24 = vsel %vm2980_vm1, %v2975_v29, %v2976_v6 }
 0x369   : > { %v2993_v9 = vsel %vm2982_vm2, %v6577_v38, %v2992_v24  ;;  %3030 = vst [vmem:[#allocation2 + $0x10] sm:$0xf] %v3027_v7 }
 0x36a   : > { %v3010_v47 = vrot.slane %v2993_v9, 7 }
 0x36c   : > { %v3011_v10 = vsel %vm3000_vm3, %v3010_v47, %v6600_v49 }
 0x36d   : > { %v3012_v11 = vsel %vm3002_vm4, %v3010_v47, %v3011_v10 }
 0x36e   : > { %v3013_v57 = vsel %vm3004_vm5, %v3010_v47, %v3012_v11  ;;  %3034 = sbr.rel (%p4774_p10) target bundleno = 1188 (0x4a4), region = 85 }
 0x36f   : > { %v3014_v12 = vsel %vm3006_vm6, %v3010_v47, %v3013_v57 }
 0x370   : > { %v3026_v25 = vadd.f32 %v3014_v12, %v2522_v50 }
 0x372   : > { %3029 = vst [vmem:[#allocation2 + $0x8] sm:$0xff] %v3026_v25 }
 0x373   : > { %v4833_v38 = vld [vmem:[%s7700_s2 + $0x70] sm:$0xf]  ;;  %v5531_v49 = vld [vmem:[%s7700_s2 + $0x74] sm:$0xf0]  ;;  %v4825_v23 = vld [vmem:[%s7700_s2 + $0x60] sm:$0xf] }
 0x374   : > { %v4897_v15 = vld [vmem:[%s7700_s2 + $0xf0] sm:$0xf]  ;;  %v4834_v16 = vor.u32 %v5531_v49, %v4833_v38  ;;  %v5547_v39 = vld [vmem:[%s7700_s2 + $0xf4] sm:$0xf0]  ;;  %v5529_v27 = vld [vmem:[%s7700_s2 + $0x64] sm:$0xf0] }
 0x375   : > { %v4961_v51 = vld [vmem:[%s7700_s2 + $0x170] sm:$0xf]  ;;  %v5563_v8 = vld [vmem:[%s7700_s2 + $0x174] sm:$0xf0]  ;;  %v4898_v17 = vor.u32 %v5547_v39, %v4897_v15  ;;  %v4889_v52 = vld [vmem:[%s7700_s2 + $0xe0] sm:$0xf]  ;;  %v4826_v33 = vor.u32 %v5529_v27, %v4825_v23 }
 0x376   : > { %v4962_v31 = vor.u32 %v5563_v8, %v4961_v51  ;;  %v5025_v19 = vld [vmem:[%s7700_s2 + $0x1f0] sm:$0xf]  ;;  %v5579_v54 = vld [vmem:[%s7700_s2 + $0x1f4] sm:$0xf0]  ;;  %4044 = vmatpush.bf16.msra.mxu0 %v4834_v16  ;;  %v5545_v59 = vld [vmem:[%s7700_s2 + $0xe4] sm:$0xf0] }
 0x377   : > { %v5026_v26 = vor.u32 %v5579_v54, %v5025_v19  ;;  %4057 = vmatpush.bf16.msra.mxu1 %v4898_v17  ;;  %v4890_v5 = vor.u32 %v5545_v59, %v4889_v52  ;;  %v4953_v32 = vld [vmem:[%s7700_s2 + $0x160] sm:$0xf]  ;;  %v5561_v28 = vld [vmem:[%s7700_s2 + $0x164] sm:$0xf0]  ;;  %v4817_v35 = vld [vmem:[%s7700_s2 + $0x50] sm:$0xf] }
 0x378   : > { %4070 = vmatpush.bf16.msra.mxu2 %v4962_v31  ;;  %v5017_v22 = vld [vmem:[%s7700_s2 + $0x1e0] sm:$0xf]  ;;  %v4954_v44 = vor.u32 %v5561_v28, %v4953_v32  ;;  %v5577_v34 = vld [vmem:[%s7700_s2 + $0x1e4] sm:$0xf0]  ;;  %v5527_v20 = vld [vmem:[%s7700_s2 + $0x54] sm:$0xf0] }
 0x379   : > { %4083 = vmatpush.bf16.msra.mxu3 %v5026_v26  ;;  %v5018_v36 = vor.u32 %v5577_v34, %v5017_v22  ;;  %v4881_v56 = vld [vmem:[%s7700_s2 + $0xd0] sm:$0xf]  ;;  %v5543_v30 = vld [vmem:[%s7700_s2 + $0xd4] sm:$0xf0]  ;;  %v4818_v53 = vor.u32 %v5527_v20, %v4817_v35  ;;  %v4809_v13 = vld [vmem:[%s7700_s2 + $0x40] sm:$0xf] }
 0x37a   : > { %v4945_v37 = vld [vmem:[%s7700_s2 + $0x150] sm:$0xf]  ;;  %4045 = vmatpush.bf16.msra.mxu0 %v4826_v33  ;;  %v5559_v3 = vld [vmem:[%s7700_s2 + $0x154] sm:$0xf0]  ;;  %v4882_v2 = vor.u32 %v5543_v30, %v4881_v56  ;;  %v5525_v42 = vld [vmem:[%s7700_s2 + $0x44] sm:$0xf0] }
 0x37b   : > { %v5009_v1 = vld [vmem:[%s7700_s2 + $0x1d0] sm:$0xf]  ;;  %v5575_v40 = vld [vmem:[%s7700_s2 + $0x1d4] sm:$0xf0]  ;;  %4058 = vmatpush.bf16.msra.mxu1 %v4890_v5  ;;  %v4946_v41 = vor.u32 %v5559_v3, %v4945_v37  ;;  %v4873_v63 = vld [vmem:[%s7700_s2 + $0xc0] sm:$0xf]  ;;  %v4810_v58 = vor.u32 %v5525_v42, %v4809_v13 }
 0x37c   : > { %4071 = vmatpush.bf16.msra.mxu2 %v4954_v44  ;;  %v5010_v55 = vor.u32 %v5575_v40, %v5009_v1  ;;  %v5541_v45 = vld [vmem:[%s7700_s2 + $0xc4] sm:$0xf0]  ;;  %v4937_v14 = vld [vmem:[%s7700_s2 + $0x140] sm:$0xf]  ;;  %v4801_v61 = vld [vmem:[%s7700_s2 + $0x30] sm:$0xf] }
 0x37d   : > { %4084 = vmatpush.bf16.msra.mxu3 %v5018_v36  ;;  %v5557_v60 = vld [vmem:[%s7700_s2 + $0x144] sm:$0xf0]  ;;  %v5001_v0 = vld [vmem:[%s7700_s2 + $0x1c0] sm:$0xf]  ;;  %v4874_v43 = vor.u32 %v5541_v45, %v4873_v63  ;;  %v5523_v29 = vld [vmem:[%s7700_s2 + $0x34] sm:$0xf0] }
 0x37e   : > { %v5573_v62 = vld [vmem:[%s7700_s2 + $0x1c4] sm:$0xf0]  ;;  %4046 = vmatpush.bf16.msra.mxu0 %v4818_v53  ;;  %v4938_v46 = vor.u32 %v5557_v60, %v4937_v14  ;;  %v4865_v18 = vld [vmem:[%s7700_s2 + $0xb0] sm:$0xf]  ;;  %v5539_v6 = vld [vmem:[%s7700_s2 + $0xb4] sm:$0xf0]  ;;  %v4802_v9 = vor.u32 %v5523_v29, %v4801_v61 }
 0x37f   : > { %4059 = vmatpush.bf16.msra.mxu1 %v4882_v2  ;;  %v5002_v4 = vor.u32 %v5573_v62, %v5001_v0  ;;  %v4929_v48 = vld [vmem:[%s7700_s2 + $0x130] sm:$0xf]  ;;  %v5555_v21 = vld [vmem:[%s7700_s2 + $0x134] sm:$0xf0]  ;;  %v4866_v47 = vor.u32 %v5539_v6, %v4865_v18  ;;  %v4793_v50 = vld [vmem:[%s7700_s2 + $0x20] sm:$0xf] }
 0x380   : > { %4072 = vmatpush.bf16.msra.mxu2 %v4946_v41  ;;  %v4993_v24 = vld [vmem:[%s7700_s2 + $0x1b0] sm:$0xf]  ;;  %v5571_v7 = vld [vmem:[%s7700_s2 + $0x1b4] sm:$0xf0]  ;;  %v4930_v10 = vor.u32 %v5555_v21, %v4929_v48  ;;  %v5521_v11 = vld [vmem:[%s7700_s2 + $0x24] sm:$0xf0] }
 0x381   : > { %4085 = vmatpush.bf16.msra.mxu3 %v5010_v55  ;;  %v4857_v57 = vld [vmem:[%s7700_s2 + $0xa0] sm:$0xf]  ;;  %v4994_v12 = vor.u32 %v5571_v7, %v4993_v24  ;;  %v5537_v25 = vld [vmem:[%s7700_s2 + $0xa4] sm:$0xf0]  ;;  %v4794_v39 = vor.u32 %v5521_v11, %v4793_v50  ;;  %v4785_v17 = vld [vmem:[%s7700_s2 + $0x10] sm:$0xf] }
 0x382   : > { %4047 = vmatpush.bf16.msra.mxu0 %v4810_v58  ;;  %v4921_v38 = vld [vmem:[%s7700_s2 + $0x120] sm:$0xf]  ;;  %v5553_v49 = vld [vmem:[%s7700_s2 + $0x124] sm:$0xf0]  ;;  %v4858_v51 = vor.u32 %v5537_v25, %v4857_v57  ;;  %v5519_v31 = vld [vmem:[%s7700_s2 + $0x14] sm:$0xf0] }
 0x383   : > { %4060 = vmatpush.bf16.msra.mxu1 %v4874_v43  ;;  %v4985_v15 = vld [vmem:[%s7700_s2 + $0x1a0] sm:$0xf]  ;;  %v5569_v16 = vld [vmem:[%s7700_s2 + $0x1a4] sm:$0xf0]  ;;  %v4922_v8 = vor.u32 %v5553_v49, %v4921_v38  ;;  %v4849_v19 = vld [vmem:[%s7700_s2 + $0x90] sm:$0xf]  ;;  %v4786_v33 = vor.u32 %v5519_v31, %v4785_v17 }
 0x384   : > { %4073 = vmatpush.bf16.msra.mxu2 %v4938_v46  ;;  %v4986_v54 = vor.u32 %v5569_v16, %v4985_v15  ;;  %v5535_v23 = vld [vmem:[%s7700_s2 + $0x94] sm:$0xf0]  ;;  %v4913_v26 = vld [vmem:[%s7700_s2 + $0x110] sm:$0xf]  ;;  %v4777_v5 = vld [vmem:[%s7700_s2] sm:$0xf] }
 0x385   : > { %4086 = vmatpush.bf16.msra.mxu3 %v5002_v4  ;;  %v5551_v27 = vld [vmem:[%s7700_s2 + $0x114] sm:$0xf0]  ;;  %v4977_v52 = vld [vmem:[%s7700_s2 + $0x190] sm:$0xf]  ;;  %v5517_v32 = vld [vmem:[%s7700_s2 + $0x4] sm:$0xf0]  ;;  %v4850_v28 = vor.u32 %v5535_v23, %v4849_v19 }
 0x386   : > { %4048 = vmatpush.bf16.msra.mxu0 %v4802_v9  ;;  %v5567_v59 = vld [vmem:[%s7700_s2 + $0x194] sm:$0xf0]  ;;  %v4914_v22 = vor.u32 %v5551_v27, %v4913_v26  ;;  %v4841_v44 = vld [vmem:[%s7700_s2 + $0x80] sm:$0xf]  ;;  %v5533_v34 = vld [vmem:[%s7700_s2 + $0x84] sm:$0xf0]  ;;  %v4778_v1 = vor.u32 %v5517_v32, %v4777_v5 }
 0x387   : > { %4061 = vmatpush.bf16.msra.mxu1 %v4866_v47  ;;  %v4905_v35 = vld [vmem:[%s7700_s2 + $0x100] sm:$0xf]  ;;  %v4978_v20 = vor.u32 %v5567_v59, %v4977_v52  ;;  %v5549_v36 = vld [vmem:[%s7700_s2 + $0x104] sm:$0xf0]  ;;  %v5089_v37 = vld [vmem:[%s7700_s2 + $0x270] sm:$0xf]  ;;  %v4842_v13 = vor.u32 %v5533_v34, %v4841_v44 }
 0x388   : > { %4074 = vmatpush.bf16.msra.mxu2 %v4930_v10  ;;  %v4969_v56 = vld [vmem:[%s7700_s2 + $0x180] sm:$0xf]  ;;  %v5565_v30 = vld [vmem:[%s7700_s2 + $0x184] sm:$0xf0]  ;;  %v5595_v53 = vld [vmem:[%s7700_s2 + $0x274] sm:$0xf0]  ;;  %v4906_v42 = vor.u32 %v5549_v36, %v4905_v35 }
 0x389   : > { %4087 = vmatpush.bf16.msra.mxu3 %v4994_v12  ;;  %v5153_v3 = vld [vmem:[%s7700_s2 + $0x2f0] sm:$0xf]  ;;  %v5611_v40 = vld [vmem:[%s7700_s2 + $0x2f4] sm:$0xf0]  ;;  %v4970_v45 = vor.u32 %v5565_v30, %v4969_v56  ;;  %v5090_v14 = vor.u32 %v5595_v53, %v5089_v37  ;;  %v5081_v62 = vld [vmem:[%s7700_s2 + $0x260] sm:$0xf] }
 0x38a   : > { %4049 = vmatpush.bf16.msra.mxu0 %v4794_v39  ;;  %v5217_v2 = vld [vmem:[%s7700_s2 + $0x370] sm:$0xf]  ;;  %v5627_v41 = vld [vmem:[%s7700_s2 + $0x374] sm:$0xf0]  ;;  %v5154_v60 = vor.u32 %v5611_v40, %v5153_v3  ;;  %v5593_v58 = vld [vmem:[%s7700_s2 + $0x264] sm:$0xf0] }
 0x38b   : > { %4062 = vmatpush.bf16.msra.mxu1 %v4858_v51  ;;  %v5281_v63 = vld [vmem:[%s7700_s2 + $0x3f0] sm:$0xf]  ;;  %v5643_v55 = vld [vmem:[%s7700_s2 + $0x3f4] sm:$0xf0]  ;;  %v5218_v0 = vor.u32 %v5627_v41, %v5217_v2  ;;  %v5145_v43 = vld [vmem:[%s7700_s2 + $0x2e0] sm:$0xf]  ;;  %v5082_v48 = vor.u32 %v5593_v58, %v5081_v62 }
 0x38c   : > { %4075 = vmatpush.bf16.msra.mxu2 %v4922_v8  ;;  %v5282_v46 = vor.u32 %v5643_v55, %v5281_v63  ;;  %v5609_v61 = vld [vmem:[%s7700_s2 + $0x2e4] sm:$0xf0]  ;;  %v5209_v29 = vld [vmem:[%s7700_s2 + $0x360] sm:$0xf]  ;;  %v5073_v21 = vld [vmem:[%s7700_s2 + $0x250] sm:$0xf] }
 0x38d   : > { %4088 = vmatpush.bf16.msra.mxu3 %v4986_v54  ;;  %v5625_v18 = vld [vmem:[%s7700_s2 + $0x364] sm:$0xf0]  ;;  %v5273_v4 = vld [vmem:[%s7700_s2 + $0x3e0] sm:$0xf]  ;;  %v5591_v24 = vld [vmem:[%s7700_s2 + $0x254] sm:$0xf0]  ;;  %v5146_v7 = vor.u32 %v5609_v61, %v5145_v43 }
 0x38e   : > { %4050 = vmatpush.bf16.msra.mxu0 %v4786_v33  ;;  %v5641_v6 = vld [vmem:[%s7700_s2 + $0x3e4] sm:$0xf0]  ;;  %v5210_v9 = vor.u32 %v5625_v18, %v5209_v29  ;;  %v5137_v47 = vld [vmem:[%s7700_s2 + $0x2d0] sm:$0xf]  ;;  %v5607_v10 = vld [vmem:[%s7700_s2 + $0x2d4] sm:$0xf0]  ;;  %v5074_v15 = vor.u32 %v5591_v24, %v5073_v21 }
 0x38f   : > { %4063 = vmatpush.bf16.msra.mxu1 %v4850_v28  ;;  %v3035_v50 = vld [vmem:[#allocation2] sm:$0xff]  ;;  %v5274_v11 = vor.u32 %v5641_v6, %v5273_v4  ;;  %v5201_v57 = vld [vmem:[%s7700_s2 + $0x350] sm:$0xf]  ;;  %v5623_v12 = vld [vmem:[%s7700_s2 + $0x354] sm:$0xf0]  ;;  %v5138_v39 = vor.u32 %v5607_v10, %v5137_v47 }
 0x390   : > { %4076 = vmatpush.bf16.msra.mxu2 %v4914_v22  ;;  %v3038_v25 = vmul.f32 0.00390625, %v3035_v50  ;;  %v5265_v38 = vld [vmem:[%s7700_s2 + $0x3d0] sm:$0xf]  ;;  %v5639_v49 = vld [vmem:[%s7700_s2 + $0x3d4] sm:$0xf0]  ;;  %v5202_v51 = vor.u32 %v5623_v12, %v5201_v57 }
 0x391   : > { %4089 = vmatpush.bf16.msra.mxu3 %v4978_v20  ;;  %v5065_v16 = vld [vmem:[%s7700_s2 + $0x240] sm:$0xf]  ;;  %v5589_v8 = vld [vmem:[%s7700_s2 + $0x244] sm:$0xf0]  ;;  %v5266_v19 = vor.u32 %v5639_v49, %v5265_v38  ;;  %v3037_v26 = vld [vmem:[#allocation2 + $0x10] sm:$0xf] }
 0x392   : > { %4051 = vmatpush.bf16.msra.mxu0 %v4778_v1  ;;  %3044 = vst [vmem:[#allocation1] ss:$4 sm:$0xff] %v3038_v25  ;;  %v5129_v17 = vld [vmem:[%s7700_s2 + $0x2c0] sm:$0xf]  ;;  %v5605_v31 = vld [vmem:[%s7700_s2 + $0x2c4] sm:$0xf0]  ;;  %v5066_v33 = vor.u32 %v5589_v8, %v5065_v16 }
 0x393   : > { %4064 = vmatpush.bf16.msra.mxu1 %v4842_v13  ;;  %v5193_v54 = vld [vmem:[%s7700_s2 + $0x340] sm:$0xf]  ;;  %v5621_v23 = vld [vmem:[%s7700_s2 + $0x344] sm:$0xf0]  ;;  %v5057_v59 = vld [vmem:[%s7700_s2 + $0x230] sm:$0xf]  ;;  %v5130_v22 = vor.u32 %v5605_v31, %v5129_v17 }
 0x394   : > { %4077 = vmatpush.bf16.msra.mxu2 %v4906_v42  ;;  %v5257_v27 = vld [vmem:[%s7700_s2 + $0x3c0] sm:$0xf]  ;;  %v5637_v52 = vld [vmem:[%s7700_s2 + $0x3c4] sm:$0xf0]  ;;  %v5587_v5 = vld [vmem:[%s7700_s2 + $0x234] sm:$0xf0]  ;;  %v5194_v44 = vor.u32 %v5621_v23, %v5193_v54 }
 0x395   : > { %4090 = vmatpush.bf16.msra.mxu3 %v4970_v45  ;;  %v5121_v32 = vld [vmem:[%s7700_s2 + $0x2b0] sm:$0xf]  ;;  %v5603_v28 = vld [vmem:[%s7700_s2 + $0x2b4] sm:$0xf0]  ;;  %v3040_v20 = vmul.f32 0.00390625, %v3037_v26  ;;  %v5258_v36 = vor.u32 %v5637_v52, %v5257_v27  ;;  %v5058_v40 = vor.u32 %v5587_v5, %v5057_v59 }
 0x396   : > { %4096 = vmatpush.bf16.msrb.mxu0 %v5090_v14  ;;  %v5185_v34 = vld [vmem:[%s7700_s2 + $0x330] sm:$0xf]  ;;  %v5619_v35 = vld [vmem:[%s7700_s2 + $0x334] sm:$0xf0]  ;;  %v5049_v3 = vld [vmem:[%s7700_s2 + $0x220] sm:$0xf]  ;;  %v5122_v2 = vor.u32 %v5603_v28, %v5121_v32 }
 0x397   : > { %4109 = vmatpush.bf16.msrb.mxu1 %v5154_v60  ;;  %v5249_v56 = vld [vmem:[%s7700_s2 + $0x3b0] sm:$0xf]  ;;  %v5635_v30 = vld [vmem:[%s7700_s2 + $0x3b4] sm:$0xf0]  ;;  %v5186_v55 = vor.u32 %v5619_v35, %v5185_v34  ;;  %v5585_v45 = vld [vmem:[%s7700_s2 + $0x224] sm:$0xf0] }
 0x398   : > { %4122 = vmatpush.bf16.msrb.mxu2 %v5218_v0  ;;  %v3036_v37 = vld [vmem:[#allocation2 + $0x8] sm:$0xff]  ;;  %v5113_v14 = vld [vmem:[%s7700_s2 + $0x2a0] sm:$0xf]  ;;  %v5250_v62 = vor.u32 %v5635_v30, %v5249_v56  ;;  %v5601_v58 = vld [vmem:[%s7700_s2 + $0x2a4] sm:$0xf0]  ;;  %v5050_v4 = vor.u32 %v5585_v45, %v5049_v3 }
 0x399   : > { %4135 = vmatpush.bf16.msrb.mxu3 %v5282_v46  ;;  %v3049_v53 = vld.sshfl [vmem:[#allocation1 + $0x10] sm:$0xff pattern:$0x73625140]  ;;  %v3047_v1 = vld.sshfl [vmem:[#allocation1] sm:$0xff pattern:$0x73625140]  ;;  %v5114_v6 = vor.u32 %v5601_v58, %v5113_v14 }
 0x39a   : > { %4097 = vmatpush.bf16.msrb.mxu0 %v5082_v48  ;;  %v6989_v41 = vpack.c.bf16 %v3049_v53, %v3049_v53  ;;  %v6991_v13 = vpack.c.bf16 %v3047_v1, %v3047_v1  ;;  %v3050_v42 = vld.sshfl [vmem:[#allocation1 + $0x18] sm:$0xff pattern:$0x73625140]  ;;  %v3048_v63 = vld.sshfl [vmem:[#allocation1 + $0x8] sm:$0xff pattern:$0x73625140] }
 0x39b   : > { %4110 = vmatpush.bf16.msrb.mxu1 %v5146_v7  ;;  %v6999_v60 = vpack.c.bf16 %v3050_v42, %v3050_v42  ;;  %3055 = vst [vmem:[#allocation1] ss:$4 sm:$0xff] %v3040_v20  ;;  %v7001_v0 = vpack.c.bf16 %v3048_v63, %v3048_v63  ;;  %v5177_v43 = vld [vmem:[%s7700_s2 + $0x320] sm:$0xf]  ;;  %v5617_v46 = vld [vmem:[%s7700_s2 + $0x324] sm:$0xf0] }
 0x39c   : > { %4123 = vmatpush.bf16.msrb.mxu2 %v5210_v9  ;;  %v5241_v61 = vld [vmem:[%s7700_s2 + $0x3a0] sm:$0xf]  ;;  %v5633_v29 = vld [vmem:[%s7700_s2 + $0x3a4] sm:$0xf0]  ;;  %4052 = vmatmul.bf16.vlgmr.msra.gmra.mxu0 %v6991_v13  ;;  %v3039_v18 = vmul.f32 0.00390625, %v3036_v37  ;;  %v5178_v48 = vor.u32 %v5617_v46, %v5177_v43 }
 0x39d   : > { %4136 = vmatpush.bf16.msrb.mxu3 %v5274_v11  ;;  %4078 = vmatmul.bf16.vlgmr.msra.gmra.mxu2 %v6989_v41  ;;  %v5041_v21 = vld [vmem:[%s7700_s2 + $0x210] sm:$0xf]  ;;  %v5583_v24 = vld [vmem:[%s7700_s2 + $0x214] sm:$0xf0]  ;;  %v5242_v9 = vor.u32 %v5633_v29, %v5241_v61  ;;  %v5033_v25 = vld [vmem:[%s7700_s2 + $0x200] sm:$0xf] }
 0x39e   : > { %4098 = vmatpush.bf16.msrb.mxu0 %v5074_v15  ;;  %4091 = vmatmul.bf16.vlgmr.msra.gmra.mxu3 %v6999_v60  ;;  %v5105_v7 = vld [vmem:[%s7700_s2 + $0x290] sm:$0xf]  ;;  %v5599_v47 = vld [vmem:[%s7700_s2 + $0x294] sm:$0xf0]  ;;  %3046 = vst [vmem:[#allocation1 + $0x20] ss:$4 sm:$0xff] %v3039_v18  ;;  %v5042_v12 = vor.u32 %v5583_v24, %v5041_v21 }
 0x39f   : > { %4111 = vmatpush.bf16.msrb.mxu1 %v5138_v39  ;;  %v5169_v10 = vld [vmem:[%s7700_s2 + $0x310] sm:$0xf]  ;;  %v5615_v50 = vld [vmem:[%s7700_s2 + $0x314] sm:$0xf0]  ;;  %v5581_v38 = vld [vmem:[%s7700_s2 + $0x204] sm:$0xf0]  ;;  %v5106_v15 = vor.u32 %v5599_v47, %v5105_v7 }
 0x3a0   : > { %4124 = vmatpush.bf16.msrb.mxu2 %v5202_v51  ;;  %4065 = vmatmul.bf16.vlgmr.msra.gmra.mxu1 %v7001_v0  ;;  %v5233_v11 = vld [vmem:[%s7700_s2 + $0x390] sm:$0xf]  ;;  %v5631_v57 = vld [vmem:[%s7700_s2 + $0x394] sm:$0xf0]  ;;  %v5097_v49 = vld [vmem:[%s7700_s2 + $0x280] sm:$0xf]  ;;  %v5170_v16 = vor.u32 %v5615_v50, %v5169_v10  ;;  %v5034_v52 = vor.u32 %v5581_v38, %v5033_v25 }
 0x3a1   : > { %4137 = vmatpush.bf16.msrb.mxu3 %v5266_v19  ;;  %v5597_v39 = vld [vmem:[%s7700_s2 + $0x284] sm:$0xf0]  ;;  %v5161_v51 = vld [vmem:[%s7700_s2 + $0x300] sm:$0xf]  ;;  %v5234_v17 = vor.u32 %v5631_v57, %v5233_v11  ;;  %v5345_v54 = vld [vmem:[%s7700_s2 + $0x470] sm:$0xf] }
 0x3a2   : > { %4099 = vmatpush.bf16.msrb.mxu0 %v5066_v33  ;;  %v5613_v8 = vld [vmem:[%s7700_s2 + $0x304] sm:$0xf0]  ;;  %v5225_v31 = vld [vmem:[%s7700_s2 + $0x380] sm:$0xf]  ;;  %v5659_v23 = vld [vmem:[%s7700_s2 + $0x474] sm:$0xf0]  ;;  %v5098_v32 = vor.u32 %v5597_v39, %v5097_v49 }
 0x3a3   : > { %4112 = vmatpush.bf16.msrb.mxu1 %v5130_v22  ;;  %v5629_v19 = vld [vmem:[%s7700_s2 + $0x384] sm:$0xf0]  ;;  %v5409_v26 = vld [vmem:[%s7700_s2 + $0x4f0] sm:$0xf]  ;;  %v5675_v27 = vld [vmem:[%s7700_s2 + $0x4f4] sm:$0xf0]  ;;  %v5162_v28 = vor.u32 %v5613_v8, %v5161_v51  ;;  %v5346_v20 = vor.u32 %v5659_v23, %v5345_v54 }
 0x3a4   : > { %4125 = vmatpush.bf16.msrb.mxu2 %v5194_v44  ;;  %v5530_v59 = vld [vmem:[%s7700_s2 + $0x74] sm:$0xf]  ;;  %v4835_v33 = vld [vmem:[%s7700_s2 + $0x78] sm:$0xf0]  ;;  %v5337_v44 = vld [vmem:[%s7700_s2 + $0x460] sm:$0xf]  ;;  %v5226_v35 = vor.u32 %v5629_v19, %v5225_v31  ;;  %v5410_v37 = vor.u32 %v5675_v27, %v5409_v26 }
 0x3a5   : > { %4138 = vmatpush.bf16.msrb.mxu3 %v5258_v36  ;;  %v5546_v5 = vld [vmem:[%s7700_s2 + $0xf4] sm:$0xf]  ;;  %v4899_v22 = vld [vmem:[%s7700_s2 + $0xf8] sm:$0xf0]  ;;  %v5657_v34 = vld [vmem:[%s7700_s2 + $0x464] sm:$0xf0]  ;;  %v4838_v53 = vor.u32 %v5530_v59, %v4835_v33 }
 0x3a6   : > { %4100 = vmatpush.bf16.msrb.mxu0 %v5058_v40  ;;  %v5401_v36 = vld [vmem:[%s7700_s2 + $0x4e0] sm:$0xf]  ;;  %v3053_v56 = vld.sshfl [vmem:[#allocation1 + $0x30] sm:$0xff pattern:$0x73625140]  ;;  %v4902_v40 = vor.u32 %v5546_v5, %v4899_v22  ;;  %v5338_v43 = vor.u32 %v5657_v34, %v5337_v44 }
 0x3a7   : > { %4113 = vmatpush.bf16.msrb.mxu1 %v5122_v2  ;;  %v3051_v30 = vld.sshfl [vmem:[#allocation1 + $0x20] sm:$0xff pattern:$0x73625140]  ;;  %v3054_v3 = vld.sshfl [vmem:[#allocation1 + $0x38] sm:$0xff pattern:$0x73625140] }
 0x3a8   : > { %4126 = vmatpush.bf16.msrb.mxu2 %v5186_v55  ;;  %v3052_v1 = vld.sshfl [vmem:[#allocation1 + $0x28] sm:$0xff pattern:$0x73625140]  ;;  %v5528_v42 = vld [vmem:[%s7700_s2 + $0x64] sm:$0xf]  ;;  %v7112_v55 = vpack.c.bf16 %v3053_v56, %v3053_v56  ;;  %v7122_v58 = vpack.c.bf16 %v3054_v3, %v3054_v3 }
 0x3a9   : > { %4139 = vmatpush.bf16.msrb.mxu3 %v5250_v62  ;;  %v5673_v2 = vld [vmem:[%s7700_s2 + $0x4e4] sm:$0xf0]  ;;  %v4827_v63 = vld [vmem:[%s7700_s2 + $0x68] sm:$0xf0]  ;;  %v5544_v45 = vld [vmem:[%s7700_s2 + $0xe4] sm:$0xf]  ;;  %v7120_v62 = vpack.c.bf16 %v3051_v30, %v3051_v30  ;;  %v7124_v46 = vpack.c.bf16 %v3052_v1, %v3052_v1 }
 0x3aa   : > { %4101 = vmatpush.bf16.msrb.mxu0 %v5050_v4  ;;  %v4891_v14 = vld [vmem:[%s7700_s2 + $0xe8] sm:$0xf0]  ;;  %v5402_v61 = vor.u32 %v5673_v2, %v5401_v36  ;;  %v4830_v29 = vor.u32 %v5528_v42, %v4827_v63  ;;  %v5329_v18 = vld [vmem:[%s7700_s2 + $0x450] sm:$0xf]  ;;  %v5655_v4 = vld [vmem:[%s7700_s2 + $0x454] sm:$0xf0] }
 0x3ab   : > { %4114 = vmatpush.bf16.msrb.mxu1 %v5114_v6  ;;  %v5393_v6 = vld [vmem:[%s7700_s2 + $0x4d0] sm:$0xf]  ;;  %v5671_v21 = vld [vmem:[%s7700_s2 + $0x4d4] sm:$0xf0]  ;;  %v5526_v24 = vld [vmem:[%s7700_s2 + $0x54] sm:$0xf]  ;;  %v5330_v10 = vor.u32 %v5655_v4, %v5329_v18 }
 0x3ac   : > { %4127 = vmatpush.bf16.msrb.mxu2 %v5178_v48  ;;  %v4894_v48 = vor.u32 %v5544_v45, %v4891_v14  ;;  %v4819_v7 = vld [vmem:[%s7700_s2 + $0x58] sm:$0xf0]  ;;  %v5394_v50 = vor.u32 %v5671_v21, %v5393_v6  ;;  %v5321_v57 = vld [vmem:[%s7700_s2 + $0x440] sm:$0xf]  ;;  %v5669_v49 = vld [vmem:[%s7700_s2 + $0x4c4] sm:$0xf0] }
 0x3ad   : > { %4140 = vmatpush.bf16.msrb.mxu3 %v5242_v9  ;;  %v5542_v9 = vld [vmem:[%s7700_s2 + $0xd4] sm:$0xf]  ;;  %v4883_v47 = vld [vmem:[%s7700_s2 + $0xd8] sm:$0xf0]  ;;  %v4822_v11 = vor.u32 %v5526_v24, %v4819_v7  ;;  %v5385_v25 = vld [vmem:[%s7700_s2 + $0x4c0] sm:$0xf] }
 0x3ae   : > { %4102 = vmatpush.bf16.msrb.mxu0 %v5042_v12  ;;  %v5653_v12 = vld [vmem:[%s7700_s2 + $0x444] sm:$0xf0]  ;;  %v4886_v38 = vor.u32 %v5542_v9, %v4883_v47  ;;  %v5540_v39 = vld [vmem:[%s7700_s2 + $0xc4] sm:$0xf]  ;;  %v4875_v51 = vld [vmem:[%s7700_s2 + $0xc8] sm:$0xf0] }
 0x3af   : > { %4115 = vmatpush.bf16.msrb.mxu1 %v5106_v15  ;;  %v5524_v15 = vld [vmem:[%s7700_s2 + $0x44] sm:$0xf]  ;;  %v5322_v8 = vor.u32 %v5653_v12, %v5321_v57  ;;  %v5313_v19 = vld [vmem:[%s7700_s2 + $0x430] sm:$0xf]  ;;  %v5651_v54 = vld [vmem:[%s7700_s2 + $0x434] sm:$0xf0]  ;;  %v4878_v26 = vor.u32 %v5540_v39, %v4875_v51 }
 0x3b0   : > { %4128 = vmatpush.bf16.msrb.mxu2 %v5170_v16  ;;  %v4811_v16 = vld [vmem:[%s7700_s2 + $0x48] sm:$0xf0]  ;;  %v5377_v23 = vld [vmem:[%s7700_s2 + $0x4b0] sm:$0xf]  ;;  %v5667_v27 = vld [vmem:[%s7700_s2 + $0x4b4] sm:$0xf0] }
 0x3b1   : > { %4141 = vmatpush.bf16.msrb.mxu3 %v5234_v17  ;;  %v5386_v17 = vor.u32 %v5669_v49, %v5385_v25  ;;  %v4814_v31 = vor.u32 %v5524_v15, %v4811_v16  ;;  %v4803_v59 = vld [vmem:[%s7700_s2 + $0x38] sm:$0xf0]  ;;  %v5538_v33 = vld [vmem:[%s7700_s2 + $0xb4] sm:$0xf]  ;;  %v5305_v44 = vld [vmem:[%s7700_s2 + $0x420] sm:$0xf] }
 0x3b2   : > { %4103 = vmatpush.bf16.msrb.mxu0 %v5034_v52  ;;  %v5522_v52 = vld [vmem:[%s7700_s2 + $0x34] sm:$0xf]  ;;  %v4867_v5 = vld [vmem:[%s7700_s2 + $0xb8] sm:$0xf0]  ;;  %v5649_v34 = vld [vmem:[%s7700_s2 + $0x424] sm:$0xf0] }
 0x3b3   : > { %4116 = vmatpush.bf16.msrb.mxu1 %v5098_v32  ;;  %v5314_v32 = vor.u32 %v5651_v54, %v5313_v19  ;;  %v4806_v22 = vor.u32 %v5522_v52, %v4803_v59  ;;  %v5665_v36 = vld [vmem:[%s7700_s2 + $0x4a4] sm:$0xf0]  ;;  %v5520_v56 = vld [vmem:[%s7700_s2 + $0x24] sm:$0xf]  ;;  %v4795_v30 = vld [vmem:[%s7700_s2 + $0x28] sm:$0xf0]  ;;  %v5306_v3 = vor.u32 %v5649_v34, %v5305_v44 }
 0x3b4   : > { %4129 = vmatpush.bf16.msrb.mxu2 %v5162_v28  ;;  %v5378_v28 = vor.u32 %v5667_v27, %v5377_v23  ;;  %v5297_v2 = vld [vmem:[%s7700_s2 + $0x410] sm:$0xf]  ;;  %v5647_v42 = vld [vmem:[%s7700_s2 + $0x414] sm:$0xf0]  ;;  %v4851_v18 = vld [vmem:[%s7700_s2 + $0x98] sm:$0xf0] }
 0x3b5   : > { %4142 = vmatpush.bf16.msrb.mxu3 %v5226_v35  ;;  %4104 = vmatmul.bf16.vlgmr.msrb.gmra.mxu0 %v7120_v62  ;;  %v5369_v35 = vld [vmem:[%s7700_s2 + $0x4a0] sm:$0xf]  ;;  %v5361_v63 = vld [vmem:[%s7700_s2 + $0x490] sm:$0xf]  ;;  %v5663_v14 = vld [vmem:[%s7700_s2 + $0x494] sm:$0xf0]  ;;  %v5298_v4 = vor.u32 %v5647_v42, %v5297_v2 }
 0x3b6   : > { %4148 = vmatpush.bf16.msra.mxu0 %v5346_v20  ;;  %4117 = vmatmul.bf16.vlgmr.msrb.gmra.mxu1 %v7124_v46  ;;  %v4870_v20 = vor.u32 %v5538_v33, %v4867_v5  ;;  %v5370_v1 = vor.u32 %v5665_v36, %v5369_v35  ;;  %v5289_v6 = vld [vmem:[%s7700_s2 + $0x400] sm:$0xf]  ;;  %v5362_v24 = vor.u32 %v5663_v14, %v5361_v63  ;;  %v5661_v9 = vld [vmem:[%s7700_s2 + $0x484] sm:$0xf0]  ;;  %v5516_v47 = vld [vmem:[%s7700_s2 + $0x4] sm:$0xf] }
 0x3b7   : > { %4161 = vmatpush.bf16.msra.mxu1 %v5410_v37  ;;  %4130 = vmatmul.bf16.vlgmr.msrb.gmra.mxu2 %v7112_v55  ;;  %v5536_v37 = vld [vmem:[%s7700_s2 + $0xa4] sm:$0xf]  ;;  %v5353_v21 = vld [vmem:[%s7700_s2 + $0x480] sm:$0xf]  ;;  %v4843_v57 = vld [vmem:[%s7700_s2 + $0x88] sm:$0xf0] }
 0x3b8   : > { %4174 = vmatpush.bf16.msra.mxu2 %v4838_v53  ;;  %4143 = vmatmul.bf16.vlgmr.msrb.gmra.mxu3 %v7122_v58  ;;  %v4859_v53 = vld [vmem:[%s7700_s2 + $0xa8] sm:$0xf0]  ;;  %v5562_v12 = vld [vmem:[%s7700_s2 + $0x174] sm:$0xf]  ;;  %v4963_v25 = vld [vmem:[%s7700_s2 + $0x178] sm:$0xf0] }
 0x3b9   : > { %4187 = vmatpush.bf16.msra.mxu3 %v4902_v40  ;;  %v4798_v40 = vor.u32 %v5520_v56, %v4795_v30  ;;  %v4862_v45 = vor.u32 %v5536_v37, %v4859_v53  ;;  %v5027_v49 = vld [vmem:[%s7700_s2 + $0x1f8] sm:$0xf0]  ;;  %v5594_v16 = vld [vmem:[%s7700_s2 + $0x274] sm:$0xf]  ;;  %v4966_v23 = vor.u32 %v5562_v12, %v4963_v25  ;;  %v5560_v59 = vld [vmem:[%s7700_s2 + $0x164] sm:$0xf] }
 0x3ba   : > { %4149 = vmatpush.bf16.msra.mxu0 %v5338_v43  ;;  %v5518_v43 = vld [vmem:[%s7700_s2 + $0x14] sm:$0xf]  ;;  %v5091_v39 = vld [vmem:[%s7700_s2 + $0x278] sm:$0xf0]  ;;  %v4955_v33 = vld [vmem:[%s7700_s2 + $0x168] sm:$0xf0] }
 0x3bb   : > { %4162 = vmatpush.bf16.msra.mxu1 %v5402_v61  ;;  %v4787_v61 = vld [vmem:[%s7700_s2 + $0x18] sm:$0xf0]  ;;  %v5610_v51 = vld [vmem:[%s7700_s2 + $0x2f4] sm:$0xf]  ;;  %v5094_v52 = vor.u32 %v5594_v16, %v5091_v39  ;;  %v5576_v5 = vld [vmem:[%s7700_s2 + $0x1e4] sm:$0xf]  ;;  %v4958_v56 = vor.u32 %v5560_v59, %v4955_v33 }
 0x3bc   : > { %4175 = vmatpush.bf16.msra.mxu2 %v4830_v29  ;;  %v5534_v29 = vld [vmem:[%s7700_s2 + $0x94] sm:$0xf]  ;;  %v4790_v7 = vor.u32 %v5518_v43, %v4787_v61  ;;  %v3056_v19 = vld.sshfl [vmem:[#allocation1] sm:$0xff pattern:$0x73625140] }
 0x3bd   : > { %4188 = vmatpush.bf16.msra.mxu3 %v4894_v48  ;;  %v5645_v48 = vld [vmem:[%s7700_s2 + $0x404] sm:$0xf0]  ;;  %v5592_v44 = vld [vmem:[%s7700_s2 + $0x264] sm:$0xf]  ;;  %v5083_v34 = vld [vmem:[%s7700_s2 + $0x268] sm:$0xf0] }
 0x3be   : > { %4150 = vmatpush.bf16.msra.mxu0 %v5330_v10  ;;  %v4779_v10 = vld [vmem:[%s7700_s2 + $0x8] sm:$0xf0]  ;;  %v5290_v15 = vor.u32 %v5645_v48, %v5289_v6  ;;  %v5086_v37 = vor.u32 %v5592_v44, %v5083_v34  ;;  %v5558_v53 = vld [vmem:[%s7700_s2 + $0x154] sm:$0xf]  ;;  %v5011_v2 = vld [vmem:[%s7700_s2 + $0x1d8] sm:$0xf0] }
 0x3bf   : > { %4163 = vmatpush.bf16.msra.mxu1 %v5394_v50  ;;  %v4854_v50 = vor.u32 %v5534_v29, %v4851_v18  ;;  %v5147_v36 = vld [vmem:[%s7700_s2 + $0x2e8] sm:$0xf0]  ;;  %v5590_v42 = vld [vmem:[%s7700_s2 + $0x254] sm:$0xf]  ;;  %v5075_v63 = vld [vmem:[%s7700_s2 + $0x258] sm:$0xf0] }
 0x3c0   : > { %4176 = vmatpush.bf16.msra.mxu2 %v4822_v11  ;;  %v5532_v11 = vld [vmem:[%s7700_s2 + $0x84] sm:$0xf]  ;;  %v5139_v14 = vld [vmem:[%s7700_s2 + $0x2d8] sm:$0xf0]  ;;  %v5078_v29 = vor.u32 %v5590_v42, %v5075_v63  ;;  %v5115_v59 = vld [vmem:[%s7700_s2 + $0x2a8] sm:$0xf0] }
 0x3c1   : > { %4189 = vmatpush.bf16.msra.mxu3 %v4886_v38  ;;  %v5578_v38 = vld [vmem:[%s7700_s2 + $0x1f4] sm:$0xf]  ;;  %v4846_v54 = vor.u32 %v5532_v11, %v4843_v57  ;;  %v5556_v18 = vld [vmem:[%s7700_s2 + $0x144] sm:$0xf]  ;;  %v4931_v11 = vld [vmem:[%s7700_s2 + $0x138] sm:$0xf0] }
 0x3c2   : > { %4151 = vmatpush.bf16.msra.mxu0 %v5322_v8  ;;  %v5354_v8 = vor.u32 %v5661_v9, %v5353_v21  ;;  %v5030_v27 = vor.u32 %v5578_v38, %v5027_v49  ;;  %v5588_v48 = vld [vmem:[%s7700_s2 + $0x244] sm:$0xf]  ;;  %v5067_v21 = vld [vmem:[%s7700_s2 + $0x248] sm:$0xf0]  ;;  %v5570_v57 = vld [vmem:[%s7700_s2 + $0x1b4] sm:$0xf] }
 0x3c3   : > { %4164 = vmatpush.bf16.msra.mxu1 %v5386_v17  ;;  %v4782_v17 = vor.u32 %v5516_v47, %v4779_v10  ;;  %v5070_v10 = vor.u32 %v5588_v48, %v5067_v21  ;;  %v4995_v25 = vld [vmem:[%s7700_s2 + $0x1b8] sm:$0xf0]  ;;  %v5586_v38 = vld [vmem:[%s7700_s2 + $0x234] sm:$0xf]  ;;  %v5564_v63 = vld [vmem:[%s7700_s2 + $0x184] sm:$0xf] }
 0x3c4   : > { %4177 = vmatpush.bf16.msra.mxu2 %v4814_v31  ;;  %v5155_v31 = vld [vmem:[%s7700_s2 + $0x2f8] sm:$0xf0]  ;;  %v5566_v34 = vld [vmem:[%s7700_s2 + $0x194] sm:$0xf] }
 0x3c5   : > { %4190 = vmatpush.bf16.msra.mxu3 %v4878_v26  ;;  %v3057_v26 = vld.sshfl [vmem:[#allocation1 + $0x8] sm:$0xff pattern:$0x73625140]  ;;  %v5059_v49 = vld [vmem:[%s7700_s2 + $0x238] sm:$0xf0] }
 0x3c6   : > { %4152 = vmatpush.bf16.msra.mxu0 %v5314_v32  ;;  %v5158_v32 = vor.u32 %v5610_v51, %v5155_v31  ;;  %v7318_v35 = vpack.c.bf16 %v3057_v26, %v3057_v26  ;;  %v5123_v16 = vld [vmem:[%s7700_s2 + $0x2b8] sm:$0xf0]  ;;  %v4998_v51 = vor.u32 %v5570_v57, %v4995_v25  ;;  %v4923_v31 = vld [vmem:[%s7700_s2 + $0x128] sm:$0xf0]  ;;  %v5584_v26 = vld [vmem:[%s7700_s2 + $0x224] sm:$0xf] }
 0x3c7   : > { %4165 = vmatpush.bf16.msra.mxu1 %v5378_v28  ;;  %v7307_v28 = vpack.c.bf16 %v3056_v19, %v3056_v19  ;;  %v5568_v19 = vld [vmem:[%s7700_s2 + $0x1a4] sm:$0xf]  ;;  %v4915_v44 = vld [vmem:[%s7700_s2 + $0x118] sm:$0xf0]  ;;  %v5658_v21 = vld [vmem:[%s7700_s2 + $0x474] sm:$0xf] }
 0x3c8   : > { %4178 = vmatpush.bf16.msra.mxu2 %v4806_v22  ;;  %v5019_v22 = vld [vmem:[%s7700_s2 + $0x1e8] sm:$0xf0]  ;;  %v5283_v48 = vld [vmem:[%s7700_s2 + $0x3f8] sm:$0xf0]  ;;  %v5624_v25 = vld [vmem:[%s7700_s2 + $0x364] sm:$0xf] }
 0x3c9   : > { %4191 = vmatpush.bf16.msra.mxu3 %v4870_v20  ;;  %v5608_v20 = vld [vmem:[%s7700_s2 + $0x2e4] sm:$0xf]  ;;  %v5022_v30 = vor.u32 %v5576_v5, %v5019_v22  ;;  %v5550_v22 = vld [vmem:[%s7700_s2 + $0x114] sm:$0xf] }
 0x3ca   : > { %4153 = vmatpush.bf16.msra.mxu0 %v5306_v3  ;;  %v4947_v3 = vld [vmem:[%s7700_s2 + $0x158] sm:$0xf0] }
 0x3cb   : > { %4166 = vmatpush.bf16.msra.mxu1 %v5370_v1  ;;  %v5574_v1 = vld [vmem:[%s7700_s2 + $0x1d4] sm:$0xf]  ;;  %v4950_v43 = vor.u32 %v5558_v53, %v4947_v3  ;;  %v5107_v53 = vld [vmem:[%s7700_s2 + $0x298] sm:$0xf0]  ;;  %v4918_v3 = vor.u32 %v5550_v22, %v4915_v44 }
 0x3cc   : > { %4179 = vmatpush.bf16.msra.mxu2 %v4798_v40  ;;  %v5150_v40 = vor.u32 %v5608_v20, %v5147_v36  ;;  %v5014_v61 = vor.u32 %v5574_v1, %v5011_v2  ;;  %v4979_v36 = vld [vmem:[%s7700_s2 + $0x198] sm:$0xf0]  ;;  %v5548_v1 = vld [vmem:[%s7700_s2 + $0x104] sm:$0xf] }
 0x3cd   : > { %4192 = vmatpush.bf16.msra.mxu3 %v4862_v45  ;;  %v5606_v45 = vld [vmem:[%s7700_s2 + $0x2d4] sm:$0xf]  ;;  %v4982_v2 = vor.u32 %v5566_v34, %v4979_v36 }
 0x3ce   : > { %4154 = vmatpush.bf16.msra.mxu0 %v5298_v4  ;;  %v4939_v4 = vld [vmem:[%s7700_s2 + $0x148] sm:$0xf0]  ;;  %v5142_v6 = vor.u32 %v5606_v45, %v5139_v14  ;;  %v5580_v14 = vld [vmem:[%s7700_s2 + $0x204] sm:$0xf] }
 0x3cf   : > { %4167 = vmatpush.bf16.msra.mxu1 %v5362_v24  ;;  %v5604_v24 = vld [vmem:[%s7700_s2 + $0x2c4] sm:$0xf]  ;;  %v4942_v9 = vor.u32 %v5556_v18, %v4939_v4  ;;  %v4971_v45 = vld [vmem:[%s7700_s2 + $0x188] sm:$0xf0]  ;;  %v5626_v4 = vld [vmem:[%s7700_s2 + $0x374] sm:$0xf] }
 0x3d0   : > { %4180 = vmatpush.bf16.msra.mxu2 %v4790_v7  ;;  %v5131_v7 = vld [vmem:[%s7700_s2 + $0x2c8] sm:$0xf0] }
 0x3d1   : > { %4193 = vmatpush.bf16.msra.mxu3 %v4854_v50  ;;  %v5554_v50 = vld [vmem:[%s7700_s2 + $0x134] sm:$0xf]  ;;  %v5134_v12 = vor.u32 %v5604_v24, %v5131_v7  ;;  %v5099_v18 = vld [vmem:[%s7700_s2 + $0x288] sm:$0xf0]  ;;  %v5347_v24 = vld [vmem:[%s7700_s2 + $0x478] sm:$0xf0]  ;;  %v4974_v7 = vor.u32 %v5564_v63, %v4971_v45 }
 0x3d2   : > { %4155 = vmatpush.bf16.msra.mxu0 %v5290_v15  ;;  %v5602_v15 = vld [vmem:[%s7700_s2 + $0x2b4] sm:$0xf]  ;;  %v4934_v39 = vor.u32 %v5554_v50, %v4931_v11 }
 0x3d3   : > { %4168 = vmatpush.bf16.msra.mxu1 %v5354_v8  ;;  %v5062_v8 = vor.u32 %v5586_v38, %v5059_v49  ;;  %v5211_v38 = vld [vmem:[%s7700_s2 + $0x368] sm:$0xf0]  ;;  %v5640_v49 = vld [vmem:[%s7700_s2 + $0x3e4] sm:$0xf]  ;;  %v5634_v63 = vld [vmem:[%s7700_s2 + $0x3b4] sm:$0xf] }
 0x3d4   : > { %4181 = vmatpush.bf16.msra.mxu2 %v4782_v17  ;;  %v5552_v17 = vld [vmem:[%s7700_s2 + $0x124] sm:$0xf] }
 0x3d5   : > { %4194 = vmatpush.bf16.msra.mxu3 %v4846_v54  ;;  %4156 = vmatmul.bf16.vlgmr.msra.gmra.mxu0 %v7307_v28  ;;  %v5126_v54 = vor.u32 %v5602_v15, %v5123_v16  ;;  %v4926_v33 = vor.u32 %v5552_v17, %v4923_v31  ;;  %v5275_v16 = vld [vmem:[%s7700_s2 + $0x3e8] sm:$0xf0]  ;;  %v5214_v31 = vor.u32 %v5624_v25, %v5211_v38  ;;  %v5614_v25 = vld [vmem:[%s7700_s2 + $0x314] sm:$0xf]  ;;  %v5171_v38 = vld [vmem:[%s7700_s2 + $0x318] sm:$0xf0] }
 0x3d6   : > { %4200 = vmatpush.bf16.msrb.mxu0 %v4966_v23  ;;  %4169 = vmatmul.bf16.vlgmr.msra.gmra.mxu1 %v7318_v35  ;;  %v4987_v23 = vld [vmem:[%s7700_s2 + $0x1a8] sm:$0xf0] }
 0x3d7   : > { %4213 = vmatpush.bf16.msrb.mxu1 %v5030_v27  ;;  %4182 = vmatmul.bf16.vlgmr.msra.gmra.mxu2 %v6991_v13  ;;  %v5572_v13 = vld [vmem:[%s7700_s2 + $0x1c4] sm:$0xf]  ;;  %v5051_v27 = vld [vmem:[%s7700_s2 + $0x228] sm:$0xf0]  ;;  %v4990_v5 = vor.u32 %v5568_v19, %v4987_v23  ;;  %v5278_v19 = vor.u32 %v5640_v49, %v5275_v16  ;;  %v5622_v23 = vld [vmem:[%s7700_s2 + $0x354] sm:$0xf] }
 0x3d8   : > { %4226 = vmatpush.bf16.msrb.mxu2 %v5094_v52  ;;  %4195 = vmatmul.bf16.vlgmr.msra.gmra.mxu3 %v7001_v0  ;;  %v5003_v0 = vld [vmem:[%s7700_s2 + $0x1c8] sm:$0xf0]  ;;  %v5600_v52 = vld [vmem:[%s7700_s2 + $0x2a4] sm:$0xf]  ;;  %v5630_v49 = vld [vmem:[%s7700_s2 + $0x394] sm:$0xf] }
 0x3d9   : > { %4239 = vmatpush.bf16.msrb.mxu3 %v5158_v32  ;;  %v5006_v47 = vor.u32 %v5572_v13, %v5003_v0  ;;  %v5054_v32 = vor.u32 %v5584_v26, %v5051_v27  ;;  %v5118_v20 = vor.u32 %v5600_v52, %v5115_v59  ;;  %v5219_v13 = vld [vmem:[%s7700_s2 + $0x378] sm:$0xf0]  ;;  %v5403_v17 = vld [vmem:[%s7700_s2 + $0x4e8] sm:$0xf0]  ;;  %v5638_v27 = vld [vmem:[%s7700_s2 + $0x3d4] sm:$0xf] }
 0x3da   : > { %4201 = vmatpush.bf16.msrb.mxu0 %v4958_v56  ;;  %v5582_v56 = vld [vmem:[%s7700_s2 + $0x214] sm:$0xf]  ;;  %v5222_v11 = vor.u32 %v5626_v4, %v5219_v13  ;;  %v5203_v26 = vld [vmem:[%s7700_s2 + $0x358] sm:$0xf0] }
 0x3db   : > { %4214 = vmatpush.bf16.msrb.mxu1 %v5022_v30  ;;  %v5043_v30 = vld [vmem:[%s7700_s2 + $0x218] sm:$0xf0]  ;;  %v5206_v22 = vor.u32 %v5622_v23, %v5203_v26  ;;  %v5612_v23 = vld [vmem:[%s7700_s2 + $0x304] sm:$0xf]  ;;  %v5163_v26 = vld [vmem:[%s7700_s2 + $0x308] sm:$0xf0] }
 0x3dc   : > { %4227 = vmatpush.bf16.msrb.mxu2 %v5086_v37  ;;  %v5598_v37 = vld [vmem:[%s7700_s2 + $0x294] sm:$0xf]  ;;  %v5046_v42 = vor.u32 %v5582_v56, %v5043_v30  ;;  %v5267_v59 = vld [vmem:[%s7700_s2 + $0x3d8] sm:$0xf0]  ;;  %v5652_v56 = vld [vmem:[%s7700_s2 + $0x444] sm:$0xf] }
 0x3dd   : > { %4240 = vmatpush.bf16.msrb.mxu3 %v5150_v40  ;;  %v4907_v40 = vld [vmem:[%s7700_s2 + $0x108] sm:$0xf0]  ;;  %v5270_v44 = vor.u32 %v5638_v27, %v5267_v59  ;;  %v5235_v16 = vld [vmem:[%s7700_s2 + $0x398] sm:$0xf0]  ;;  %v5628_v27 = vld [vmem:[%s7700_s2 + $0x384] sm:$0xf] }
 0x3de   : > { %4202 = vmatpush.bf16.msrb.mxu0 %v4950_v43  ;;  %v5110_v43 = vor.u32 %v5598_v37, %v5107_v53  ;;  %v4910_v0 = vor.u32 %v5548_v1, %v4907_v40  ;;  %v5323_v30 = vld [vmem:[%s7700_s2 + $0x448] sm:$0xf0]  ;;  %v5668_v37 = vld [vmem:[%s7700_s2 + $0x4c4] sm:$0xf] }
 0x3df   : > { %4215 = vmatpush.bf16.msrb.mxu1 %v5014_v61  ;;  %v5035_v61 = vld [vmem:[%s7700_s2 + $0x208] sm:$0xf0]  ;;  %v5326_v40 = vor.u32 %v5652_v56, %v5323_v30 }
 0x3e0   : > { %4228 = vmatpush.bf16.msrb.mxu2 %v5078_v29  ;;  %v5596_v29 = vld [vmem:[%s7700_s2 + $0x284] sm:$0xf]  ;;  %v5387_v53 = vld [vmem:[%s7700_s2 + $0x4c8] sm:$0xf0] }
 0x3e1   : > { %4241 = vmatpush.bf16.msrb.mxu3 %v5142_v6  ;;  %v5642_v6 = vld [vmem:[%s7700_s2 + $0x3f4] sm:$0xf]  ;;  %v5102_v50 = vor.u32 %v5596_v29, %v5099_v18  ;;  %v5390_v45 = vor.u32 %v5668_v37, %v5387_v53  ;;  %v5379_v18 = vld [vmem:[%s7700_s2 + $0x4b8] sm:$0xf0]  ;;  %v5227_v59 = vld [vmem:[%s7700_s2 + $0x388] sm:$0xf0] }
 0x3e2   : > { %4203 = vmatpush.bf16.msrb.mxu0 %v4942_v9  ;;  %v5038_v9 = vor.u32 %v5580_v14, %v5035_v61  ;;  %v5286_v57 = vor.u32 %v5642_v6, %v5283_v48  ;;  %v5251_v14 = vld [vmem:[%s7700_s2 + $0x3b8] sm:$0xf0]  ;;  %v5666_v29 = vld [vmem:[%s7700_s2 + $0x4b4] sm:$0xf]  ;;  %v5179_v48 = vld [vmem:[%s7700_s2 + $0x328] sm:$0xf0] }
 0x3e3   : > { %4216 = vmatpush.bf16.msrb.mxu1 %v5006_v47  ;;  %v5674_v47 = vld [vmem:[%s7700_s2 + $0x4f4] sm:$0xf]  ;;  %v5315_v61 = vld [vmem:[%s7700_s2 + $0x438] sm:$0xf0]  ;;  %v5254_v13 = vor.u32 %v5634_v63, %v5251_v14 }
 0x3e4   : > { %4229 = vmatpush.bf16.msrb.mxu2 %v5070_v10  ;;  %v5411_v10 = vld [vmem:[%s7700_s2 + $0x4f8] sm:$0xf0] }
 0x3e5   : > { %4242 = vmatpush.bf16.msrb.mxu3 %v5134_v12  ;;  %v5350_v12 = vor.u32 %v5658_v21, %v5347_v24  ;;  %v5414_v15 = vor.u32 %v5674_v47, %v5411_v10  ;;  %v5632_v21 = vld [vmem:[%s7700_s2 + $0x3a4] sm:$0xf]  ;;  %v5382_v24 = vor.u32 %v5666_v29, %v5379_v18  ;;  %v5307_v47 = vld [vmem:[%s7700_s2 + $0x428] sm:$0xf0] }
 0x3e6   : > { %4204 = vmatpush.bf16.msrb.mxu0 %v4934_v39  ;;  %v5656_v39 = vld [vmem:[%s7700_s2 + $0x464] sm:$0xf] }
 0x3e7   : > { %4217 = vmatpush.bf16.msrb.mxu1 %v4998_v51  ;;  %v5339_v51 = vld [vmem:[%s7700_s2 + $0x468] sm:$0xf0]  ;;  %v5664_v10 = vld [vmem:[%s7700_s2 + $0x4a4] sm:$0xf] }
 0x3e8   : > { %4230 = vmatpush.bf16.msrb.mxu2 %v5062_v8  ;;  %v5672_v8 = vld [vmem:[%s7700_s2 + $0x4e4] sm:$0xf] }
 0x3e9   : > { %4243 = vmatpush.bf16.msrb.mxu3 %v5126_v54  ;;  %v5342_v54 = vor.u32 %v5656_v39, %v5339_v51  ;;  %v5406_v52 = vor.u32 %v5672_v8, %v5403_v17  ;;  %v5646_v39 = vld [vmem:[%s7700_s2 + $0x414] sm:$0xf]  ;;  %v5299_v51 = vld [vmem:[%s7700_s2 + $0x418] sm:$0xf0] }
 0x3ea   : > { %4205 = vmatpush.bf16.msrb.mxu0 %v4926_v33  ;;  %v5654_v33 = vld [vmem:[%s7700_s2 + $0x454] sm:$0xf]  ;;  %v5363_v17 = vld [vmem:[%s7700_s2 + $0x498] sm:$0xf0] }
 0x3eb   : > { %4218 = vmatpush.bf16.msrb.mxu1 %v4990_v5  ;;  %v5331_v5 = vld [vmem:[%s7700_s2 + $0x458] sm:$0xf0]  ;;  %v5662_v8 = vld [vmem:[%s7700_s2 + $0x494] sm:$0xf] }
 0x3ec   : > { %4231 = vmatpush.bf16.msrb.mxu2 %v5054_v32  ;;  %v5395_v32 = vld [vmem:[%s7700_s2 + $0x4d8] sm:$0xf0]  ;;  %v5334_v34 = vor.u32 %v5654_v33, %v5331_v5  ;;  %v5644_v33 = vld [vmem:[%s7700_s2 + $0x404] sm:$0xf]  ;;  %v5291_v5 = vld [vmem:[%s7700_s2 + $0x408] sm:$0xf0] }
 0x3ed   : > { %4244 = vmatpush.bf16.msrb.mxu3 %v5118_v20  ;;  %v5636_v20 = vld [vmem:[%s7700_s2 + $0x3c4] sm:$0xf] }
 0x3ee   : > { %4206 = vmatpush.bf16.msrb.mxu0 %v4918_v3 }
 0x3ef   : > { %4219 = vmatpush.bf16.msrb.mxu1 %v4982_v2  ;;  %v5618_v2 = vld [vmem:[%s7700_s2 + $0x334] sm:$0xf] }
 0x3f0   : > { %4232 = vmatpush.bf16.msrb.mxu2 %v5046_v42  ;;  %v5187_v42 = vld [vmem:[%s7700_s2 + $0x338] sm:$0xf0] }
 0x3f1   : > { %4245 = vmatpush.bf16.msrb.mxu3 %v5110_v43  ;;  %v5650_v43 = vld [vmem:[%s7700_s2 + $0x434] sm:$0xf]  ;;  %v5190_v4 = vor.u32 %v5618_v2, %v5187_v42 }
 0x3f2   : > { %4207 = vmatpush.bf16.msrb.mxu0 %v4910_v0  ;;  %v5318_v6 = vor.u32 %v5650_v43, %v5315_v61  ;;  %v5616_v0 = vld [vmem:[%s7700_s2 + $0x324] sm:$0xf] }
 0x3f3   : > { %4220 = vmatpush.bf16.msrb.mxu1 %v4974_v7  ;;  %v5243_v7 = vld [vmem:[%s7700_s2 + $0x3a8] sm:$0xf0] }
 0x3f4   : > { %4233 = vmatpush.bf16.msrb.mxu2 %v5038_v9  ;;  %v5648_v9 = vld [vmem:[%s7700_s2 + $0x424] sm:$0xf] }
 0x3f5   : > { %4246 = vmatpush.bf16.msrb.mxu3 %v5102_v50  ;;  %4208 = vmatmul.bf16.vlgmr.msrb.gmra.mxu0 %v6989_v41  ;;  %v5620_v41 = vld [vmem:[%s7700_s2 + $0x344] sm:$0xf]  ;;  %v5371_v50 = vld [vmem:[%s7700_s2 + $0x4a8] sm:$0xf0] }
 0x3f6   : > { %4252 = vmatpush.bf16.msra.mxu0 %v5222_v11  ;;  %4221 = vmatmul.bf16.vlgmr.msrb.gmra.mxu1 %v6999_v60  ;;  %v5259_v60 = vld [vmem:[%s7700_s2 + $0x3c8] sm:$0xf0]  ;;  %v5182_v11 = vor.u32 %v5616_v0, %v5179_v48 }
 0x3f7   : > { %4265 = vmatpush.bf16.msra.mxu1 %v5286_v57  ;;  %4234 = vmatmul.bf16.vlgmr.msrb.gmra.mxu2 %v7120_v62  ;;  %v5670_v62 = vld [vmem:[%s7700_s2 + $0x4d4] sm:$0xf]  ;;  %v5262_v1 = vor.u32 %v5636_v20, %v5259_v60  ;;  %v5246_v57 = vor.u32 %v5632_v21, %v5243_v7 }
 0x3f8   : > { %4278 = vmatpush.bf16.msra.mxu2 %v5350_v12  ;;  %4247 = vmatmul.bf16.vlgmr.msrb.gmra.mxu3 %v7124_v46  ;;  %v5195_v46 = vld [vmem:[%s7700_s2 + $0x348] sm:$0xf0]  ;;  %v5398_v36 = vor.u32 %v5670_v62, %v5395_v32  ;;  %v5310_v12 = vor.u32 %v5648_v9, %v5307_v47  ;;  %v5660_v62 = vld [vmem:[%s7700_s2 + $0x484] sm:$0xf] }
 0x3f9   : > { %4291 = vmatpush.bf16.msra.mxu3 %v5414_v15  ;;  %v5198_v3 = vor.u32 %v5620_v41, %v5195_v46  ;;  %v5374_v15 = vor.u32 %v5664_v10, %v5371_v50  ;;  %v5355_v32 = vld [vmem:[%s7700_s2 + $0x488] sm:$0xf0]  ;;  %v3238_v46 = vld [vmem:[%s7701_s3] sm:$0x3] }
 0x3fa   : > { %4253 = vmatpush.bf16.msra.mxu0 %v5214_v31  ;;  %v5174_v31 = vor.u32 %v5614_v25, %v5171_v38  ;;  %v5358_v41 = vor.u32 %v5660_v62, %v5355_v32  ;;  %v3240_v20 = vperm.slane %v3238_v46, 0 }
 0x3fb   : > { %4266 = vmatpush.bf16.msra.mxu1 %v5278_v19  ;;  %v5238_v19 = vor.u32 %v5630_v49, %v5235_v16 }
 0x3fc   : > { %4279 = vmatpush.bf16.msra.mxu2 %v5342_v54  ;;  %v5302_v54 = vor.u32 %v5646_v39, %v5299_v51 }
 0x3fd   : > { %4292 = vmatpush.bf16.msra.mxu3 %v5406_v52  ;;  %v5366_v52 = vor.u32 %v5662_v8, %v5363_v17 }
 0x3fe   : > { %4254 = vmatpush.bf16.msra.mxu0 %v5206_v22  ;;  %v5166_v22 = vor.u32 %v5612_v23, %v5163_v26 }
 0x3ff   : > { %4267 = vmatpush.bf16.msra.mxu1 %v5270_v44  ;;  %v5230_v44 = vor.u32 %v5628_v27, %v5227_v59 }
 0x400   : > { %4280 = vmatpush.bf16.msra.mxu2 %v5334_v34  ;;  %v5294_v34 = vor.u32 %v5644_v33, %v5291_v5 }
 0x401   : > { %4293 = vmatpush.bf16.msra.mxu3 %v5398_v36 }
 0x402   : > { %4255 = vmatpush.bf16.msra.mxu0 %v5198_v3 }
 0x403   : > { %4268 = vmatpush.bf16.msra.mxu1 %v5262_v1 }
 0x404   : > { %4281 = vmatpush.bf16.msra.mxu2 %v5326_v40 }
 0x405   : > { %4294 = vmatpush.bf16.msra.mxu3 %v5390_v45 }
 0x406   : > { %4256 = vmatpush.bf16.msra.mxu0 %v5190_v4 }
 0x407   : > { %4269 = vmatpush.bf16.msra.mxu1 %v5254_v13 }
 0x408   : > { %4282 = vmatpush.bf16.msra.mxu2 %v5318_v6 }
 0x409   : > { %4295 = vmatpush.bf16.msra.mxu3 %v5382_v24 }
 0x40a   : > { %4257 = vmatpush.bf16.msra.mxu0 %v5182_v11 }
 0x40b   : > { %4270 = vmatpush.bf16.msra.mxu1 %v5246_v57 }
 0x40c   : > { %4283 = vmatpush.bf16.msra.mxu2 %v5310_v12  ;;  %v3241_v12 = vperm.slane %v3238_v46, 1 }
 0x40d   : > { %4296 = vmatpush.bf16.msra.mxu3 %v5374_v15 }
 0x40e   : > { %4258 = vmatpush.bf16.msra.mxu0 %v5174_v31 }
 0x40f   : > { %4271 = vmatpush.bf16.msra.mxu1 %v5238_v19 }
 0x410   : > { %4284 = vmatpush.bf16.msra.mxu2 %v5302_v54 }
 0x411   : > { %4297 = vmatpush.bf16.msra.mxu3 %v5366_v52 }
 0x412   : > { %4259 = vmatpush.bf16.msra.mxu0 %v5166_v22 }
 0x413   : > { %4272 = vmatpush.bf16.msra.mxu1 %v5230_v44 }
 0x414   : > { %4285 = vmatpush.bf16.msra.mxu2 %v5294_v34 }
 0x415   : > { %4298 = vmatpush.bf16.msra.mxu3 %v5358_v41  ;;  %4260 = vmatmul.bf16.vlgmr.msra.gmra.mxu0 %v7112_v55 }
 0x416   : > { %4273 = vmatmul.bf16.vlgmr.msra.gmra.mxu1 %v7122_v58 }
 0x417   : > { %4286 = vmatmul.bf16.vlgmr.msra.gmra.mxu2 %v7307_v28 }
 0x418   : > { %4299 = vmatmul.bf16.vlgmr.msra.gmra.mxu3 %v7318_v35 }
 0x419   : > { %v4053_v36 = vpop.f32.mrf.mxu0 }
 0x41a   : > { %v4054_v60 = vadd.f32 %v4053_v36, %v3240_v20 }
 0x41d   : > { %v4066_v56 = vpop.f32.mrf.mxu1 }
 0x41e   : > { %v4067_v30 = vadd.f32 %v4066_v56, %v4054_v60 }
 0x420   : > { %v4079_v37 = vpop.f32.mrf.mxu2 }
 0x421   : > { %v4080_v53 = vadd.f32 %v4079_v37, %v4067_v30  ;;  %v4092_v3 = vpop.f32.mrf.mxu3  ;;  %v4055_v55 = vpop.f32.mrf.mxu0 }
 0x423   : > { %v4093_v1 = vadd.f32 %v4092_v3, %v4080_v53 }
 0x425   : > { %v4068_v40 = vpop.f32.mrf.mxu1 }
 0x428   : > { %v4081_v58 = vpop.f32.mrf.mxu2 }
 0x429   : > { %v4094_v2 = vpop.f32.mrf.mxu3 }
 0x432   : > { %v4105_v28 = vpop.f32.mrf.mxu0 }
 0x433   : > { %v4106_v42 = vadd.f32 %v4105_v28, %v4093_v1  ;;  %v4118_v35 = vpop.f32.mrf.mxu1 }
 0x435   : > { %v4119_v63 = vadd.f32 %v4118_v35, %v4106_v42 }
 0x43a   : > { %v4131_v45 = vpop.f32.mrf.mxu2  ;;  %v4107_v29 = vpop.f32.mrf.mxu0 }
 0x43b   : > { %v4132_v14 = vadd.f32 %v4131_v45, %v4119_v63  ;;  %v4144_v43 = vpop.f32.mrf.mxu3  ;;  %v4120_v18 = vpop.f32.mrf.mxu1 }
 0x43d   : > { %v4145_v61 = vadd.f32 %v4144_v43, %v4132_v14 }
 0x442   : > { %v4133_v4 = vpop.f32.mrf.mxu2 }
 0x443   : > { %v4146_v13 = vpop.f32.mrf.mxu3 }
 0x452   : > { %v4157_v6 = vpop.f32.mrf.mxu0 }
 0x453   : > { %v4158_v0 = vadd.f32 %v4157_v6, %v4145_v61  ;;  %v4170_v48 = vpop.f32.mrf.mxu1 }
 0x455   : > { %v4171_v21 = vadd.f32 %v4170_v48, %v4158_v0 }
 0x45a   : > { %v4183_v24 = vpop.f32.mrf.mxu2  ;;  %v4159_v9 = vpop.f32.mrf.mxu0 }
 0x45b   : > { %v4196_v7 = vpop.f32.mrf.mxu3  ;;  %v4172_v47 = vpop.f32.mrf.mxu1  ;;  %v4184_v49 = vadd.f32 %v4183_v24, %v3241_v12 }
 0x45d   : > { %v4197_v39 = vadd.f32 %v4196_v7, %v4184_v49 }
 0x462   : > { %v4185_v10 = vpop.f32.mrf.mxu2 }
 0x463   : > { %v4198_v50 = vpop.f32.mrf.mxu3 }
 0x472   : > { %v4209_v11 = vpop.f32.mrf.mxu0 }
 0x473   : > { %v4222_v57 = vpop.f32.mrf.mxu1  ;;  %v4210_v17 = vadd.f32 %v4209_v11, %v4197_v39 }
 0x475   : > { %v4223_v31 = vadd.f32 %v4222_v57, %v4210_v17 }
 0x47a   : > { %v4235_v25 = vpop.f32.mrf.mxu2  ;;  %v4211_v15 = vpop.f32.mrf.mxu0 }
 0x47b   : > { %v4248_v38 = vpop.f32.mrf.mxu3  ;;  %v4224_v16 = vpop.f32.mrf.mxu1  ;;  %v4236_v19 = vadd.f32 %v4235_v25, %v4223_v31 }
 0x47d   : > { %v4249_v54 = vadd.f32 %v4248_v38, %v4236_v19 }
 0x482   : > { %v4237_v51 = vpop.f32.mrf.mxu2 }
 0x483   : > { %v4250_v8 = vpop.f32.mrf.mxu3 }
 0x492   : > { %v4261_v23 = vpop.f32.mrf.mxu0 }
 0x493   : > { %v4274_v26 = vpop.f32.mrf.mxu1  ;;  %v4262_v27 = vadd.f32 %v4261_v23, %v4249_v54 }
 0x495   : > { %v4275_v52 = vadd.f32 %v4274_v26, %v4262_v27 }
 0x49a   : > { %v4287_v59 = vpop.f32.mrf.mxu2  ;;  %v4263_v62 = vpop.f32.mrf.mxu0 }
 0x49b   : > { %v4288_v33 = vadd.f32 %v4287_v59, %v4275_v52  ;;  %v4300_v5 = vpop.f32.mrf.mxu3  ;;  %v4276_v32 = vpop.f32.mrf.mxu1 }
 0x49d   : > { %v4301_v22 = vadd.f32 %v4300_v5, %v4288_v33 }
 0x49f   : > { %v4306_v44 = vrot.slane %v4301_v22, 6 }
 0x4a1   : > { %v4307_v34 = vsel %vm2978_vm0, %v4171_v21, %v4306_v44 }
 0x4a2   : > { %4309 = vst [vmem:[#allocation4] sm:$0xf] %v4307_v34  ;;  %v4289_v41 = vpop.f32.mrf.mxu2 }
 0x4a3   : > { %v4302_v46 = vpop.f32.mrf.mxu3 }
 0x4a4 PF: > { %p5696_p11 = scmp.eq.s32.totalorder %s4381_s20, 1  ;;  %s4321_s7 = sshll.u32 %s7702_s4, 4  ;;  %s4322_s7 = int_to_ptr.hbm [resolvable:$true] %s4321_s7 }
 0x4a5   : > { %s5837_s9 = smov [#allocation4]  }
 0x4a6   : > { %s4319_s10 = sshll.u32 %s5837_s9, 4  ;;  %s4320_s10 = int_to_ptr.vmem [resolvable:$true] %s4319_s10 }
 0x4a7   : > { %5693 = dma.vmem_to_hbm [thread:$0]  (%p5696_p11), %s4320_s10, 64, %s4322_s7, [#allocation5]  }
 0x4a8   : > { %5813 = dma.done.wait (%p5696_p11), [#allocation5], 64  }
 0x4a9   : > { %5815 = vsyncadd (%p5696_p11), [#allocation5], 4294967232 }
 0x4aa PF: > { %s15_s19 = sadd.s32 1, %s5834_s19   ;;  %s7703_s15 = smov %s5822_s16 }
 0x4ab   : > { %p12_p12 = scmp.ge.s32.totalorder %s15_s19, 4   ;;  %s7704_s16 = smov %s5899_s24 }
 0x4ac   : > { %s7705_s17 = smov %s5830_s18  ;;  %s7706_s18 = smov %s7708_s21 }
 0x4ad   :  { %14 = sbr.rel (!%p12_p12) target bundleno = 3 (0x3), region = 119 }
 0x4b2   :  { %4335 = vsyncpa [#allocation5], 1 }
 0x4b3   :  { %4337 = vsyncpa [#allocation5 + $0x1], 1 }

</bundles_post_ra>
